<compile_context>
chip_gen: v5e
topology: v5e:2x2
jax: 0.10.0
libtpu: 0.0.40
codegen_flags: <defaults>
</compile_context>

<pallas_src>
import functools
import math

import jax
import jax.numpy as jnp
from jax.experimental import pallas as pl
from jax.experimental.pallas import tpu as pltpu


# ----------------------------- hardware-aware config -----------------------------

def _query_phys_vmem_bytes():
    try:
        info = pltpu.get_tpu_info()
    except Exception:
        return None
    for attr in ("vmem_capacity_bytes", "vmem_size_bytes", "vmem_bytes"):
        v = getattr(info, attr, None)
        if isinstance(v, int) and v > 0:
            return v
    return None


# v5e/v6e: 128 MiB physical -> ~96 MiB scoped limit; v7x: 64 MiB per TC -> ~48 MiB.
# If the query fails, stay conservative (v7x-safe).
_PHYS_VMEM = _query_phys_vmem_bytes() or (64 * 1024 * 1024)
_VMEM_LIMIT = int(_PHYS_VMEM * 3 // 4)
_BIG_VMEM = _VMEM_LIMIT >= 80 * 1024 * 1024  # v5e / v6e


def _tile_rows(dim, preferred, min_blocks=1):
    """Sublane-dim tile: multiple of 8 or the full dim.  min_blocks=2 keeps the leading
    'parallel' grid axis splittable across v7x's two TensorCores."""
    if dim <= preferred:
        t = dim
    else:
        t = dim
        for cand in (1024, 512, 256, 128, 64, 32, 16, 8):
            if cand <= preferred and dim % cand == 0:
                t = cand
                break
    while (min_blocks > 1 and dim // t < min_blocks and t % 16 == 0
           and dim % (t // 2) == 0):
        t //= 2
    return t


def _tile_lanes(dim, preferred):
    """Lane-dim tile: prefer 256-aligned panels (full MXU occupancy on v6e/v7x)."""
    if dim <= preferred:
        return dim
    for cand in (1024, 512, 256, 128):
        if cand <= preferred and dim % cand == 0:
            return cand
    return dim


# --------------------------- fused LN + projection GEMM ---------------------------


def _proj_kernel(*refs, use_ln, use_res, out_scale, compute_dtype):
    x_ref, w_ref, b_ref = refs[0], refs[1], refs[2]
    idx = 3
    if use_ln:
        g_ref, be_ref = refs[idx], refs[idx + 1]
        idx += 2
    if use_res:
        r_ref = refs[idx]
        idx += 1
    o_ref = refs[idx]
    acc_ref = refs[idx + 1]
    xln_ref = refs[idx + 2] if use_ln else None

    j = pl.program_id(1)
    k = pl.program_id(2)
    nk = pl.num_programs(2)

    if use_ln:
        # LayerNorm once per row block: cached in a bf16 (tm, K) scratch at the first
        # (j, k) visit, then re-sliced for every later (j, k) tile (no recompute).
        @pl.when(jnp.logical_and(j == 0, k == 0))
        def _():
            x = x_ref[...].astype(jnp.float32)
            mu = jnp.mean(x, axis=-1, keepdims=True)
            var = jnp.mean(jnp.square(x - mu), axis=-1, keepdims=True)
            xn = (x - mu) * jax.lax.rsqrt(var + 1e-5)
            xn = xn * g_ref[...].astype(jnp.float32) + be_ref[...].astype(jnp.float32)
            xln_ref[...] = xn.astype(xln_ref.dtype)

    @pl.when(k == 0)
    def _():
        acc_ref[...] = jnp.zeros_like(acc_ref)

    if use_ln:
        tk = w_ref.shape[0]
        xs = xln_ref[:, pl.ds(pl.multiple_of(k * tk, tk), tk)]
    else:
        xs = x_ref[...].astype(compute_dtype)
    acc_ref[...] += jnp.dot(xs, w_ref[...].astype(compute_dtype),
                            preferred_element_type=jnp.float32)

    @pl.when(k == nk - 1)
    def _():
        y = acc_ref[...] + b_ref[...].astype(jnp.float32)
        if use_res:
            y = y + r_ref[...].astype(jnp.float32)
        if out_scale != 1.0:
            y = y * jnp.float32(out_scale)
        o_ref[...] = y.astype(o_ref.dtype)


def fused_projection(x, w, b, *, ln=None, residual=None, out_scale=1.0,
                     compute_dtype=jnp.bfloat16, out_dtype=jnp.float32,
                     tm=None, tn=512, tk=512):
    """out = (LN(x) if ln else x) @ w + b [+ residual] [* out_scale]."""
    M, K = x.shape
    Kw, Nout = w.shape
    assert K == Kw
    use_ln = ln is not None
    use_res = residual is not None

    if tm is None:
        tm = 512 if _BIG_VMEM else 256
    tm = _tile_rows(M, tm, min_blocks=2)
    tn = _tile_lanes(Nout, tn)
    tk = _tile_lanes(K, tk)
    grid = (M // tm, Nout // tn, K // tk)

    if use_ln:
        # LN needs the full feature row; the block is resident across (j, k).
        x_spec = pl.BlockSpec((tm, K), lambda i, j, k: (i, 0))
    else:
        x_spec = pl.BlockSpec((tm, tk), lambda i, j, k: (i, k))
    in_specs = [x_spec,
                pl.BlockSpec((tk, tn), lambda i, j, k: (k, j)),
                pl.BlockSpec((1, tn), lambda i, j, k: (0, j))]
    inputs = [x, w, b.reshape(1, Nout)]
    if use_ln:
        g, beta = ln
        in_specs += [pl.BlockSpec((1, K), lambda i, j, k: (0, 0)),
                     pl.BlockSpec((1, K), lambda i, j, k: (0, 0))]
        inputs += [g.reshape(1, K), beta.reshape(1, K)]
    if use_res:
        in_specs.append(pl.BlockSpec((tm, tn), lambda i, j, k: (i, j)))
        inputs.append(residual)

    scratch = [pltpu.VMEM((tm, tn), jnp.float32)]
    if use_ln:
        scratch.append(pltpu.VMEM((tm, K), compute_dtype))

    # j must stay un-sharded so the LN cache computed at j==0 is visible for j>0.
    sem = (("parallel", "arbitrary", "arbitrary") if use_ln
           else ("parallel", "parallel", "arbitrary"))

    kernel = functools.partial(_proj_kernel, use_ln=use_ln, use_res=use_res,
                               out_scale=float(out_scale), compute_dtype=compute_dtype)
    cost = pl.CostEstimate(
        flops=2 * M * Nout * K, transcendentals=0,
        bytes_accessed=int(M * K * x.dtype.itemsize + K * Nout * w.dtype.itemsize
                           + M * Nout * jnp.dtype(out_dtype).itemsize
                           + (M * Nout * residual.dtype.itemsize if use_res else 0)))

    return pl.pallas_call(
        kernel,
        out_shape=jax.ShapeDtypeStruct((M, Nout), out_dtype),
        grid=grid,
        in_specs=in_specs,
        out_specs=pl.BlockSpec((tm, tn), lambda i, j, k: (i, j)),
        scratch_shapes=scratch,
        compiler_params=pltpu.CompilerParams(
            dimension_semantics=sem, vmem_limit_bytes=_VMEM_LIMIT),
        cost_estimate=cost,
    )(*inputs)


# ------------------- flash attention, heads packed in the lane dim -------------------


def _mha_kernel(q_ref, k_ref, v_ref, o_ref, m_ref, l_ref, acc_ref, *,
                nhead, compute_dtype):
    j = pl.program_id(2)
    nj = pl.num_programs(2)
    E = o_ref.shape[-1]
    hd = E // nhead

    @pl.when(j == 0)
    def _():
        m_ref[...] = jnp.full(m_ref.shape, -jnp.inf, dtype=m_ref.dtype)
        l_ref[...] = jnp.zeros(l_ref.shape, dtype=l_ref.dtype)
        acc_ref[...] = jnp.zeros(acc_ref.shape, dtype=acc_ref.dtype)

    q = q_ref[0]          # (tq, E)   all heads packed in lanes
    kk = k_ref[0]         # (tkv, E)
    vv = v_ref[0]         # (tkv, E)

    # The 1/sqrt(hd) scale is folded into the Q projection weights; no score scaling here.
    # TODO(synk): attn_mask / key_padding_mask are not implemented (None in the reference path).
    for h in range(nhead):
        sl = slice(h * hd, (h + 1) * hd)
        s = jax.lax.dot_general(q[:, sl], kk[:, sl], (((1,), (1,)), ((), ())),
                                preferred_element_type=jnp.float32)        # (tq, tkv)
        m_prev = m_ref[h]                                                  # (tq, 1)
        m_new = jnp.maximum(m_prev, jnp.max(s, axis=-1, keepdims=True))
        alpha = jnp.exp(m_prev - m_new)
        p = jnp.exp(s - m_new)
        l_ref[h] = alpha * l_ref[h] + jnp.sum(p, axis=-1, keepdims=True)
        acc_ref[h] = alpha * acc_ref[h] + jnp.dot(
            p.astype(compute_dtype), vv[:, sl], preferred_element_type=jnp.float32)
        m_ref[h] = m_new

    @pl.when(j == nj - 1)
    def _():
        pieces = []
        for h in range(nhead):
            inv = pl.reciprocal(l_ref[h], approx=True)                     # (tq, 1)
            pieces.append(acc_ref[h] * inv)                                # (tq, hd)
        out = pieces[0] if nhead == 1 else jnp.concatenate(pieces, axis=-1)
        o_ref[0] = out.astype(o_ref.dtype)                                 # lane-dense store


def flash_mha(q, k, v, *, nhead, embed_dim, q_col=0, k_col=0, v_col=0,
              compute_dtype=jnp.bfloat16, out_dtype=None, tq=256, tkv=256):
    """q: (B, Lq, *), k/v: (B, Lk, *).  The used (1, tile, E) block is column-block
    {q,k,v}_col of the last dim, so Q/K/V can be served straight out of a single packed
    projection output (no splits / head transposes).  Output: (B, Lq, E)."""
    B, Lq = q.shape[0], q.shape[1]
    Lk = k.shape[1]
    E = embed_dim
    assert E % nhead == 0
    hd = E // nhead
    out_dtype = compute_dtype if out_dtype is None else out_dtype
    tq = _tile_rows(Lq, tq)
    tkv = _tile_rows(Lk, tkv)
    grid = (B, Lq // tq, Lk // tkv)

    kernel = functools.partial(_mha_kernel, nhead=nhead, compute_dtype=compute_dtype)
    return pl.pallas_call(
        kernel,
        out_shape=jax.ShapeDtypeStruct((B, Lq, E), out_dtype),
        grid=grid,
        in_specs=[
            pl.BlockSpec((1, tq, E), lambda b, i, j: (b, i, q_col)),
            pl.BlockSpec((1, tkv, E), lambda b, i, j: (b, j, k_col)),
            pl.BlockSpec((1, tkv, E), lambda b, i, j: (b, j, v_col)),
        ],
        out_specs=pl.BlockSpec((1, tq, E), lambda b, i, j: (b, i, 0)),
        scratch_shapes=[pltpu.VMEM((nhead, tq, 1), jnp.float32),   # running max (per head)
                        pltpu.VMEM((nhead, tq, 1), jnp.float32),   # running denom
                        pltpu.VMEM((nhead, tq, hd), jnp.float32)], # accumulator
        compiler_params=pltpu.CompilerParams(
            dimension_semantics=("parallel", "parallel", "arbitrary"),
            vmem_limit_bytes=_VMEM_LIMIT),
    )(q.astype(compute_dtype), k.astype(compute_dtype), v.astype(compute_dtype))


# -------------------------------- fully fused FFN --------------------------------


def _ffn_kernel(x_ref, w1_ref, b1_ref, w2_ref, b2_ref, g_ref, be_ref, o_ref,
                xln_ref, acc_ref, *, compute_dtype):
    k = pl.program_id(1)
    nk = pl.num_programs(1)

    @pl.when(k == 0)
    def _():
        x = x_ref[...].astype(jnp.float32)
        mu = jnp.mean(x, axis=-1, keepdims=True)
        var = jnp.mean(jnp.square(x - mu), axis=-1, keepdims=True)
        xn = (x - mu) * jax.lax.rsqrt(var + 1e-5)
        xn = xn * g_ref[...].astype(jnp.float32) + be_ref[...].astype(jnp.float32)
        xln_ref[...] = xn.astype(xln_ref.dtype)
        acc_ref[...] = jnp.zeros_like(acc_ref)

    # Hidden tile never touches HBM.
    h = jnp.dot(xln_ref[...], w1_ref[...], preferred_element_type=jnp.float32)
    h = jnp.maximum(h + b1_ref[...].astype(jnp.float32), 0.0)
    acc_ref[...] += jnp.dot(h.astype(compute_dtype), w2_ref[...],
                            preferred_element_type=jnp.float32)

    @pl.when(k == nk - 1)
    def _():
        # x_ref doubles as the residual (same block, resident across the d_ff axis).
        y = acc_ref[...] + b2_ref[...].astype(jnp.float32) + x_ref[...].astype(jnp.float32)
        o_ref[...] = y.astype(o_ref.dtype)


def fused_ffn(x, w1, b1, w2, b2, gamma, beta, *, compute_dtype=jnp.bfloat16,
              tm=None, tf=512):
    """out = x + relu(LN3(x) @ w1 + b1) @ w2 + b2 ; d_ff is the reduction grid axis."""
    M, E = x.shape
    F = w1.shape[1]
    if tm is None:
        tm = 512 if _BIG_VMEM else 256
    tm = _tile_rows(M, tm, min_blocks=2)
    tf = _tile_lanes(F, tf)
    grid = (M // tm, F // tf)

    kernel = functools.partial(_ffn_kernel, compute_dtype=compute_dtype)
    cost = pl.CostEstimate(
        flops=4 * M * E * F, transcendentals=0,
        bytes_accessed=int(M * E * x.dtype.itemsize + E * F * w1.dtype.itemsize
                           + F * E * w2.dtype.itemsize + M * E * 4))

    return pl.pallas_call(
        kernel,
        out_shape=jax.ShapeDtypeStruct((M, E), jnp.float32),
        grid=grid,
        in_specs=[
            pl.BlockSpec((tm, E), lambda i, k: (i, 0)),    # x (LN input AND residual)
            pl.BlockSpec((E, tf), lambda i, k: (0, k)),    # w1
            pl.BlockSpec((1, tf), lambda i, k: (0, k)),    # b1
            pl.BlockSpec((tf, E), lambda i, k: (k, 0)),    # w2
            pl.BlockSpec((1, E), lambda i, k: (0, 0)),     # b2
            pl.BlockSpec((1, E), lambda i, k: (0, 0)),     # norm3 gamma
            pl.BlockSpec((1, E), lambda i, k: (0, 0)),     # norm3 beta
        ],
        out_specs=pl.BlockSpec((tm, E), lambda i, k: (i, 0)),
        scratch_shapes=[pltpu.VMEM((tm, E), compute_dtype),   # cached LN(x) tile
                        pltpu.VMEM((tm, E), jnp.float32)],    # f32 accumulator
        compiler_params=pltpu.CompilerParams(
            dimension_semantics=("parallel", "arbitrary"),
            vmem_limit_bytes=_VMEM_LIMIT),
        cost_estimate=cost,
    )(x, w1, b1.reshape(1, F), w2, b2.reshape(1, E),
      gamma.reshape(1, E), beta.reshape(1, E))


# ------------------------------ attention block wrappers ------------------------------


def self_attention_block(x, p, norm_g, norm_b, nhead, N, L, compute_dtype):
    """x: (N*L, E) f32 stream, rows in (batch n, position l) order.
    x <- x + W_o @ MHA(LN1(x)); no head-splitting transposes: Q/K/V are column blocks of
    one packed (N, L, 3E) array, heads loop inside the kernel (lane-dense output)."""
    E = x.shape[-1]
    qkv = fused_projection(x, p["w_qkv"], p["b_qkv"], ln=(norm_g, norm_b),
                           compute_dtype=compute_dtype, out_dtype=compute_dtype)
    qkv = qkv.reshape(N, L, 3 * E)
    if E % 128 == 0:
        o = flash_mha(qkv, qkv, qkv, nhead=nhead, embed_dim=E,
                      q_col=0, k_col=1, v_col=2, compute_dtype=compute_dtype)
    else:
        # Tiny-model fallback: packed column blocks need E % 128 == 0.
        q3, k3, v3 = jnp.split(qkv, 3, axis=-1)
        o = flash_mha(q3, k3, v3, nhead=nhead, embed_dim=E, compute_dtype=compute_dtype)
    out = fused_projection(o.reshape(N * L, E), p["w_o"], p["b_o"], residual=x,
                           compute_dtype=compute_dtype, out_dtype=jnp.float32)
    return out


def cross_attention_block(x, memory, p, norm_g, norm_b, nhead, N, L, compute_dtype):
    """x: (N*L, E) stream in (n, l) row order; memory: (S, N, E) with S == L.
    Reproduces the reference's permuted cross-attention (attention batch = position l,
    attention sequence = original batch n) and the `tgt = tgt + dropout2(tgt)` doubling
    (out_scale=2).  Returns the new stream as (L, N, E)."""
    E = x.shape[-1]
    S = memory.shape[0]
    assert S == L, "reference permute quirk requires len(tgt) == len(memory)"

    q = fused_projection(x, p["w_q"], p["b_q"], ln=(norm_g, norm_b),
                         compute_dtype=compute_dtype, out_dtype=compute_dtype)
    q = jnp.transpose(q.reshape(N, L, E), (1, 0, 2))          # (L, N, E): batch must lead
    kv = fused_projection(memory.reshape(S * N, E), p["w_kv"], p["b_kv"],
                          compute_dtype=compute_dtype, out_dtype=compute_dtype)
    kv = kv.reshape(S, N, 2 * E)                               # native layout, no transpose
    if E % 128 == 0:
        o = flash_mha(q, kv, kv, nhead=nhead, embed_dim=E, k_col=0, v_col=1,
                      compute_dtype=compute_dtype)
    else:
        k3, v3 = jnp.split(kv, 2, axis=-1)
        o = flash_mha(q, k3, v3, nhead=nhead, embed_dim=E, compute_dtype=compute_dtype)
    out = fused_projection(o.reshape(L * N, E), p["w_o"], p["b_o"], out_scale=2.0,
                           compute_dtype=compute_dtype, out_dtype=jnp.float32)
    return out.reshape(L, N, E)


# ---------------------------------- decoder layer ----------------------------------


def transformer_decoder_layer(tgt, memory, params, nhead, compute_dtype=jnp.bfloat16):
    L, N, E = tgt.shape
    # One layout transpose at entry: running the self-attention half in (n, l) row order
    # makes its per-head layout fall out of the packed QKV columns (the cross-attention Q
    # reorder is the only other full-activation transpose in the layer).
    x = jnp.transpose(tgt, (1, 0, 2)).reshape(N * L, E).astype(jnp.float32)
    x = self_attention_block(x, params["self_attn"], params["norm1_g"],
                             params["norm1_b"], nhead, N, L, compute_dtype)
    y = cross_attention_block(x, memory, params["cross_attn"], params["norm2_g"],
                              params["norm2_b"], nhead, N, L, compute_dtype)
    yf = y.reshape(L * N, E)                                   # rows back in (l, n) order
    out = fused_ffn(yf, params["linear1_w"], params["linear1_b"],
                    params["linear2_w"], params["linear2_b"],
                    params["norm3_g"], params["norm3_b"], compute_dtype=compute_dtype)
    return out.reshape(L, N, E)


# ---------------------------------- parameter init ----------------------------------


def init_params(key, d_model, nhead, dim_feedforward, param_dtype=jnp.bfloat16):
    """Weights stored pre-transposed (in, out), pre-fused (QKV / KV concatenated), and with
    the 1/sqrt(head_dim) attention scale pre-folded into the Q projection weights & bias.
    Apply the same transforms when importing torch weights."""
    hd = d_model // nhead
    scale = 1.0 / math.sqrt(hd)
    ks = jax.random.split(key, 8)

    def w(k, shape, s=0.05):
        return s * jax.random.normal(k, shape, dtype=jnp.float32)

    w_q = w(ks[0], (d_model, d_model)) * scale
    w_k = w(ks[1], (d_model, d_model))
    w_v = w(ks[2], (d_model, d_model))
    self_attn = {
        "w_qkv": jnp.concatenate([w_q, w_k, w_v], axis=1).astype(param_dtype),
        "b_qkv": jnp.zeros((3 * d_model,), jnp.float32),   # Q part would also be *scale
        "w_o": w(ks[3], (d_model, d_model)).astype(param_dtype),
        "b_o": jnp.zeros((d_model,), jnp.float32),
    }
    cross_attn = {
        "w_q": (w(ks[4], (d_model, d_model)) * scale).astype(param_dtype),
        "b_q": jnp.zeros((d_model,), jnp.float32),         # would also be *scale
        "w_kv": jnp.concatenate([w(jax.random.fold_in(ks[4], 1), (d_model, d_model)),
                                 w(jax.random.fold_in(ks[4], 2), (d_model, d_model))],
                                axis=1).astype(param_dtype),
        "b_kv": jnp.zeros((2 * d_model,), jnp.float32),
        "w_o": w(ks[5], (d_model, d_model)).astype(param_dtype),
        "b_o": jnp.zeros((d_model,), jnp.float32),
    }
    return {
        "self_attn": self_attn,
        "cross_attn": cross_attn,
        "linear1_w": w(ks[6], (d_model, dim_feedforward)).astype(param_dtype),
        "linear1_b": jnp.zeros((dim_feedforward,), jnp.float32),
        "linear2_w": w(ks[7], (dim_feedforward, d_model)).astype(param_dtype),
        "linear2_b": jnp.zeros((d_model,), jnp.float32),
        "norm1_g": jnp.ones((d_model,), jnp.float32),
        "norm1_b": jnp.zeros((d_model,), jnp.float32),
        "norm2_g": jnp.ones((d_model,), jnp.float32),
        "norm2_b": jnp.zeros((d_model,), jnp.float32),
        "norm3_g": jnp.ones((d_model,), jnp.float32),
        "norm3_b": jnp.zeros((d_model,), jnp.float32),
    }


if __name__ == "__main__":
    d_model, nhead, dim_feedforward = 128, 4, 256
    L = S = 16   # cross-attention permute quirk requires L == S
    N = 4        # batch

    key = jax.random.PRNGKey(0)
    k_tgt, k_mem, k_par = jax.random.split(key, 3)
    tgt = jax.random.normal(k_tgt, (L, N, d_model), dtype=jnp.float32)
    memory = jax.random.normal(k_mem, (S, N, d_model), dtype=jnp.float32)
    params = init_params(k_par, d_model, nhead, dim_feedforward)

    # TODO(synk): attn_mask / key_padding_mask paths of the reference are not implemented
    # (they are None in the reference's default call path).
    fwd = jax.jit(functools.partial(transformer_decoder_layer, nhead=nhead))
    out = jax.block_until_ready(fwd(tgt, memory, params))
    assert out.shape == (L, N, d_model) and out.dtype == jnp.float32

    print("KERNEL_OK")
</pallas_src>

<mosaic_0001>
module attributes {stable_mosaic.version = 11 : i64} {
  func.func @_proj_kernel(%arg0: i32, %arg1: i32, %arg2: i32, %arg3: memref<32x128xf32, #tpu.memory_space<vmem>>, %arg4: memref<128x384xbf16, #tpu.memory_space<vmem>>, %arg5: memref<1x384xf32, #tpu.memory_space<vmem>>, %arg6: memref<1x128xf32, #tpu.memory_space<vmem>>, %arg7: memref<1x128xf32, #tpu.memory_space<vmem>>, %arg8: memref<32x384xbf16, #tpu.memory_space<vmem>>, %arg9: memref<32x384xf32, #tpu.memory_space<vmem>>, %arg10: memref<32x128xbf16, #tpu.memory_space<vmem>>) attributes {dimension_semantics = [#tpu.dimension_semantics<parallel>, #tpu.dimension_semantics<arbitrary>, #tpu.dimension_semantics<arbitrary>], iteration_bounds = array<i64: 2, 1, 1>, scalar_prefetch = 0 : i64, scratch_operands = 2 : i64, tpu.core_type = #tpu.core_type<tc>, window_params = [{transform_indices = @transform_0, window_bounds = array<i64: 32, 128>}, {transform_indices = @transform_1, window_bounds = array<i64: 128, 384>}, {transform_indices = @transform_2, window_bounds = array<i64: 1, 384>}, {pipeline_mode = #tpu.pipeline_mode<synchronous>, transform_indices = @transform_3, window_bounds = array<i64: 1, 128>}, {pipeline_mode = #tpu.pipeline_mode<synchronous>, transform_indices = @transform_4, window_bounds = array<i64: 1, 128>}, {transform_indices = @transform_5, window_bounds = array<i64: 32, 384>}]} {
    %c0_i32 = arith.constant 0 : i32
    %0 = arith.cmpi eq, %arg1, %c0_i32 : i32
    %c0_i32_0 = arith.constant 0 : i32
    %1 = arith.cmpi eq, %arg2, %c0_i32_0 : i32
    %2 = arith.andi %0, %1 : i1
    %3 = arith.extui %2 : i1 to i32
    %c0_i32_1 = arith.constant 0 : i32
    %4 = arith.cmpi ne, %3, %c0_i32_1 : i32
    scf.if %4 {
      %c0_12 = arith.constant 0 : index
      %c0_13 = arith.constant 0 : index
      %20 = vector.load %arg3[%c0_12, %c0_13] : memref<32x128xf32, #tpu.memory_space<vmem>>, vector<32x128xf32>
      %cst_14 = arith.constant dense<0.000000e+00> : vector<32xf32>
      %21 = vector.multi_reduction <add>, %20, %cst_14 [1] : vector<32x128xf32> to vector<32xf32>
      %22 = vector.shape_cast %21 : vector<32xf32> to vector<32x1xf32>
      %cst_15 = arith.constant 1.280000e+02 : f32
      %23 = vector.broadcast %cst_15 : f32 to vector<32x1xf32>
      %24 = arith.divf %22, %23 : vector<32x1xf32>
      %25 = vector.broadcast %24 : vector<32x1xf32> to vector<32x128xf32>
      %26 = arith.subf %20, %25 : vector<32x128xf32>
      %27 = arith.mulf %26, %26 : vector<32x128xf32>
      %cst_16 = arith.constant dense<0.000000e+00> : vector<32xf32>
      %28 = vector.multi_reduction <add>, %27, %cst_16 [1] : vector<32x128xf32> to vector<32xf32>
      %29 = vector.shape_cast %28 : vector<32xf32> to vector<32x1xf32>
      %cst_17 = arith.constant 1.280000e+02 : f32
      %30 = vector.broadcast %cst_17 : f32 to vector<32x1xf32>
      %31 = arith.divf %29, %30 : vector<32x1xf32>
      %32 = vector.broadcast %24 : vector<32x1xf32> to vector<32x128xf32>
      %33 = arith.subf %20, %32 : vector<32x128xf32>
      %cst_18 = arith.constant 9.99999974E-6 : f32
      %34 = vector.broadcast %cst_18 : f32 to vector<32x1xf32>
      %35 = arith.addf %31, %34 : vector<32x1xf32>
      %36 = math.rsqrt %35 : vector<32x1xf32>
      %37 = vector.broadcast %36 : vector<32x1xf32> to vector<32x128xf32>
      %38 = arith.mulf %33, %37 : vector<32x128xf32>
      %c0_19 = arith.constant 0 : index
      %c0_20 = arith.constant 0 : index
      %39 = vector.load %arg6[%c0_19, %c0_20] : memref<1x128xf32, #tpu.memory_space<vmem>>, vector<1x128xf32>
      %40 = vector.broadcast %39 : vector<1x128xf32> to vector<32x128xf32>
      %41 = arith.mulf %38, %40 : vector<32x128xf32>
      %c0_21 = arith.constant 0 : index
      %c0_22 = arith.constant 0 : index
      %42 = vector.load %arg7[%c0_21, %c0_22] : memref<1x128xf32, #tpu.memory_space<vmem>>, vector<1x128xf32>
      %43 = vector.broadcast %42 : vector<1x128xf32> to vector<32x128xf32>
      %44 = arith.addf %41, %43 : vector<32x128xf32>
      %45 = arith.truncf %44 : vector<32x128xf32> to vector<32x128xbf16>
      %c0_23 = arith.constant 0 : index
      %c0_24 = arith.constant 0 : index
      %46 = vector.load %arg10[%c0_23, %c0_24] : memref<32x128xbf16, #tpu.memory_space<vmem>>, vector<32x128xbf16>
      tpu.vector_store %arg10[%c0_23, %c0_24], %45 {strides = array<i32>} : memref<32x128xbf16, #tpu.memory_space<vmem>>, vector<32x128xbf16>,
    } else {
    }
    %c0_i32_2 = arith.constant 0 : i32
    %5 = arith.cmpi eq, %arg2, %c0_i32_2 : i32
    %6 = arith.extui %5 : i1 to i32
    %c0_i32_3 = arith.constant 0 : i32
    %7 = arith.cmpi ne, %6, %c0_i32_3 : i32
    scf.if %7 {
      %cst_12 = arith.constant 0.000000e+00 : f32
      %20 = vector.broadcast %cst_12 : f32 to vector<32x384xf32>
      %c0_13 = arith.constant 0 : index
      %c0_14 = arith.constant 0 : index
      %21 = vector.load %arg9[%c0_13, %c0_14] : memref<32x384xf32, #tpu.memory_space<vmem>>, vector<32x384xf32>
      tpu.vector_store %arg9[%c0_13, %c0_14], %20 {strides = array<i32>} : memref<32x384xf32, #tpu.memory_space<vmem>>, vector<32x384xf32>,
    } else {
    }
    %c128_i32 = arith.constant 128 : i32
    %8 = arith.muli %arg2, %c128_i32 : i32
    %9 = tpu.assume_multiple %8, 128 : i32
    %c0 = arith.constant 0 : index
    %10 = arith.index_cast %9 : i32 to index
    %11 = vector.load %arg10[%c0, %10] : memref<32x128xbf16, #tpu.memory_space<vmem>>, vector<32x128xbf16>
    %c0_4 = arith.constant 0 : index
    %c0_5 = arith.constant 0 : index
    %12 = vector.load %arg9[%c0_4, %c0_5] : memref<32x384xf32, #tpu.memory_space<vmem>>, vector<32x384xf32>
    %c0_6 = arith.constant 0 : index
    %c0_7 = arith.constant 0 : index
    %13 = vector.load %arg4[%c0_6, %c0_7] : memref<128x384xbf16, #tpu.memory_space<vmem>>, vector<128x384xbf16>
    %cst = arith.constant dense<0.000000e+00> : vector<32x384xf32>
    %14 = tpu.matmul %11, %13, %cst {dimension_numbers = #tpu.dot_dimension_numbers<[1], [0], [0], [1], [0, 0, 1, 1], [], []>} : vector<32x128xbf16>, vector<128x384xbf16>, vector<32x384xf32> -> vector<32x384xf32>
    %15 = arith.addf %12, %14 : vector<32x384xf32>
    %c0_8 = arith.constant 0 : index
    %c0_9 = arith.constant 0 : index
    %16 = vector.load %arg9[%c0_8, %c0_9] : memref<32x384xf32, #tpu.memory_space<vmem>>, vector<32x384xf32>
    tpu.vector_store %arg9[%c0_8, %c0_9], %15 {strides = array<i32>} : memref<32x384xf32, #tpu.memory_space<vmem>>, vector<32x384xf32>,
    %c0_i32_10 = arith.constant 0 : i32
    %17 = arith.cmpi eq, %arg2, %c0_i32_10 : i32
    %18 = arith.extui %17 : i1 to i32
    %c0_i32_11 = arith.constant 0 : i32
    %19 = arith.cmpi ne, %18, %c0_i32_11 : i32
    scf.if %19 {
      %c0_12 = arith.constant 0 : index
      %c0_13 = arith.constant 0 : index
      %20 = vector.load %arg9[%c0_12, %c0_13] : memref<32x384xf32, #tpu.memory_space<vmem>>, vector<32x384xf32>
      %c0_14 = arith.constant 0 : index
      %c0_15 = arith.constant 0 : index
      %21 = vector.load %arg5[%c0_14, %c0_15] : memref<1x384xf32, #tpu.memory_space<vmem>>, vector<1x384xf32>
      %22 = vector.broadcast %21 : vector<1x384xf32> to vector<32x384xf32>
      %23 = arith.addf %20, %22 : vector<32x384xf32>
      %24 = arith.truncf %23 : vector<32x384xf32> to vector<32x384xbf16>
      %c0_16 = arith.constant 0 : index
      %c0_17 = arith.constant 0 : index
      %25 = vector.load %arg8[%c0_16, %c0_17] : memref<32x384xbf16, #tpu.memory_space<vmem>>, vector<32x384xbf16>
      tpu.vector_store %arg8[%c0_16, %c0_17], %24 {strides = array<i32>} : memref<32x384xbf16, #tpu.memory_space<vmem>>, vector<32x384xbf16>,
    } else {
    }
    return
  }
  func.func @transform_0(%arg0: i32, %arg1: i32, %arg2: i32) -> (i32, i32) {
    %c0_i32 = arith.constant 0 : i32
    %c0_i32_0 = arith.constant 0 : i32
    return %arg0, %c0_i32 : i32, i32
  }
  func.func @transform_1(%arg0: i32, %arg1: i32, %arg2: i32) -> (i32, i32) {
    %c0_i32 = arith.constant 0 : i32
    return %arg2, %arg1 : i32, i32
  }
  func.func @transform_2(%arg0: i32, %arg1: i32, %arg2: i32) -> (i32, i32) {
    %c0_i32 = arith.constant 0 : i32
    %c0_i32_0 = arith.constant 0 : i32
    return %c0_i32, %arg1 : i32, i32
  }
  func.func @transform_3(%arg0: i32, %arg1: i32, %arg2: i32) -> (i32, i32) {
    %c0_i32 = arith.constant 0 : i32
    %c0_i32_0 = arith.constant 0 : i32
    %c0_i32_1 = arith.constant 0 : i32
    return %c0_i32, %c0_i32_0 : i32, i32
  }
  func.func @transform_4(%arg0: i32, %arg1: i32, %arg2: i32) -> (i32, i32) {
    %c0_i32 = arith.constant 0 : i32
    %c0_i32_0 = arith.constant 0 : i32
    %c0_i32_1 = arith.constant 0 : i32
    return %c0_i32, %c0_i32_0 : i32, i32
  }
  func.func @transform_5(%arg0: i32, %arg1: i32, %arg2: i32) -> (i32, i32) {
    %c0_i32 = arith.constant 0 : i32
    return %arg0, %arg1 : i32, i32
  }
}

module attributes {stable_mosaic.version = 11 : i64} {
  func.func @_mha_kernel(%arg0: i32, %arg1: i32, %arg2: i32, %arg3: memref<1x16x128xbf16, #tpu.memory_space<vmem>>, %arg4: memref<1x16x128xbf16, #tpu.memory_space<vmem>>, %arg5: memref<1x16x128xbf16, #tpu.memory_space<vmem>>, %arg6: memref<1x16x128xbf16, #tpu.memory_space<vmem>>, %arg7: memref<4x16x1xf32, #tpu.memory_space<vmem>>, %arg8: memref<4x16x1xf32, #tpu.memory_space<vmem>>, %arg9: memref<4x16x32xf32, #tpu.memory_space<vmem>>) attributes {dimension_semantics = [#tpu.dimension_semantics<parallel>, #tpu.dimension_semantics<parallel>, #tpu.dimension_semantics<arbitrary>], iteration_bounds = array<i64: 4, 1, 1>, scalar_prefetch = 0 : i64, scratch_operands = 3 : i64, tpu.core_type = #tpu.core_type<tc>, window_params = [{transform_indices = @transform_0, window_bounds = array<i64: 1, 16, 128>}, {transform_indices = @transform_1, window_bounds = array<i64: 1, 16, 128>}, {transform_indices = @transform_2, window_bounds = array<i64: 1, 16, 128>}, {transform_indices = @transform_3, window_bounds = array<i64: 1, 16, 128>}]} {
    %c0_i32 = arith.constant 0 : i32
    %0 = arith.cmpi eq, %arg2, %c0_i32 : i32
    %1 = arith.extui %0 : i1 to i32
    %c0_i32_0 = arith.constant 0 : i32
    %2 = arith.cmpi ne, %1, %c0_i32_0 : i32
    scf.if %2 {
      %cst_95 = arith.constant 0xFF800000 : f32
      %156 = vector.broadcast %cst_95 : f32 to vector<4x16x1xf32>
      %c0_96 = arith.constant 0 : index
      %c0_97 = arith.constant 0 : index
      %c0_98 = arith.constant 0 : index
      %157 = vector.load %arg7[%c0_96, %c0_97, %c0_98] : memref<4x16x1xf32, #tpu.memory_space<vmem>>, vector<4x16x1xf32>
      tpu.vector_store %arg7[%c0_96, %c0_97, %c0_98], %156 {strides = array<i32>} : memref<4x16x1xf32, #tpu.memory_space<vmem>>, vector<4x16x1xf32>,
      %cst_99 = arith.constant 0.000000e+00 : f32
      %158 = vector.broadcast %cst_99 : f32 to vector<4x16x1xf32>
      %c0_100 = arith.constant 0 : index
      %c0_101 = arith.constant 0 : index
      %c0_102 = arith.constant 0 : index
      %159 = vector.load %arg8[%c0_100, %c0_101, %c0_102] : memref<4x16x1xf32, #tpu.memory_space<vmem>>, vector<4x16x1xf32>
      tpu.vector_store %arg8[%c0_100, %c0_101, %c0_102], %158 {strides = array<i32>} : memref<4x16x1xf32, #tpu.memory_space<vmem>>, vector<4x16x1xf32>,
      %cst_103 = arith.constant 0.000000e+00 : f32
      %160 = vector.broadcast %cst_103 : f32 to vector<4x16x32xf32>
      %c0_104 = arith.constant 0 : index
      %c0_105 = arith.constant 0 : index
      %c0_106 = arith.constant 0 : index
      %161 = vector.load %arg9[%c0_104, %c0_105, %c0_106] : memref<4x16x32xf32, #tpu.memory_space<vmem>>, vector<4x16x32xf32>
      tpu.vector_store %arg9[%c0_104, %c0_105, %c0_106], %160 {strides = array<i32>} : memref<4x16x32xf32, #tpu.memory_space<vmem>>, vector<4x16x32xf32>,
    } else {
    }
    %c0 = arith.constant 0 : index
    %c0_1 = arith.constant 0 : index
    %c0_2 = arith.constant 0 : index
    %3 = vector.load %arg3[%c0, %c0_1, %c0_2] : memref<1x16x128xbf16, #tpu.memory_space<vmem>>, vector<1x16x128xbf16>
    %4 = vector.shape_cast %3 : vector<1x16x128xbf16> to vector<16x128xbf16>
    %c0_3 = arith.constant 0 : index
    %c0_4 = arith.constant 0 : index
    %c0_5 = arith.constant 0 : index
    %5 = vector.load %arg4[%c0_3, %c0_4, %c0_5] : memref<1x16x128xbf16, #tpu.memory_space<vmem>>, vector<1x16x128xbf16>
    %6 = vector.shape_cast %5 : vector<1x16x128xbf16> to vector<16x128xbf16>
    %c0_6 = arith.constant 0 : index
    %c0_7 = arith.constant 0 : index
    %c0_8 = arith.constant 0 : index
    %7 = vector.load %arg5[%c0_6, %c0_7, %c0_8] : memref<1x16x128xbf16, #tpu.memory_space<vmem>>, vector<1x16x128xbf16>
    %8 = vector.shape_cast %7 : vector<1x16x128xbf16> to vector<16x128xbf16>
    %9 = vector.extract_strided_slice %4 {offsets = [0, 0], sizes = [16, 32], strides = [1, 1]} : vector<16x128xbf16> to vector<16x32xbf16>
    %10 = vector.extract_strided_slice %6 {offsets = [0, 0], sizes = [16, 32], strides = [1, 1]} : vector<16x128xbf16> to vector<16x32xbf16>
    %cst = arith.constant dense<0.000000e+00> : vector<16x16xf32>
    %11 = tpu.matmul %9, %10, %cst {dimension_numbers = #tpu.dot_dimension_numbers<[1], [1], [0], [0], [0, 0, 1, 0], [], []>} : vector<16x32xbf16>, vector<16x32xbf16>, vector<16x16xf32> -> vector<16x16xf32>
    %c0_9 = arith.constant 0 : index
    %c0_10 = arith.constant 0 : index
    %c0_11 = arith.constant 0 : index
    %12 = vector.load %arg7[%c0_9, %c0_10, %c0_11] : memref<4x16x1xf32, #tpu.memory_space<vmem>>, vector<1x16x1xf32>
    %13 = vector.shape_cast %12 : vector<1x16x1xf32> to vector<16x1xf32>
    %cst_12 = arith.constant dense<0xFF800000> : vector<16xf32>
    %14 = vector.multi_reduction <maximumf>, %11, %cst_12 [1] : vector<16x16xf32> to vector<16xf32>
    %15 = vector.shape_cast %14 : vector<16xf32> to vector<16x1xf32>
    %16 = arith.maximumf %13, %15 : vector<16x1xf32>
    %17 = arith.subf %13, %16 : vector<16x1xf32>
    %18 = math.exp %17 : vector<16x1xf32>
    %19 = vector.broadcast %16 : vector<16x1xf32> to vector<16x16xf32>
    %20 = arith.subf %11, %19 : vector<16x16xf32>
    %21 = math.exp %20 : vector<16x16xf32>
    %c0_13 = arith.constant 0 : index
    %c0_14 = arith.constant 0 : index
    %c0_15 = arith.constant 0 : index
    %22 = vector.load %arg8[%c0_13, %c0_14, %c0_15] : memref<4x16x1xf32, #tpu.memory_space<vmem>>, vector<1x16x1xf32>
    %23 = vector.shape_cast %22 : vector<1x16x1xf32> to vector<16x1xf32>
    %24 = arith.mulf %18, %23 : vector<16x1xf32>
    %cst_16 = arith.constant dense<0.000000e+00> : vector<16xf32>
    %25 = vector.multi_reduction <add>, %21, %cst_16 [1] : vector<16x16xf32> to vector<16xf32>
    %26 = vector.shape_cast %25 : vector<16xf32> to vector<16x1xf32>
    %27 = arith.addf %24, %26 : vector<16x1xf32>
    %c0_17 = arith.constant 0 : index
    %c0_18 = arith.constant 0 : index
    %c0_19 = arith.constant 0 : index
    %28 = vector.load %arg8[%c0_17, %c0_18, %c0_19] : memref<4x16x1xf32, #tpu.memory_space<vmem>>, vector<1x16x1xf32>
    %29 = vector.shape_cast %28 : vector<1x16x1xf32> to vector<16x1xf32>
    %30 = vector.shape_cast %27 : vector<16x1xf32> to vector<1x16x1xf32>
    tpu.vector_store %arg8[%c0_17, %c0_18, %c0_19], %30 {strides = array<i32>} : memref<4x16x1xf32, #tpu.memory_space<vmem>>, vector<1x16x1xf32>,
    %c0_20 = arith.constant 0 : index
    %c0_21 = arith.constant 0 : index
    %c0_22 = arith.constant 0 : index
    %31 = vector.load %arg9[%c0_20, %c0_21, %c0_22] : memref<4x16x32xf32, #tpu.memory_space<vmem>>, vector<1x16x32xf32>
    %32 = vector.shape_cast %31 : vector<1x16x32xf32> to vector<16x32xf32>
    %33 = vector.broadcast %18 : vector<16x1xf32> to vector<16x32xf32>
    %34 = arith.mulf %33, %32 : vector<16x32xf32>
    %35 = arith.truncf %21 : vector<16x16xf32> to vector<16x16xbf16>
    %36 = vector.extract_strided_slice %8 {offsets = [0, 0], sizes = [16, 32], strides = [1, 1]} : vector<16x128xbf16> to vector<16x32xbf16>
    %cst_23 = arith.constant dense<0.000000e+00> : vector<16x32xf32>
    %37 = tpu.matmul %35, %36, %cst_23 {dimension_numbers = #tpu.dot_dimension_numbers<[1], [0], [0], [1], [0, 0, 1, 1], [], []>} : vector<16x16xbf16>, vector<16x32xbf16>, vector<16x32xf32> -> vector<16x32xf32>
    %38 = arith.addf %34, %37 : vector<16x32xf32>
    %c0_24 = arith.constant 0 : index
    %c0_25 = arith.constant 0 : index
    %c0_26 = arith.constant 0 : index
    %39 = vector.load %arg9[%c0_24, %c0_25, %c0_26] : memref<4x16x32xf32, #tpu.memory_space<vmem>>, vector<1x16x32xf32>
    %40 = vector.shape_cast %39 : vector<1x16x32xf32> to vector<16x32xf32>
    %41 = vector.shape_cast %38 : vector<16x32xf32> to vector<1x16x32xf32>
    tpu.vector_store %arg9[%c0_24, %c0_25, %c0_26], %41 {strides = array<i32>} : memref<4x16x32xf32, #tpu.memory_space<vmem>>, vector<1x16x32xf32>,
    %c0_27 = arith.constant 0 : index
    %c0_28 = arith.constant 0 : index
    %c0_29 = arith.constant 0 : index
    %42 = vector.load %arg7[%c0_27, %c0_28, %c0_29] : memref<4x16x1xf32, #tpu.memory_space<vmem>>, vector<1x16x1xf32>
    %43 = vector.shape_cast %42 : vector<1x16x1xf32> to vector<16x1xf32>
    %44 = vector.shape_cast %16 : vector<16x1xf32> to vector<1x16x1xf32>
    tpu.vector_store %arg7[%c0_27, %c0_28, %c0_29], %44 {strides = array<i32>} : memref<4x16x1xf32, #tpu.memory_space<vmem>>, vector<1x16x1xf32>,
    %45 = vector.extract_strided_slice %4 {offsets = [0, 32], sizes = [16, 32], strides = [1, 1]} : vector<16x128xbf16> to vector<16x32xbf16>
    %46 = vector.extract_strided_slice %6 {offsets = [0, 32], sizes = [16, 32], strides = [1, 1]} : vector<16x128xbf16> to vector<16x32xbf16>
    %cst_30 = arith.constant dense<0.000000e+00> : vector<16x16xf32>
    %47 = tpu.matmul %45, %46, %cst_30 {dimension_numbers = #tpu.dot_dimension_numbers<[1], [1], [0], [0], [0, 0, 1, 0], [], []>} : vector<16x32xbf16>, vector<16x32xbf16>, vector<16x16xf32> -> vector<16x16xf32>
    %c1 = arith.constant 1 : index
    %c0_31 = arith.constant 0 : index
    %c0_32 = arith.constant 0 : index
    %48 = vector.load %arg7[%c1, %c0_31, %c0_32] : memref<4x16x1xf32, #tpu.memory_space<vmem>>, vector<1x16x1xf32>
    %49 = vector.shape_cast %48 : vector<1x16x1xf32> to vector<16x1xf32>
    %cst_33 = arith.constant dense<0xFF800000> : vector<16xf32>
    %50 = vector.multi_reduction <maximumf>, %47, %cst_33 [1] : vector<16x16xf32> to vector<16xf32>
    %51 = vector.shape_cast %50 : vector<16xf32> to vector<16x1xf32>
    %52 = arith.maximumf %49, %51 : vector<16x1xf32>
    %53 = arith.subf %49, %52 : vector<16x1xf32>
    %54 = math.exp %53 : vector<16x1xf32>
    %55 = vector.broadcast %52 : vector<16x1xf32> to vector<16x16xf32>
    %56 = arith.subf %47, %55 : vector<16x16xf32>
    %57 = math.exp %56 : vector<16x16xf32>
    %c1_34 = arith.constant 1 : index
    %c0_35 = arith.constant 0 : index
    %c0_36 = arith.constant 0 : index
    %58 = vector.load %arg8[%c1_34, %c0_35, %c0_36] : memref<4x16x1xf32, #tpu.memory_space<vmem>>, vector<1x16x1xf32>
    %59 = vector.shape_cast %58 : vector<1x16x1xf32> to vector<16x1xf32>
    %60 = arith.mulf %54, %59 : vector<16x1xf32>
    %cst_37 = arith.constant dense<0.000000e+00> : vector<16xf32>
    %61 = vector.multi_reduction <add>, %57, %cst_37 [1] : vector<16x16xf32> to vector<16xf32>
    %62 = vector.shape_cast %61 : vector<16xf32> to vector<16x1xf32>
    %63 = arith.addf %60, %62 : vector<16x1xf32>
    %c1_38 = arith.constant 1 : index
    %c0_39 = arith.constant 0 : index
    %c0_40 = arith.constant 0 : index
    %64 = vector.load %arg8[%c1_38, %c0_39, %c0_40] : memref<4x16x1xf32, #tpu.memory_space<vmem>>, vector<1x16x1xf32>
    %65 = vector.shape_cast %64 : vector<1x16x1xf32> to vector<16x1xf32>
    %66 = vector.shape_cast %63 : vector<16x1xf32> to vector<1x16x1xf32>
    tpu.vector_store %arg8[%c1_38, %c0_39, %c0_40], %66 {strides = array<i32>} : memref<4x16x1xf32, #tpu.memory_space<vmem>>, vector<1x16x1xf32>,
    %c1_41 = arith.constant 1 : index
    %c0_42 = arith.constant 0 : index
    %c0_43 = arith.constant 0 : index
    %67 = vector.load %arg9[%c1_41, %c0_42, %c0_43] : memref<4x16x32xf32, #tpu.memory_space<vmem>>, vector<1x16x32xf32>
    %68 = vector.shape_cast %67 : vector<1x16x32xf32> to vector<16x32xf32>
    %69 = vector.broadcast %54 : vector<16x1xf32> to vector<16x32xf32>
    %70 = arith.mulf %69, %68 : vector<16x32xf32>
    %71 = arith.truncf %57 : vector<16x16xf32> to vector<16x16xbf16>
    %72 = vector.extract_strided_slice %8 {offsets = [0, 32], sizes = [16, 32], strides = [1, 1]} : vector<16x128xbf16> to vector<16x32xbf16>
    %cst_44 = arith.constant dense<0.000000e+00> : vector<16x32xf32>
    %73 = tpu.matmul %71, %72, %cst_44 {dimension_numbers = #tpu.dot_dimension_numbers<[1], [0], [0], [1], [0, 0, 1, 1], [], []>} : vector<16x16xbf16>, vector<16x32xbf16>, vector<16x32xf32> -> vector<16x32xf32>
    %74 = arith.addf %70, %73 : vector<16x32xf32>
    %c1_45 = arith.constant 1 : index
    %c0_46 = arith.constant 0 : index
    %c0_47 = arith.constant 0 : index
    %75 = vector.load %arg9[%c1_45, %c0_46, %c0_47] : memref<4x16x32xf32, #tpu.memory_space<vmem>>, vector<1x16x32xf32>
    %76 = vector.shape_cast %75 : vector<1x16x32xf32> to vector<16x32xf32>
    %77 = vector.shape_cast %74 : vector<16x32xf32> to vector<1x16x32xf32>
    tpu.vector_store %arg9[%c1_45, %c0_46, %c0_47], %77 {strides = array<i32>} : memref<4x16x32xf32, #tpu.memory_space<vmem>>, vector<1x16x32xf32>,
    %c1_48 = arith.constant 1 : index
    %c0_49 = arith.constant 0 : index
    %c0_50 = arith.constant 0 : index
    %78 = vector.load %arg7[%c1_48, %c0_49, %c0_50] : memref<4x16x1xf32, #tpu.memory_space<vmem>>, vector<1x16x1xf32>
    %79 = vector.shape_cast %78 : vector<1x16x1xf32> to vector<16x1xf32>
    %80 = vector.shape_cast %52 : vector<16x1xf32> to vector<1x16x1xf32>
    tpu.vector_store %arg7[%c1_48, %c0_49, %c0_50], %80 {strides = array<i32>} : memref<4x16x1xf32, #tpu.memory_space<vmem>>, vector<1x16x1xf32>,
    %81 = vector.extract_strided_slice %4 {offsets = [0, 64], sizes = [16, 32], strides = [1, 1]} : vector<16x128xbf16> to vector<16x32xbf16>
    %82 = vector.extract_strided_slice %6 {offsets = [0, 64], sizes = [16, 32], strides = [1, 1]} : vector<16x128xbf16> to vector<16x32xbf16>
    %cst_51 = arith.constant dense<0.000000e+00> : vector<16x16xf32>
    %83 = tpu.matmul %81, %82, %cst_51 {dimension_numbers = #tpu.dot_dimension_numbers<[1], [1], [0], [0], [0, 0, 1, 0], [], []>} : vector<16x32xbf16>, vector<16x32xbf16>, vector<16x16xf32> -> vector<16x16xf32>
    %c2 = arith.constant 2 : index
    %c0_52 = arith.constant 0 : index
    %c0_53 = arith.constant 0 : index
    %84 = vector.load %arg7[%c2, %c0_52, %c0_53] : memref<4x16x1xf32, #tpu.memory_space<vmem>>, vector<1x16x1xf32>
    %85 = vector.shape_cast %84 : vector<1x16x1xf32> to vector<16x1xf32>
    %cst_54 = arith.constant dense<0xFF800000> : vector<16xf32>
    %86 = vector.multi_reduction <maximumf>, %83, %cst_54 [1] : vector<16x16xf32> to vector<16xf32>
    %87 = vector.shape_cast %86 : vector<16xf32> to vector<16x1xf32>
    %88 = arith.maximumf %85, %87 : vector<16x1xf32>
    %89 = arith.subf %85, %88 : vector<16x1xf32>
    %90 = math.exp %89 : vector<16x1xf32>
    %91 = vector.broadcast %88 : vector<16x1xf32> to vector<16x16xf32>
    %92 = arith.subf %83, %91 : vector<16x16xf32>
    %93 = math.exp %92 : vector<16x16xf32>
    %c2_55 = arith.constant 2 : index
    %c0_56 = arith.constant 0 : index
    %c0_57 = arith.constant 0 : index
    %94 = vector.load %arg8[%c2_55, %c0_56, %c0_57] : memref<4x16x1xf32, #tpu.memory_space<vmem>>, vector<1x16x1xf32>
    %95 = vector.shape_cast %94 : vector<1x16x1xf32> to vector<16x1xf32>
    %96 = arith.mulf %90, %95 : vector<16x1xf32>
    %cst_58 = arith.constant dense<0.000000e+00> : vector<16xf32>
    %97 = vector.multi_reduction <add>, %93, %cst_58 [1] : vector<16x16xf32> to vector<16xf32>
    %98 = vector.shape_cast %97 : vector<16xf32> to vector<16x1xf32>
    %99 = arith.addf %96, %98 : vector<16x1xf32>
    %c2_59 = arith.constant 2 : index
    %c0_60 = arith.constant 0 : index
    %c0_61 = arith.constant 0 : index
    %100 = vector.load %arg8[%c2_59, %c0_60, %c0_61] : memref<4x16x1xf32, #tpu.memory_space<vmem>>, vector<1x16x1xf32>
    %101 = vector.shape_cast %100 : vector<1x16x1xf32> to vector<16x1xf32>
    %102 = vector.shape_cast %99 : vector<16x1xf32> to vector<1x16x1xf32>
    tpu.vector_store %arg8[%c2_59, %c0_60, %c0_61], %102 {strides = array<i32>} : memref<4x16x1xf32, #tpu.memory_space<vmem>>, vector<1x16x1xf32>,
    %c2_62 = arith.constant 2 : index
    %c0_63 = arith.constant 0 : index
    %c0_64 = arith.constant 0 : index
    %103 = vector.load %arg9[%c2_62, %c0_63, %c0_64] : memref<4x16x32xf32, #tpu.memory_space<vmem>>, vector<1x16x32xf32>
    %104 = vector.shape_cast %103 : vector<1x16x32xf32> to vector<16x32xf32>
    %105 = vector.broadcast %90 : vector<16x1xf32> to vector<16x32xf32>
    %106 = arith.mulf %105, %104 : vector<16x32xf32>
    %107 = arith.truncf %93 : vector<16x16xf32> to vector<16x16xbf16>
    %108 = vector.extract_strided_slice %8 {offsets = [0, 64], sizes = [16, 32], strides = [1, 1]} : vector<16x128xbf16> to vector<16x32xbf16>
    %cst_65 = arith.constant dense<0.000000e+00> : vector<16x32xf32>
    %109 = tpu.matmul %107, %108, %cst_65 {dimension_numbers = #tpu.dot_dimension_numbers<[1], [0], [0], [1], [0, 0, 1, 1], [], []>} : vector<16x16xbf16>, vector<16x32xbf16>, vector<16x32xf32> -> vector<16x32xf32>
    %110 = arith.addf %106, %109 : vector<16x32xf32>
    %c2_66 = arith.constant 2 : index
    %c0_67 = arith.constant 0 : index
    %c0_68 = arith.constant 0 : index
    %111 = vector.load %arg9[%c2_66, %c0_67, %c0_68] : memref<4x16x32xf32, #tpu.memory_space<vmem>>, vector<1x16x32xf32>
    %112 = vector.shape_cast %111 : vector<1x16x32xf32> to vector<16x32xf32>
    %113 = vector.shape_cast %110 : vector<16x32xf32> to vector<1x16x32xf32>
    tpu.vector_store %arg9[%c2_66, %c0_67, %c0_68], %113 {strides = array<i32>} : memref<4x16x32xf32, #tpu.memory_space<vmem>>, vector<1x16x32xf32>,
    %c2_69 = arith.constant 2 : index
    %c0_70 = arith.constant 0 : index
    %c0_71 = arith.constant 0 : index
    %114 = vector.load %arg7[%c2_69, %c0_70, %c0_71] : memref<4x16x1xf32, #tpu.memory_space<vmem>>, vector<1x16x1xf32>
    %115 = vector.shape_cast %114 : vector<1x16x1xf32> to vector<16x1xf32>
    %116 = vector.shape_cast %88 : vector<16x1xf32> to vector<1x16x1xf32>
    tpu.vector_store %arg7[%c2_69, %c0_70, %c0_71], %116 {strides = array<i32>} : memref<4x16x1xf32, #tpu.memory_space<vmem>>, vector<1x16x1xf32>,
    %117 = vector.extract_strided_slice %4 {offsets = [0, 96], sizes = [16, 32], strides = [1, 1]} : vector<16x128xbf16> to vector<16x32xbf16>
    %118 = vector.extract_strided_slice %6 {offsets = [0, 96], sizes = [16, 32], strides = [1, 1]} : vector<16x128xbf16> to vector<16x32xbf16>
    %cst_72 = arith.constant dense<0.000000e+00> : vector<16x16xf32>
    %119 = tpu.matmul %117, %118, %cst_72 {dimension_numbers = #tpu.dot_dimension_numbers<[1], [1], [0], [0], [0, 0, 1, 0], [], []>} : vector<16x32xbf16>, vector<16x32xbf16>, vector<16x16xf32> -> vector<16x16xf32>
    %c3 = arith.constant 3 : index
    %c0_73 = arith.constant 0 : index
    %c0_74 = arith.constant 0 : index
    %120 = vector.load %arg7[%c3, %c0_73, %c0_74] : memref<4x16x1xf32, #tpu.memory_space<vmem>>, vector<1x16x1xf32>
    %121 = vector.shape_cast %120 : vector<1x16x1xf32> to vector<16x1xf32>
    %cst_75 = arith.constant dense<0xFF800000> : vector<16xf32>
    %122 = vector.multi_reduction <maximumf>, %119, %cst_75 [1] : vector<16x16xf32> to vector<16xf32>
    %123 = vector.shape_cast %122 : vector<16xf32> to vector<16x1xf32>
    %124 = arith.maximumf %121, %123 : vector<16x1xf32>
    %125 = arith.subf %121, %124 : vector<16x1xf32>
    %126 = math.exp %125 : vector<16x1xf32>
    %127 = vector.broadcast %124 : vector<16x1xf32> to vector<16x16xf32>
    %128 = arith.subf %119, %127 : vector<16x16xf32>
    %129 = math.exp %128 : vector<16x16xf32>
    %c3_76 = arith.constant 3 : index
    %c0_77 = arith.constant 0 : index
    %c0_78 = arith.constant 0 : index
    %130 = vector.load %arg8[%c3_76, %c0_77, %c0_78] : memref<4x16x1xf32, #tpu.memory_space<vmem>>, vector<1x16x1xf32>
    %131 = vector.shape_cast %130 : vector<1x16x1xf32> to vector<16x1xf32>
    %132 = arith.mulf %126, %131 : vector<16x1xf32>
    %cst_79 = arith.constant dense<0.000000e+00> : vector<16xf32>
    %133 = vector.multi_reduction <add>, %129, %cst_79 [1] : vector<16x16xf32> to vector<16xf32>
    %134 = vector.shape_cast %133 : vector<16xf32> to vector<16x1xf32>
    %135 = arith.addf %132, %134 : vector<16x1xf32>
    %c3_80 = arith.constant 3 : index
    %c0_81 = arith.constant 0 : index
    %c0_82 = arith.constant 0 : index
    %136 = vector.load %arg8[%c3_80, %c0_81, %c0_82] : memref<4x16x1xf32, #tpu.memory_space<vmem>>, vector<1x16x1xf32>
    %137 = vector.shape_cast %136 : vector<1x16x1xf32> to vector<16x1xf32>
    %138 = vector.shape_cast %135 : vector<16x1xf32> to vector<1x16x1xf32>
    tpu.vector_store %arg8[%c3_80, %c0_81, %c0_82], %138 {strides = array<i32>} : memref<4x16x1xf32, #tpu.memory_space<vmem>>, vector<1x16x1xf32>,
    %c3_83 = arith.constant 3 : index
    %c0_84 = arith.constant 0 : index
    %c0_85 = arith.constant 0 : index
    %139 = vector.load %arg9[%c3_83, %c0_84, %c0_85] : memref<4x16x32xf32, #tpu.memory_space<vmem>>, vector<1x16x32xf32>
    %140 = vector.shape_cast %139 : vector<1x16x32xf32> to vector<16x32xf32>
    %141 = vector.broadcast %126 : vector<16x1xf32> to vector<16x32xf32>
    %142 = arith.mulf %141, %140 : vector<16x32xf32>
    %143 = arith.truncf %129 : vector<16x16xf32> to vector<16x16xbf16>
    %144 = vector.extract_strided_slice %8 {offsets = [0, 96], sizes = [16, 32], strides = [1, 1]} : vector<16x128xbf16> to vector<16x32xbf16>
    %cst_86 = arith.constant dense<0.000000e+00> : vector<16x32xf32>
    %145 = tpu.matmul %143, %144, %cst_86 {dimension_numbers = #tpu.dot_dimension_numbers<[1], [0], [0], [1], [0, 0, 1, 1], [], []>} : vector<16x16xbf16>, vector<16x32xbf16>, vector<16x32xf32> -> vector<16x32xf32>
    %146 = arith.addf %142, %145 : vector<16x32xf32>
    %c3_87 = arith.constant 3 : index
    %c0_88 = arith.constant 0 : index
    %c0_89 = arith.constant 0 : index
    %147 = vector.load %arg9[%c3_87, %c0_88, %c0_89] : memref<4x16x32xf32, #tpu.memory_space<vmem>>, vector<1x16x32xf32>
    %148 = vector.shape_cast %147 : vector<1x16x32xf32> to vector<16x32xf32>
    %149 = vector.shape_cast %146 : vector<16x32xf32> to vector<1x16x32xf32>
    tpu.vector_store %arg9[%c3_87, %c0_88, %c0_89], %149 {strides = array<i32>} : memref<4x16x32xf32, #tpu.memory_space<vmem>>, vector<1x16x32xf32>,
    %c3_90 = arith.constant 3 : index
    %c0_91 = arith.constant 0 : index
    %c0_92 = arith.constant 0 : index
    %150 = vector.load %arg7[%c3_90, %c0_91, %c0_92] : memref<4x16x1xf32, #tpu.memory_space<vmem>>, vector<1x16x1xf32>
    %151 = vector.shape_cast %150 : vector<1x16x1xf32> to vector<16x1xf32>
    %152 = vector.shape_cast %124 : vector<16x1xf32> to vector<1x16x1xf32>
    tpu.vector_store %arg7[%c3_90, %c0_91, %c0_92], %152 {strides = array<i32>} : memref<4x16x1xf32, #tpu.memory_space<vmem>>, vector<1x16x1xf32>,
    %c0_i32_93 = arith.constant 0 : i32
    %153 = arith.cmpi eq, %arg2, %c0_i32_93 : i32
    %154 = arith.extui %153 : i1 to i32
    %c0_i32_94 = arith.constant 0 : i32
    %155 = arith.cmpi ne, %154, %c0_i32_94 : i32
    scf.if %155 {
      %c0_95 = arith.constant 0 : index
      %c0_96 = arith.constant 0 : index
      %c0_97 = arith.constant 0 : index
      %156 = vector.load %arg8[%c0_95, %c0_96, %c0_97] : memref<4x16x1xf32, #tpu.memory_space<vmem>>, vector<1x16x1xf32>
      %157 = vector.shape_cast %156 : vector<1x16x1xf32> to vector<16x1xf32>
      %158 = tpu.reciprocal %157 {approx = true} : vector<16x1xf32> -> vector<16x1xf32>
      %c0_98 = arith.constant 0 : index
      %c0_99 = arith.constant 0 : index
      %c0_100 = arith.constant 0 : index
      %159 = vector.load %arg9[%c0_98, %c0_99, %c0_100] : memref<4x16x32xf32, #tpu.memory_space<vmem>>, vector<1x16x32xf32>
      %160 = vector.shape_cast %159 : vector<1x16x32xf32> to vector<16x32xf32>
      %161 = vector.broadcast %158 : vector<16x1xf32> to vector<16x32xf32>
      %162 = arith.mulf %160, %161 : vector<16x32xf32>
      %c1_101 = arith.constant 1 : index
      %c0_102 = arith.constant 0 : index
      %c0_103 = arith.constant 0 : index
      %163 = vector.load %arg8[%c1_101, %c0_102, %c0_103] : memref<4x16x1xf32, #tpu.memory_space<vmem>>, vector<1x16x1xf32>
      %164 = vector.shape_cast %163 : vector<1x16x1xf32> to vector<16x1xf32>
      %165 = tpu.reciprocal %164 {approx = true} : vector<16x1xf32> -> vector<16x1xf32>
      %c1_104 = arith.constant 1 : index
      %c0_105 = arith.constant 0 : index
      %c0_106 = arith.constant 0 : index
      %166 = vector.load %arg9[%c1_104, %c0_105, %c0_106] : memref<4x16x32xf32, #tpu.memory_space<vmem>>, vector<1x16x32xf32>
      %167 = vector.shape_cast %166 : vector<1x16x32xf32> to vector<16x32xf32>
      %168 = vector.broadcast %165 : vector<16x1xf32> to vector<16x32xf32>
      %169 = arith.mulf %167, %168 : vector<16x32xf32>
      %c2_107 = arith.constant 2 : index
      %c0_108 = arith.constant 0 : index
      %c0_109 = arith.constant 0 : index
      %170 = vector.load %arg8[%c2_107, %c0_108, %c0_109] : memref<4x16x1xf32, #tpu.memory_space<vmem>>, vector<1x16x1xf32>
      %171 = vector.shape_cast %170 : vector<1x16x1xf32> to vector<16x1xf32>
      %172 = tpu.reciprocal %171 {approx = true} : vector<16x1xf32> -> vector<16x1xf32>
      %c2_110 = arith.constant 2 : index
      %c0_111 = arith.constant 0 : index
      %c0_112 = arith.constant 0 : index
      %173 = vector.load %arg9[%c2_110, %c0_111, %c0_112] : memref<4x16x32xf32, #tpu.memory_space<vmem>>, vector<1x16x32xf32>
      %174 = vector.shape_cast %173 : vector<1x16x32xf32> to vector<16x32xf32>
      %175 = vector.broadcast %172 : vector<16x1xf32> to vector<16x32xf32>
      %176 = arith.mulf %174, %175 : vector<16x32xf32>
      %c3_113 = arith.constant 3 : index
      %c0_114 = arith.constant 0 : index
      %c0_115 = arith.constant 0 : index
      %177 = vector.load %arg8[%c3_113, %c0_114, %c0_115] : memref<4x16x1xf32, #tpu.memory_space<vmem>>, vector<1x16x1xf32>
      %178 = vector.shape_cast %177 : vector<1x16x1xf32> to vector<16x1xf32>
      %179 = tpu.reciprocal %178 {approx = true} : vector<16x1xf32> -> vector<16x1xf32>
      %c3_116 = arith.constant 3 : index
      %c0_117 = arith.constant 0 : index
      %c0_118 = arith.constant 0 : index
      %180 = vector.load %arg9[%c3_116, %c0_117, %c0_118] : memref<4x16x32xf32, #tpu.memory_space<vmem>>, vector<1x16x32xf32>
      %181 = vector.shape_cast %180 : vector<1x16x32xf32> to vector<16x32xf32>
      %182 = vector.broadcast %179 : vector<16x1xf32> to vector<16x32xf32>
      %183 = arith.mulf %181, %182 : vector<16x32xf32>
      %184 = tpu.concatenate %162, %169, %176, %183 in 1 : vector<16x32xf32>, vector<16x32xf32>, vector<16x32xf32>, vector<16x32xf32> -> vector<16x128xf32>
      %185 = arith.truncf %184 : vector<16x128xf32> to vector<16x128xbf16>
      %c0_119 = arith.constant 0 : index
      %c0_120 = arith.constant 0 : index
      %c0_121 = arith.constant 0 : index
      %186 = vector.load %arg6[%c0_119, %c0_120, %c0_121] : memref<1x16x128xbf16, #tpu.memory_space<vmem>>, vector<1x16x128xbf16>
      %187 = vector.shape_cast %186 : vector<1x16x128xbf16> to vector<16x128xbf16>
      %188 = vector.shape_cast %185 : vector<16x128xbf16> to vector<1x16x128xbf16>
      tpu.vector_store %arg6[%c0_119, %c0_120, %c0_121], %188 {strides = array<i32>} : memref<1x16x128xbf16, #tpu.memory_space<vmem>>, vector<1x16x128xbf16>,
    } else {
    }
    return
  }
  func.func @transform_0(%arg0: i32, %arg1: i32, %arg2: i32) -> (i32, i32, i32) {
    %c0_i32 = arith.constant 0 : i32
    %c0_i32_0 = arith.constant 0 : i32
    return %arg0, %arg1, %c0_i32 : i32, i32, i32
  }
  func.func @transform_1(%arg0: i32, %arg1: i32, %arg2: i32) -> (i32, i32, i32) {
    %c1_i32 = arith.constant 1 : i32
    %c0_i32 = arith.constant 0 : i32
    return %arg0, %arg2, %c1_i32 : i32, i32, i32
  }
  func.func @transform_2(%arg0: i32, %arg1: i32, %arg2: i32) -> (i32, i32, i32) {
    %c2_i32 = arith.constant 2 : i32
    %c0_i32 = arith.constant 0 : i32
    return %arg0, %arg2, %c2_i32 : i32, i32, i32
  }
  func.func @transform_3(%arg0: i32, %arg1: i32, %arg2: i32) -> (i32, i32, i32) {
    %c0_i32 = arith.constant 0 : i32
    %c0_i32_0 = arith.constant 0 : i32
    return %arg0, %arg1, %c0_i32 : i32, i32, i32
  }
}

module attributes {stable_mosaic.version = 11 : i64} {
  func.func @_proj_kernel(%arg0: i32, %arg1: i32, %arg2: i32, %arg3: memref<32x128xbf16, #tpu.memory_space<vmem>>, %arg4: memref<128x128xbf16, #tpu.memory_space<vmem>>, %arg5: memref<1x128xf32, #tpu.memory_space<vmem>>, %arg6: memref<32x128xf32, #tpu.memory_space<vmem>>, %arg7: memref<32x128xf32, #tpu.memory_space<vmem>>, %arg8: memref<32x128xf32, #tpu.memory_space<vmem>>) attributes {dimension_semantics = [#tpu.dimension_semantics<parallel>, #tpu.dimension_semantics<parallel>, #tpu.dimension_semantics<arbitrary>], iteration_bounds = array<i64: 2, 1, 1>, scalar_prefetch = 0 : i64, scratch_operands = 1 : i64, tpu.core_type = #tpu.core_type<tc>, window_params = [{transform_indices = @transform_0, window_bounds = array<i64: 32, 128>}, {transform_indices = @transform_1, window_bounds = array<i64: 128, 128>}, {transform_indices = @transform_2, window_bounds = array<i64: 1, 128>}, {transform_indices = @transform_3, window_bounds = array<i64: 32, 128>}, {transform_indices = @transform_4, window_bounds = array<i64: 32, 128>}]} {
    %c0_i32 = arith.constant 0 : i32
    %0 = arith.cmpi eq, %arg2, %c0_i32 : i32
    %1 = arith.extui %0 : i1 to i32
    %c0_i32_0 = arith.constant 0 : i32
    %2 = arith.cmpi ne, %1, %c0_i32_0 : i32
    scf.if %2 {
      %cst_10 = arith.constant 0.000000e+00 : f32
      %12 = vector.broadcast %cst_10 : f32 to vector<32x128xf32>
      %c0_11 = arith.constant 0 : index
      %c0_12 = arith.constant 0 : index
      %13 = vector.load %arg8[%c0_11, %c0_12] : memref<32x128xf32, #tpu.memory_space<vmem>>, vector<32x128xf32>
      tpu.vector_store %arg8[%c0_11, %c0_12], %12 {strides = array<i32>} : memref<32x128xf32, #tpu.memory_space<vmem>>, vector<32x128xf32>,
    } else {
    }
    %c0 = arith.constant 0 : index
    %c0_1 = arith.constant 0 : index
    %3 = vector.load %arg3[%c0, %c0_1] : memref<32x128xbf16, #tpu.memory_space<vmem>>, vector<32x128xbf16>
    %c0_2 = arith.constant 0 : index
    %c0_3 = arith.constant 0 : index
    %4 = vector.load %arg8[%c0_2, %c0_3] : memref<32x128xf32, #tpu.memory_space<vmem>>, vector<32x128xf32>
    %c0_4 = arith.constant 0 : index
    %c0_5 = arith.constant 0 : index
    %5 = vector.load %arg4[%c0_4, %c0_5] : memref<128x128xbf16, #tpu.memory_space<vmem>>, vector<128x128xbf16>
    %cst = arith.constant dense<0.000000e+00> : vector<32x128xf32>
    %6 = tpu.matmul %3, %5, %cst {dimension_numbers = #tpu.dot_dimension_numbers<[1], [0], [0], [1], [0, 0, 1, 1], [], []>} : vector<32x128xbf16>, vector<128x128xbf16>, vector<32x128xf32> -> vector<32x128xf32>
    %7 = arith.addf %4, %6 : vector<32x128xf32>
    %c0_6 = arith.constant 0 : index
    %c0_7 = arith.constant 0 : index
    %8 = vector.load %arg8[%c0_6, %c0_7] : memref<32x128xf32, #tpu.memory_space<vmem>>, vector<32x128xf32>
    tpu.vector_store %arg8[%c0_6, %c0_7], %7 {strides = array<i32>} : memref<32x128xf32, #tpu.memory_space<vmem>>, vector<32x128xf32>,
    %c0_i32_8 = arith.constant 0 : i32
    %9 = arith.cmpi eq, %arg2, %c0_i32_8 : i32
    %10 = arith.extui %9 : i1 to i32
    %c0_i32_9 = arith.constant 0 : i32
    %11 = arith.cmpi ne, %10, %c0_i32_9 : i32
    scf.if %11 {
      %c0_10 = arith.constant 0 : index
      %c0_11 = arith.constant 0 : index
      %12 = vector.load %arg8[%c0_10, %c0_11] : memref<32x128xf32, #tpu.memory_space<vmem>>, vector<32x128xf32>
      %c0_12 = arith.constant 0 : index
      %c0_13 = arith.constant 0 : index
      %13 = vector.load %arg5[%c0_12, %c0_13] : memref<1x128xf32, #tpu.memory_space<vmem>>, vector<1x128xf32>
      %14 = vector.broadcast %13 : vector<1x128xf32> to vector<32x128xf32>
      %15 = arith.addf %12, %14 : vector<32x128xf32>
      %c0_14 = arith.constant 0 : index
      %c0_15 = arith.constant 0 : index
      %16 = vector.load %arg6[%c0_14, %c0_15] : memref<32x128xf32, #tpu.memory_space<vmem>>, vector<32x128xf32>
      %17 = arith.addf %15, %16 : vector<32x128xf32>
      %c0_16 = arith.constant 0 : index
      %c0_17 = arith.constant 0 : index
      %18 = vector.load %arg7[%c0_16, %c0_17] : memref<32x128xf32, #tpu.memory_space<vmem>>, vector<32x128xf32>
      tpu.vector_store %arg7[%c0_16, %c0_17], %17 {strides = array<i32>} : memref<32x128xf32, #tpu.memory_space<vmem>>, vector<32x128xf32>,
    } else {
    }
    return
  }
  func.func @transform_0(%arg0: i32, %arg1: i32, %arg2: i32) -> (i32, i32) {
    %c0_i32 = arith.constant 0 : i32
    return %arg0, %arg2 : i32, i32
  }
  func.func @transform_1(%arg0: i32, %arg1: i32, %arg2: i32) -> (i32, i32) {
    %c0_i32 = arith.constant 0 : i32
    return %arg2, %arg1 : i32, i32
  }
  func.func @transform_2(%arg0: i32, %arg1: i32, %arg2: i32) -> (i32, i32) {
    %c0_i32 = arith.constant 0 : i32
    %c0_i32_0 = arith.constant 0 : i32
    return %c0_i32, %arg1 : i32, i32
  }
  func.func @transform_3(%arg0: i32, %arg1: i32, %arg2: i32) -> (i32, i32) {
    %c0_i32 = arith.constant 0 : i32
    return %arg0, %arg1 : i32, i32
  }
  func.func @transform_4(%arg0: i32, %arg1: i32, %arg2: i32) -> (i32, i32) {
    %c0_i32 = arith.constant 0 : i32
    return %arg0, %arg1 : i32, i32
  }
}

module attributes {stable_mosaic.version = 11 : i64} {
  func.func @_proj_kernel(%arg0: i32, %arg1: i32, %arg2: i32, %arg3: memref<32x128xf32, #tpu.memory_space<vmem>>, %arg4: memref<128x128xbf16, #tpu.memory_space<vmem>>, %arg5: memref<1x128xf32, #tpu.memory_space<vmem>>, %arg6: memref<1x128xf32, #tpu.memory_space<vmem>>, %arg7: memref<1x128xf32, #tpu.memory_space<vmem>>, %arg8: memref<32x128xbf16, #tpu.memory_space<vmem>>, %arg9: memref<32x128xf32, #tpu.memory_space<vmem>>, %arg10: memref<32x128xbf16, #tpu.memory_space<vmem>>) attributes {dimension_semantics = [#tpu.dimension_semantics<parallel>, #tpu.dimension_semantics<arbitrary>, #tpu.dimension_semantics<arbitrary>], iteration_bounds = array<i64: 2, 1, 1>, scalar_prefetch = 0 : i64, scratch_operands = 2 : i64, tpu.core_type = #tpu.core_type<tc>, window_params = [{transform_indices = @transform_0, window_bounds = array<i64: 32, 128>}, {transform_indices = @transform_1, window_bounds = array<i64: 128, 128>}, {transform_indices = @transform_2, window_bounds = array<i64: 1, 128>}, {pipeline_mode = #tpu.pipeline_mode<synchronous>, transform_indices = @transform_3, window_bounds = array<i64: 1, 128>}, {pipeline_mode = #tpu.pipeline_mode<synchronous>, transform_indices = @transform_4, window_bounds = array<i64: 1, 128>}, {transform_indices = @transform_5, window_bounds = array<i64: 32, 128>}]} {
    %c0_i32 = arith.constant 0 : i32
    %0 = arith.cmpi eq, %arg1, %c0_i32 : i32
    %c0_i32_0 = arith.constant 0 : i32
    %1 = arith.cmpi eq, %arg2, %c0_i32_0 : i32
    %2 = arith.andi %0, %1 : i1
    %3 = arith.extui %2 : i1 to i32
    %c0_i32_1 = arith.constant 0 : i32
    %4 = arith.cmpi ne, %3, %c0_i32_1 : i32
    scf.if %4 {
      %c0_12 = arith.constant 0 : index
      %c0_13 = arith.constant 0 : index
      %20 = vector.load %arg3[%c0_12, %c0_13] : memref<32x128xf32, #tpu.memory_space<vmem>>, vector<32x128xf32>
      %cst_14 = arith.constant dense<0.000000e+00> : vector<32xf32>
      %21 = vector.multi_reduction <add>, %20, %cst_14 [1] : vector<32x128xf32> to vector<32xf32>
      %22 = vector.shape_cast %21 : vector<32xf32> to vector<32x1xf32>
      %cst_15 = arith.constant 1.280000e+02 : f32
      %23 = vector.broadcast %cst_15 : f32 to vector<32x1xf32>
      %24 = arith.divf %22, %23 : vector<32x1xf32>
      %25 = vector.broadcast %24 : vector<32x1xf32> to vector<32x128xf32>
      %26 = arith.subf %20, %25 : vector<32x128xf32>
      %27 = arith.mulf %26, %26 : vector<32x128xf32>
      %cst_16 = arith.constant dense<0.000000e+00> : vector<32xf32>
      %28 = vector.multi_reduction <add>, %27, %cst_16 [1] : vector<32x128xf32> to vector<32xf32>
      %29 = vector.shape_cast %28 : vector<32xf32> to vector<32x1xf32>
      %cst_17 = arith.constant 1.280000e+02 : f32
      %30 = vector.broadcast %cst_17 : f32 to vector<32x1xf32>
      %31 = arith.divf %29, %30 : vector<32x1xf32>
      %32 = vector.broadcast %24 : vector<32x1xf32> to vector<32x128xf32>
      %33 = arith.subf %20, %32 : vector<32x128xf32>
      %cst_18 = arith.constant 9.99999974E-6 : f32
      %34 = vector.broadcast %cst_18 : f32 to vector<32x1xf32>
      %35 = arith.addf %31, %34 : vector<32x1xf32>
      %36 = math.rsqrt %35 : vector<32x1xf32>
      %37 = vector.broadcast %36 : vector<32x1xf32> to vector<32x128xf32>
      %38 = arith.mulf %33, %37 : vector<32x128xf32>
      %c0_19 = arith.constant 0 : index
      %c0_20 = arith.constant 0 : index
      %39 = vector.load %arg6[%c0_19, %c0_20] : memref<1x128xf32, #tpu.memory_space<vmem>>, vector<1x128xf32>
      %40 = vector.broadcast %39 : vector<1x128xf32> to vector<32x128xf32>
      %41 = arith.mulf %38, %40 : vector<32x128xf32>
      %c0_21 = arith.constant 0 : index
      %c0_22 = arith.constant 0 : index
      %42 = vector.load %arg7[%c0_21, %c0_22] : memref<1x128xf32, #tpu.memory_space<vmem>>, vector<1x128xf32>
      %43 = vector.broadcast %42 : vector<1x128xf32> to vector<32x128xf32>
      %44 = arith.addf %41, %43 : vector<32x128xf32>
      %45 = arith.truncf %44 : vector<32x128xf32> to vector<32x128xbf16>
      %c0_23 = arith.constant 0 : index
      %c0_24 = arith.constant 0 : index
      %46 = vector.load %arg10[%c0_23, %c0_24] : memref<32x128xbf16, #tpu.memory_space<vmem>>, vector<32x128xbf16>
      tpu.vector_store %arg10[%c0_23, %c0_24], %45 {strides = array<i32>} : memref<32x128xbf16, #tpu.memory_space<vmem>>, vector<32x128xbf16>,
    } else {
    }
    %c0_i32_2 = arith.constant 0 : i32
    %5 = arith.cmpi eq, %arg2, %c0_i32_2 : i32
    %6 = arith.extui %5 : i1 to i32
    %c0_i32_3 = arith.constant 0 : i32
    %7 = arith.cmpi ne, %6, %c0_i32_3 : i32
    scf.if %7 {
      %cst_12 = arith.constant 0.000000e+00 : f32
      %20 = vector.broadcast %cst_12 : f32 to vector<32x128xf32>
      %c0_13 = arith.constant 0 : index
      %c0_14 = arith.constant 0 : index
      %21 = vector.load %arg9[%c0_13, %c0_14] : memref<32x128xf32, #tpu.memory_space<vmem>>, vector<32x128xf32>
      tpu.vector_store %arg9[%c0_13, %c0_14], %20 {strides = array<i32>} : memref<32x128xf32, #tpu.memory_space<vmem>>, vector<32x128xf32>,
    } else {
    }
    %c128_i32 = arith.constant 128 : i32
    %8 = arith.muli %arg2, %c128_i32 : i32
    %9 = tpu.assume_multiple %8, 128 : i32
    %c0 = arith.constant 0 : index
    %10 = arith.index_cast %9 : i32 to index
    %11 = vector.load %arg10[%c0, %10] : memref<32x128xbf16, #tpu.memory_space<vmem>>, vector<32x128xbf16>
    %c0_4 = arith.constant 0 : index
    %c0_5 = arith.constant 0 : index
    %12 = vector.load %arg9[%c0_4, %c0_5] : memref<32x128xf32, #tpu.memory_space<vmem>>, vector<32x128xf32>
    %c0_6 = arith.constant 0 : index
    %c0_7 = arith.constant 0 : index
    %13 = vector.load %arg4[%c0_6, %c0_7] : memref<128x128xbf16, #tpu.memory_space<vmem>>, vector<128x128xbf16>
    %cst = arith.constant dense<0.000000e+00> : vector<32x128xf32>
    %14 = tpu.matmul %11, %13, %cst {dimension_numbers = #tpu.dot_dimension_numbers<[1], [0], [0], [1], [0, 0, 1, 1], [], []>} : vector<32x128xbf16>, vector<128x128xbf16>, vector<32x128xf32> -> vector<32x128xf32>
    %15 = arith.addf %12, %14 : vector<32x128xf32>
    %c0_8 = arith.constant 0 : index
    %c0_9 = arith.constant 0 : index
    %16 = vector.load %arg9[%c0_8, %c0_9] : memref<32x128xf32, #tpu.memory_space<vmem>>, vector<32x128xf32>
    tpu.vector_store %arg9[%c0_8, %c0_9], %15 {strides = array<i32>} : memref<32x128xf32, #tpu.memory_space<vmem>>, vector<32x128xf32>,
    %c0_i32_10 = arith.constant 0 : i32
    %17 = arith.cmpi eq, %arg2, %c0_i32_10 : i32
    %18 = arith.extui %17 : i1 to i32
    %c0_i32_11 = arith.constant 0 : i32
    %19 = arith.cmpi ne, %18, %c0_i32_11 : i32
    scf.if %19 {
      %c0_12 = arith.constant 0 : index
      %c0_13 = arith.constant 0 : index
      %20 = vector.load %arg9[%c0_12, %c0_13] : memref<32x128xf32, #tpu.memory_space<vmem>>, vector<32x128xf32>
      %c0_14 = arith.constant 0 : index
      %c0_15 = arith.constant 0 : index
      %21 = vector.load %arg5[%c0_14, %c0_15] : memref<1x128xf32, #tpu.memory_space<vmem>>, vector<1x128xf32>
      %22 = vector.broadcast %21 : vector<1x128xf32> to vector<32x128xf32>
      %23 = arith.addf %20, %22 : vector<32x128xf32>
      %24 = arith.truncf %23 : vector<32x128xf32> to vector<32x128xbf16>
      %c0_16 = arith.constant 0 : index
      %c0_17 = arith.constant 0 : index
      %25 = vector.load %arg8[%c0_16, %c0_17] : memref<32x128xbf16, #tpu.memory_space<vmem>>, vector<32x128xbf16>
      tpu.vector_store %arg8[%c0_16, %c0_17], %24 {strides = array<i32>} : memref<32x128xbf16, #tpu.memory_space<vmem>>, vector<32x128xbf16>,
    } else {
    }
    return
  }
  func.func @transform_0(%arg0: i32, %arg1: i32, %arg2: i32) -> (i32, i32) {
    %c0_i32 = arith.constant 0 : i32
    %c0_i32_0 = arith.constant 0 : i32
    return %arg0, %c0_i32 : i32, i32
  }
  func.func @transform_1(%arg0: i32, %arg1: i32, %arg2: i32) -> (i32, i32) {
    %c0_i32 = arith.constant 0 : i32
    return %arg2, %arg1 : i32, i32
  }
  func.func @transform_2(%arg0: i32, %arg1: i32, %arg2: i32) -> (i32, i32) {
    %c0_i32 = arith.constant 0 : i32
    %c0_i32_0 = arith.constant 0 : i32
    return %c0_i32, %arg1 : i32, i32
  }
  func.func @transform_3(%arg0: i32, %arg1: i32, %arg2: i32) -> (i32, i32) {
    %c0_i32 = arith.constant 0 : i32
    %c0_i32_0 = arith.constant 0 : i32
    %c0_i32_1 = arith.constant 0 : i32
    return %c0_i32, %c0_i32_0 : i32, i32
  }
  func.func @transform_4(%arg0: i32, %arg1: i32, %arg2: i32) -> (i32, i32) {
    %c0_i32 = arith.constant 0 : i32
    %c0_i32_0 = arith.constant 0 : i32
    %c0_i32_1 = arith.constant 0 : i32
    return %c0_i32, %c0_i32_0 : i32, i32
  }
  func.func @transform_5(%arg0: i32, %arg1: i32, %arg2: i32) -> (i32, i32) {
    %c0_i32 = arith.constant 0 : i32
    return %arg0, %arg1 : i32, i32
  }
}

module attributes {stable_mosaic.version = 11 : i64} {
  func.func @_proj_kernel(%arg0: i32, %arg1: i32, %arg2: i32, %arg3: memref<32x128xf32, #tpu.memory_space<vmem>>, %arg4: memref<128x256xbf16, #tpu.memory_space<vmem>>, %arg5: memref<1x256xf32, #tpu.memory_space<vmem>>, %arg6: memref<32x256xbf16, #tpu.memory_space<vmem>>, %arg7: memref<32x256xf32, #tpu.memory_space<vmem>>) attributes {dimension_semantics = [#tpu.dimension_semantics<parallel>, #tpu.dimension_semantics<parallel>, #tpu.dimension_semantics<arbitrary>], iteration_bounds = array<i64: 2, 1, 1>, scalar_prefetch = 0 : i64, scratch_operands = 1 : i64, tpu.core_type = #tpu.core_type<tc>, window_params = [{transform_indices = @transform_0, window_bounds = array<i64: 32, 128>}, {transform_indices = @transform_1, window_bounds = array<i64: 128, 256>}, {transform_indices = @transform_2, window_bounds = array<i64: 1, 256>}, {transform_indices = @transform_3, window_bounds = array<i64: 32, 256>}]} {
    %c0_i32 = arith.constant 0 : i32
    %0 = arith.cmpi eq, %arg2, %c0_i32 : i32
    %1 = arith.extui %0 : i1 to i32
    %c0_i32_0 = arith.constant 0 : i32
    %2 = arith.cmpi ne, %1, %c0_i32_0 : i32
    scf.if %2 {
      %cst_10 = arith.constant 0.000000e+00 : f32
      %13 = vector.broadcast %cst_10 : f32 to vector<32x256xf32>
      %c0_11 = arith.constant 0 : index
      %c0_12 = arith.constant 0 : index
      %14 = vector.load %arg7[%c0_11, %c0_12] : memref<32x256xf32, #tpu.memory_space<vmem>>, vector<32x256xf32>
      tpu.vector_store %arg7[%c0_11, %c0_12], %13 {strides = array<i32>} : memref<32x256xf32, #tpu.memory_space<vmem>>, vector<32x256xf32>,
    } else {
    }
    %c0 = arith.constant 0 : index
    %c0_1 = arith.constant 0 : index
    %3 = vector.load %arg3[%c0, %c0_1] : memref<32x128xf32, #tpu.memory_space<vmem>>, vector<32x128xf32>
    %4 = arith.truncf %3 : vector<32x128xf32> to vector<32x128xbf16>
    %c0_2 = arith.constant 0 : index
    %c0_3 = arith.constant 0 : index
    %5 = vector.load %arg7[%c0_2, %c0_3] : memref<32x256xf32, #tpu.memory_space<vmem>>, vector<32x256xf32>
    %c0_4 = arith.constant 0 : index
    %c0_5 = arith.constant 0 : index
    %6 = vector.load %arg4[%c0_4, %c0_5] : memref<128x256xbf16, #tpu.memory_space<vmem>>, vector<128x256xbf16>
    %cst = arith.constant dense<0.000000e+00> : vector<32x256xf32>
    %7 = tpu.matmul %4, %6, %cst {dimension_numbers = #tpu.dot_dimension_numbers<[1], [0], [0], [1], [0, 0, 1, 1], [], []>} : vector<32x128xbf16>, vector<128x256xbf16>, vector<32x256xf32> -> vector<32x256xf32>
    %8 = arith.addf %5, %7 : vector<32x256xf32>
    %c0_6 = arith.constant 0 : index
    %c0_7 = arith.constant 0 : index
    %9 = vector.load %arg7[%c0_6, %c0_7] : memref<32x256xf32, #tpu.memory_space<vmem>>, vector<32x256xf32>
    tpu.vector_store %arg7[%c0_6, %c0_7], %8 {strides = array<i32>} : memref<32x256xf32, #tpu.memory_space<vmem>>, vector<32x256xf32>,
    %c0_i32_8 = arith.constant 0 : i32
    %10 = arith.cmpi eq, %arg2, %c0_i32_8 : i32
    %11 = arith.extui %10 : i1 to i32
    %c0_i32_9 = arith.constant 0 : i32
    %12 = arith.cmpi ne, %11, %c0_i32_9 : i32
    scf.if %12 {
      %c0_10 = arith.constant 0 : index
      %c0_11 = arith.constant 0 : index
      %13 = vector.load %arg7[%c0_10, %c0_11] : memref<32x256xf32, #tpu.memory_space<vmem>>, vector<32x256xf32>
      %c0_12 = arith.constant 0 : index
      %c0_13 = arith.constant 0 : index
      %14 = vector.load %arg5[%c0_12, %c0_13] : memref<1x256xf32, #tpu.memory_space<vmem>>, vector<1x256xf32>
      %15 = vector.broadcast %14 : vector<1x256xf32> to vector<32x256xf32>
      %16 = arith.addf %13, %15 : vector<32x256xf32>
      %17 = arith.truncf %16 : vector<32x256xf32> to vector<32x256xbf16>
      %c0_14 = arith.constant 0 : index
      %c0_15 = arith.constant 0 : index
      %18 = vector.load %arg6[%c0_14, %c0_15] : memref<32x256xbf16, #tpu.memory_space<vmem>>, vector<32x256xbf16>
      tpu.vector_store %arg6[%c0_14, %c0_15], %17 {strides = array<i32>} : memref<32x256xbf16, #tpu.memory_space<vmem>>, vector<32x256xbf16>,
    } else {
    }
    return
  }
  func.func @transform_0(%arg0: i32, %arg1: i32, %arg2: i32) -> (i32, i32) {
    %c0_i32 = arith.constant 0 : i32
    return %arg0, %arg2 : i32, i32
  }
  func.func @transform_1(%arg0: i32, %arg1: i32, %arg2: i32) -> (i32, i32) {
    %c0_i32 = arith.constant 0 : i32
    return %arg2, %arg1 : i32, i32
  }
  func.func @transform_2(%arg0: i32, %arg1: i32, %arg2: i32) -> (i32, i32) {
    %c0_i32 = arith.constant 0 : i32
    %c0_i32_0 = arith.constant 0 : i32
    return %c0_i32, %arg1 : i32, i32
  }
  func.func @transform_3(%arg0: i32, %arg1: i32, %arg2: i32) -> (i32, i32) {
    %c0_i32 = arith.constant 0 : i32
    return %arg0, %arg1 : i32, i32
  }
}

module attributes {stable_mosaic.version = 11 : i64} {
  func.func @_mha_kernel(%arg0: i32, %arg1: i32, %arg2: i32, %arg3: memref<1x4x128xbf16, #tpu.memory_space<vmem>>, %arg4: memref<1x4x128xbf16, #tpu.memory_space<vmem>>, %arg5: memref<1x4x128xbf16, #tpu.memory_space<vmem>>, %arg6: memref<1x4x128xbf16, #tpu.memory_space<vmem>>, %arg7: memref<4x4x1xf32, #tpu.memory_space<vmem>>, %arg8: memref<4x4x1xf32, #tpu.memory_space<vmem>>, %arg9: memref<4x4x32xf32, #tpu.memory_space<vmem>>) attributes {dimension_semantics = [#tpu.dimension_semantics<parallel>, #tpu.dimension_semantics<parallel>, #tpu.dimension_semantics<arbitrary>], iteration_bounds = array<i64: 16, 1, 1>, scalar_prefetch = 0 : i64, scratch_operands = 3 : i64, tpu.core_type = #tpu.core_type<tc>, window_params = [{transform_indices = @transform_0, window_bounds = array<i64: 1, 4, 128>}, {transform_indices = @transform_1, window_bounds = array<i64: 1, 4, 128>}, {transform_indices = @transform_2, window_bounds = array<i64: 1, 4, 128>}, {transform_indices = @transform_3, window_bounds = array<i64: 1, 4, 128>}]} {
    %c0_i32 = arith.constant 0 : i32
    %0 = arith.cmpi eq, %arg2, %c0_i32 : i32
    %1 = arith.extui %0 : i1 to i32
    %c0_i32_0 = arith.constant 0 : i32
    %2 = arith.cmpi ne, %1, %c0_i32_0 : i32
    scf.if %2 {
      %cst_95 = arith.constant 0xFF800000 : f32
      %156 = vector.broadcast %cst_95 : f32 to vector<4x4x1xf32>
      %c0_96 = arith.constant 0 : index
      %c0_97 = arith.constant 0 : index
      %c0_98 = arith.constant 0 : index
      %157 = vector.load %arg7[%c0_96, %c0_97, %c0_98] : memref<4x4x1xf32, #tpu.memory_space<vmem>>, vector<4x4x1xf32>
      tpu.vector_store %arg7[%c0_96, %c0_97, %c0_98], %156 {strides = array<i32>} : memref<4x4x1xf32, #tpu.memory_space<vmem>>, vector<4x4x1xf32>,
      %cst_99 = arith.constant 0.000000e+00 : f32
      %158 = vector.broadcast %cst_99 : f32 to vector<4x4x1xf32>
      %c0_100 = arith.constant 0 : index
      %c0_101 = arith.constant 0 : index
      %c0_102 = arith.constant 0 : index
      %159 = vector.load %arg8[%c0_100, %c0_101, %c0_102] : memref<4x4x1xf32, #tpu.memory_space<vmem>>, vector<4x4x1xf32>
      tpu.vector_store %arg8[%c0_100, %c0_101, %c0_102], %158 {strides = array<i32>} : memref<4x4x1xf32, #tpu.memory_space<vmem>>, vector<4x4x1xf32>,
      %cst_103 = arith.constant 0.000000e+00 : f32
      %160 = vector.broadcast %cst_103 : f32 to vector<4x4x32xf32>
      %c0_104 = arith.constant 0 : index
      %c0_105 = arith.constant 0 : index
      %c0_106 = arith.constant 0 : index
      %161 = vector.load %arg9[%c0_104, %c0_105, %c0_106] : memref<4x4x32xf32, #tpu.memory_space<vmem>>, vector<4x4x32xf32>
      tpu.vector_store %arg9[%c0_104, %c0_105, %c0_106], %160 {strides = array<i32>} : memref<4x4x32xf32, #tpu.memory_space<vmem>>, vector<4x4x32xf32>,
    } else {
    }
    %c0 = arith.constant 0 : index
    %c0_1 = arith.constant 0 : index
    %c0_2 = arith.constant 0 : index
    %3 = vector.load %arg3[%c0, %c0_1, %c0_2] : memref<1x4x128xbf16, #tpu.memory_space<vmem>>, vector<1x4x128xbf16>
    %4 = vector.shape_cast %3 : vector<1x4x128xbf16> to vector<4x128xbf16>
    %c0_3 = arith.constant 0 : index
    %c0_4 = arith.constant 0 : index
    %c0_5 = arith.constant 0 : index
    %5 = vector.load %arg4[%c0_3, %c0_4, %c0_5] : memref<1x4x128xbf16, #tpu.memory_space<vmem>>, vector<1x4x128xbf16>
    %6 = vector.shape_cast %5 : vector<1x4x128xbf16> to vector<4x128xbf16>
    %c0_6 = arith.constant 0 : index
    %c0_7 = arith.constant 0 : index
    %c0_8 = arith.constant 0 : index
    %7 = vector.load %arg5[%c0_6, %c0_7, %c0_8] : memref<1x4x128xbf16, #tpu.memory_space<vmem>>, vector<1x4x128xbf16>
    %8 = vector.shape_cast %7 : vector<1x4x128xbf16> to vector<4x128xbf16>
    %9 = vector.extract_strided_slice %4 {offsets = [0, 0], sizes = [4, 32], strides = [1, 1]} : vector<4x128xbf16> to vector<4x32xbf16>
    %10 = vector.extract_strided_slice %6 {offsets = [0, 0], sizes = [4, 32], strides = [1, 1]} : vector<4x128xbf16> to vector<4x32xbf16>
    %cst = arith.constant dense<0.000000e+00> : vector<4x4xf32>
    %11 = tpu.matmul %9, %10, %cst {dimension_numbers = #tpu.dot_dimension_numbers<[1], [1], [0], [0], [0, 0, 1, 0], [], []>} : vector<4x32xbf16>, vector<4x32xbf16>, vector<4x4xf32> -> vector<4x4xf32>
    %c0_9 = arith.constant 0 : index
    %c0_10 = arith.constant 0 : index
    %c0_11 = arith.constant 0 : index
    %12 = vector.load %arg7[%c0_9, %c0_10, %c0_11] : memref<4x4x1xf32, #tpu.memory_space<vmem>>, vector<1x4x1xf32>
    %13 = vector.shape_cast %12 : vector<1x4x1xf32> to vector<4x1xf32>
    %cst_12 = arith.constant dense<0xFF800000> : vector<4xf32>
    %14 = vector.multi_reduction <maximumf>, %11, %cst_12 [1] : vector<4x4xf32> to vector<4xf32>
    %15 = vector.shape_cast %14 : vector<4xf32> to vector<4x1xf32>
    %16 = arith.maximumf %13, %15 : vector<4x1xf32>
    %17 = arith.subf %13, %16 : vector<4x1xf32>
    %18 = math.exp %17 : vector<4x1xf32>
    %19 = vector.broadcast %16 : vector<4x1xf32> to vector<4x4xf32>
    %20 = arith.subf %11, %19 : vector<4x4xf32>
    %21 = math.exp %20 : vector<4x4xf32>
    %c0_13 = arith.constant 0 : index
    %c0_14 = arith.constant 0 : index
    %c0_15 = arith.constant 0 : index
    %22 = vector.load %arg8[%c0_13, %c0_14, %c0_15] : memref<4x4x1xf32, #tpu.memory_space<vmem>>, vector<1x4x1xf32>
    %23 = vector.shape_cast %22 : vector<1x4x1xf32> to vector<4x1xf32>
    %24 = arith.mulf %18, %23 : vector<4x1xf32>
    %cst_16 = arith.constant dense<0.000000e+00> : vector<4xf32>
    %25 = vector.multi_reduction <add>, %21, %cst_16 [1] : vector<4x4xf32> to vector<4xf32>
    %26 = vector.shape_cast %25 : vector<4xf32> to vector<4x1xf32>
    %27 = arith.addf %24, %26 : vector<4x1xf32>
    %c0_17 = arith.constant 0 : index
    %c0_18 = arith.constant 0 : index
    %c0_19 = arith.constant 0 : index
    %28 = vector.load %arg8[%c0_17, %c0_18, %c0_19] : memref<4x4x1xf32, #tpu.memory_space<vmem>>, vector<1x4x1xf32>
    %29 = vector.shape_cast %28 : vector<1x4x1xf32> to vector<4x1xf32>
    %30 = vector.shape_cast %27 : vector<4x1xf32> to vector<1x4x1xf32>
    tpu.vector_store %arg8[%c0_17, %c0_18, %c0_19], %30 {strides = array<i32>} : memref<4x4x1xf32, #tpu.memory_space<vmem>>, vector<1x4x1xf32>,
    %c0_20 = arith.constant 0 : index
    %c0_21 = arith.constant 0 : index
    %c0_22 = arith.constant 0 : index
    %31 = vector.load %arg9[%c0_20, %c0_21, %c0_22] : memref<4x4x32xf32, #tpu.memory_space<vmem>>, vector<1x4x32xf32>
    %32 = vector.shape_cast %31 : vector<1x4x32xf32> to vector<4x32xf32>
    %33 = vector.broadcast %18 : vector<4x1xf32> to vector<4x32xf32>
    %34 = arith.mulf %33, %32 : vector<4x32xf32>
    %35 = arith.truncf %21 : vector<4x4xf32> to vector<4x4xbf16>
    %36 = vector.extract_strided_slice %8 {offsets = [0, 0], sizes = [4, 32], strides = [1, 1]} : vector<4x128xbf16> to vector<4x32xbf16>
    %cst_23 = arith.constant dense<0.000000e+00> : vector<4x32xf32>
    %37 = tpu.matmul %35, %36, %cst_23 {dimension_numbers = #tpu.dot_dimension_numbers<[1], [0], [0], [1], [0, 0, 1, 1], [], []>} : vector<4x4xbf16>, vector<4x32xbf16>, vector<4x32xf32> -> vector<4x32xf32>
    %38 = arith.addf %34, %37 : vector<4x32xf32>
    %c0_24 = arith.constant 0 : index
    %c0_25 = arith.constant 0 : index
    %c0_26 = arith.constant 0 : index
    %39 = vector.load %arg9[%c0_24, %c0_25, %c0_26] : memref<4x4x32xf32, #tpu.memory_space<vmem>>, vector<1x4x32xf32>
    %40 = vector.shape_cast %39 : vector<1x4x32xf32> to vector<4x32xf32>
    %41 = vector.shape_cast %38 : vector<4x32xf32> to vector<1x4x32xf32>
    tpu.vector_store %arg9[%c0_24, %c0_25, %c0_26], %41 {strides = array<i32>} : memref<4x4x32xf32, #tpu.memory_space<vmem>>, vector<1x4x32xf32>,
    %c0_27 = arith.constant 0 : index
    %c0_28 = arith.constant 0 : index
    %c0_29 = arith.constant 0 : index
    %42 = vector.load %arg7[%c0_27, %c0_28, %c0_29] : memref<4x4x1xf32, #tpu.memory_space<vmem>>, vector<1x4x1xf32>
    %43 = vector.shape_cast %42 : vector<1x4x1xf32> to vector<4x1xf32>
    %44 = vector.shape_cast %16 : vector<4x1xf32> to vector<1x4x1xf32>
    tpu.vector_store %arg7[%c0_27, %c0_28, %c0_29], %44 {strides = array<i32>} : memref<4x4x1xf32, #tpu.memory_space<vmem>>, vector<1x4x1xf32>,
    %45 = vector.extract_strided_slice %4 {offsets = [0, 32], sizes = [4, 32], strides = [1, 1]} : vector<4x128xbf16> to vector<4x32xbf16>
    %46 = vector.extract_strided_slice %6 {offsets = [0, 32], sizes = [4, 32], strides = [1, 1]} : vector<4x128xbf16> to vector<4x32xbf16>
    %cst_30 = arith.constant dense<0.000000e+00> : vector<4x4xf32>
    %47 = tpu.matmul %45, %46, %cst_30 {dimension_numbers = #tpu.dot_dimension_numbers<[1], [1], [0], [0], [0, 0, 1, 0], [], []>} : vector<4x32xbf16>, vector<4x32xbf16>, vector<4x4xf32> -> vector<4x4xf32>
    %c1 = arith.constant 1 : index
    %c0_31 = arith.constant 0 : index
    %c0_32 = arith.constant 0 : index
    %48 = vector.load %arg7[%c1, %c0_31, %c0_32] : memref<4x4x1xf32, #tpu.memory_space<vmem>>, vector<1x4x1xf32>
    %49 = vector.shape_cast %48 : vector<1x4x1xf32> to vector<4x1xf32>
    %cst_33 = arith.constant dense<0xFF800000> : vector<4xf32>
    %50 = vector.multi_reduction <maximumf>, %47, %cst_33 [1] : vector<4x4xf32> to vector<4xf32>
    %51 = vector.shape_cast %50 : vector<4xf32> to vector<4x1xf32>
    %52 = arith.maximumf %49, %51 : vector<4x1xf32>
    %53 = arith.subf %49, %52 : vector<4x1xf32>
    %54 = math.exp %53 : vector<4x1xf32>
    %55 = vector.broadcast %52 : vector<4x1xf32> to vector<4x4xf32>
    %56 = arith.subf %47, %55 : vector<4x4xf32>
    %57 = math.exp %56 : vector<4x4xf32>
    %c1_34 = arith.constant 1 : index
    %c0_35 = arith.constant 0 : index
    %c0_36 = arith.constant 0 : index
    %58 = vector.load %arg8[%c1_34, %c0_35, %c0_36] : memref<4x4x1xf32, #tpu.memory_space<vmem>>, vector<1x4x1xf32>
    %59 = vector.shape_cast %58 : vector<1x4x1xf32> to vector<4x1xf32>
    %60 = arith.mulf %54, %59 : vector<4x1xf32>
    %cst_37 = arith.constant dense<0.000000e+00> : vector<4xf32>
    %61 = vector.multi_reduction <add>, %57, %cst_37 [1] : vector<4x4xf32> to vector<4xf32>
    %62 = vector.shape_cast %61 : vector<4xf32> to vector<4x1xf32>
    %63 = arith.addf %60, %62 : vector<4x1xf32>
    %c1_38 = arith.constant 1 : index
    %c0_39 = arith.constant 0 : index
    %c0_40 = arith.constant 0 : index
    %64 = vector.load %arg8[%c1_38, %c0_39, %c0_40] : memref<4x4x1xf32, #tpu.memory_space<vmem>>, vector<1x4x1xf32>
    %65 = vector.shape_cast %64 : vector<1x4x1xf32> to vector<4x1xf32>
    %66 = vector.shape_cast %63 : vector<4x1xf32> to vector<1x4x1xf32>
    tpu.vector_store %arg8[%c1_38, %c0_39, %c0_40], %66 {strides = array<i32>} : memref<4x4x1xf32, #tpu.memory_space<vmem>>, vector<1x4x1xf32>,
    %c1_41 = arith.constant 1 : index
    %c0_42 = arith.constant 0 : index
    %c0_43 = arith.constant 0 : index
    %67 = vector.load %arg9[%c1_41, %c0_42, %c0_43] : memref<4x4x32xf32, #tpu.memory_space<vmem>>, vector<1x4x32xf32>
    %68 = vector.shape_cast %67 : vector<1x4x32xf32> to vector<4x32xf32>
    %69 = vector.broadcast %54 : vector<4x1xf32> to vector<4x32xf32>
    %70 = arith.mulf %69, %68 : vector<4x32xf32>
    %71 = arith.truncf %57 : vector<4x4xf32> to vector<4x4xbf16>
    %72 = vector.extract_strided_slice %8 {offsets = [0, 32], sizes = [4, 32], strides = [1, 1]} : vector<4x128xbf16> to vector<4x32xbf16>
    %cst_44 = arith.constant dense<0.000000e+00> : vector<4x32xf32>
    %73 = tpu.matmul %71, %72, %cst_44 {dimension_numbers = #tpu.dot_dimension_numbers<[1], [0], [0], [1], [0, 0, 1, 1], [], []>} : vector<4x4xbf16>, vector<4x32xbf16>, vector<4x32xf32> -> vector<4x32xf32>
    %74 = arith.addf %70, %73 : vector<4x32xf32>
    %c1_45 = arith.constant 1 : index
    %c0_46 = arith.constant 0 : index
    %c0_47 = arith.constant 0 : index
    %75 = vector.load %arg9[%c1_45, %c0_46, %c0_47] : memref<4x4x32xf32, #tpu.memory_space<vmem>>, vector<1x4x32xf32>
    %76 = vector.shape_cast %75 : vector<1x4x32xf32> to vector<4x32xf32>
    %77 = vector.shape_cast %74 : vector<4x32xf32> to vector<1x4x32xf32>
    tpu.vector_store %arg9[%c1_45, %c0_46, %c0_47], %77 {strides = array<i32>} : memref<4x4x32xf32, #tpu.memory_space<vmem>>, vector<1x4x32xf32>,
    %c1_48 = arith.constant 1 : index
    %c0_49 = arith.constant 0 : index
    %c0_50 = arith.constant 0 : index
    %78 = vector.load %arg7[%c1_48, %c0_49, %c0_50] : memref<4x4x1xf32, #tpu.memory_space<vmem>>, vector<1x4x1xf32>
    %79 = vector.shape_cast %78 : vector<1x4x1xf32> to vector<4x1xf32>
    %80 = vector.shape_cast %52 : vector<4x1xf32> to vector<1x4x1xf32>
    tpu.vector_store %arg7[%c1_48, %c0_49, %c0_50], %80 {strides = array<i32>} : memref<4x4x1xf32, #tpu.memory_space<vmem>>, vector<1x4x1xf32>,
    %81 = vector.extract_strided_slice %4 {offsets = [0, 64], sizes = [4, 32], strides = [1, 1]} : vector<4x128xbf16> to vector<4x32xbf16>
    %82 = vector.extract_strided_slice %6 {offsets = [0, 64], sizes = [4, 32], strides = [1, 1]} : vector<4x128xbf16> to vector<4x32xbf16>
    %cst_51 = arith.constant dense<0.000000e+00> : vector<4x4xf32>
    %83 = tpu.matmul %81, %82, %cst_51 {dimension_numbers = #tpu.dot_dimension_numbers<[1], [1], [0], [0], [0, 0, 1, 0], [], []>} : vector<4x32xbf16>, vector<4x32xbf16>, vector<4x4xf32> -> vector<4x4xf32>
    %c2 = arith.constant 2 : index
    %c0_52 = arith.constant 0 : index
    %c0_53 = arith.constant 0 : index
    %84 = vector.load %arg7[%c2, %c0_52, %c0_53] : memref<4x4x1xf32, #tpu.memory_space<vmem>>, vector<1x4x1xf32>
    %85 = vector.shape_cast %84 : vector<1x4x1xf32> to vector<4x1xf32>
    %cst_54 = arith.constant dense<0xFF800000> : vector<4xf32>
    %86 = vector.multi_reduction <maximumf>, %83, %cst_54 [1] : vector<4x4xf32> to vector<4xf32>
    %87 = vector.shape_cast %86 : vector<4xf32> to vector<4x1xf32>
    %88 = arith.maximumf %85, %87 : vector<4x1xf32>
    %89 = arith.subf %85, %88 : vector<4x1xf32>
    %90 = math.exp %89 : vector<4x1xf32>
    %91 = vector.broadcast %88 : vector<4x1xf32> to vector<4x4xf32>
    %92 = arith.subf %83, %91 : vector<4x4xf32>
    %93 = math.exp %92 : vector<4x4xf32>
    %c2_55 = arith.constant 2 : index
    %c0_56 = arith.constant 0 : index
    %c0_57 = arith.constant 0 : index
    %94 = vector.load %arg8[%c2_55, %c0_56, %c0_57] : memref<4x4x1xf32, #tpu.memory_space<vmem>>, vector<1x4x1xf32>
    %95 = vector.shape_cast %94 : vector<1x4x1xf32> to vector<4x1xf32>
    %96 = arith.mulf %90, %95 : vector<4x1xf32>
    %cst_58 = arith.constant dense<0.000000e+00> : vector<4xf32>
    %97 = vector.multi_reduction <add>, %93, %cst_58 [1] : vector<4x4xf32> to vector<4xf32>
    %98 = vector.shape_cast %97 : vector<4xf32> to vector<4x1xf32>
    %99 = arith.addf %96, %98 : vector<4x1xf32>
    %c2_59 = arith.constant 2 : index
    %c0_60 = arith.constant 0 : index
    %c0_61 = arith.constant 0 : index
    %100 = vector.load %arg8[%c2_59, %c0_60, %c0_61] : memref<4x4x1xf32, #tpu.memory_space<vmem>>, vector<1x4x1xf32>
    %101 = vector.shape_cast %100 : vector<1x4x1xf32> to vector<4x1xf32>
    %102 = vector.shape_cast %99 : vector<4x1xf32> to vector<1x4x1xf32>
    tpu.vector_store %arg8[%c2_59, %c0_60, %c0_61], %102 {strides = array<i32>} : memref<4x4x1xf32, #tpu.memory_space<vmem>>, vector<1x4x1xf32>,
    %c2_62 = arith.constant 2 : index
    %c0_63 = arith.constant 0 : index
    %c0_64 = arith.constant 0 : index
    %103 = vector.load %arg9[%c2_62, %c0_63, %c0_64] : memref<4x4x32xf32, #tpu.memory_space<vmem>>, vector<1x4x32xf32>
    %104 = vector.shape_cast %103 : vector<1x4x32xf32> to vector<4x32xf32>
    %105 = vector.broadcast %90 : vector<4x1xf32> to vector<4x32xf32>
    %106 = arith.mulf %105, %104 : vector<4x32xf32>
    %107 = arith.truncf %93 : vector<4x4xf32> to vector<4x4xbf16>
    %108 = vector.extract_strided_slice %8 {offsets = [0, 64], sizes = [4, 32], strides = [1, 1]} : vector<4x128xbf16> to vector<4x32xbf16>
    %cst_65 = arith.constant dense<0.000000e+00> : vector<4x32xf32>
    %109 = tpu.matmul %107, %108, %cst_65 {dimension_numbers = #tpu.dot_dimension_numbers<[1], [0], [0], [1], [0, 0, 1, 1], [], []>} : vector<4x4xbf16>, vector<4x32xbf16>, vector<4x32xf32> -> vector<4x32xf32>
    %110 = arith.addf %106, %109 : vector<4x32xf32>
    %c2_66 = arith.constant 2 : index
    %c0_67 = arith.constant 0 : index
    %c0_68 = arith.constant 0 : index
    %111 = vector.load %arg9[%c2_66, %c0_67, %c0_68] : memref<4x4x32xf32, #tpu.memory_space<vmem>>, vector<1x4x32xf32>
    %112 = vector.shape_cast %111 : vector<1x4x32xf32> to vector<4x32xf32>
    %113 = vector.shape_cast %110 : vector<4x32xf32> to vector<1x4x32xf32>
    tpu.vector_store %arg9[%c2_66, %c0_67, %c0_68], %113 {strides = array<i32>} : memref<4x4x32xf32, #tpu.memory_space<vmem>>, vector<1x4x32xf32>,
    %c2_69 = arith.constant 2 : index
    %c0_70 = arith.constant 0 : index
    %c0_71 = arith.constant 0 : index
    %114 = vector.load %arg7[%c2_69, %c0_70, %c0_71] : memref<4x4x1xf32, #tpu.memory_space<vmem>>, vector<1x4x1xf32>
    %115 = vector.shape_cast %114 : vector<1x4x1xf32> to vector<4x1xf32>
    %116 = vector.shape_cast %88 : vector<4x1xf32> to vector<1x4x1xf32>
    tpu.vector_store %arg7[%c2_69, %c0_70, %c0_71], %116 {strides = array<i32>} : memref<4x4x1xf32, #tpu.memory_space<vmem>>, vector<1x4x1xf32>,
    %117 = vector.extract_strided_slice %4 {offsets = [0, 96], sizes = [4, 32], strides = [1, 1]} : vector<4x128xbf16> to vector<4x32xbf16>
    %118 = vector.extract_strided_slice %6 {offsets = [0, 96], sizes = [4, 32], strides = [1, 1]} : vector<4x128xbf16> to vector<4x32xbf16>
    %cst_72 = arith.constant dense<0.000000e+00> : vector<4x4xf32>
    %119 = tpu.matmul %117, %118, %cst_72 {dimension_numbers = #tpu.dot_dimension_numbers<[1], [1], [0], [0], [0, 0, 1, 0], [], []>} : vector<4x32xbf16>, vector<4x32xbf16>, vector<4x4xf32> -> vector<4x4xf32>
    %c3 = arith.constant 3 : index
    %c0_73 = arith.constant 0 : index
    %c0_74 = arith.constant 0 : index
    %120 = vector.load %arg7[%c3, %c0_73, %c0_74] : memref<4x4x1xf32, #tpu.memory_space<vmem>>, vector<1x4x1xf32>
    %121 = vector.shape_cast %120 : vector<1x4x1xf32> to vector<4x1xf32>
    %cst_75 = arith.constant dense<0xFF800000> : vector<4xf32>
    %122 = vector.multi_reduction <maximumf>, %119, %cst_75 [1] : vector<4x4xf32> to vector<4xf32>
    %123 = vector.shape_cast %122 : vector<4xf32> to vector<4x1xf32>
    %124 = arith.maximumf %121, %123 : vector<4x1xf32>
    %125 = arith.subf %121, %124 : vector<4x1xf32>
    %126 = math.exp %125 : vector<4x1xf32>
    %127 = vector.broadcast %124 : vector<4x1xf32> to vector<4x4xf32>
    %128 = arith.subf %119, %127 : vector<4x4xf32>
    %129 = math.exp %128 : vector<4x4xf32>
    %c3_76 = arith.constant 3 : index
    %c0_77 = arith.constant 0 : index
    %c0_78 = arith.constant 0 : index
    %130 = vector.load %arg8[%c3_76, %c0_77, %c0_78] : memref<4x4x1xf32, #tpu.memory_space<vmem>>, vector<1x4x1xf32>
    %131 = vector.shape_cast %130 : vector<1x4x1xf32> to vector<4x1xf32>
    %132 = arith.mulf %126, %131 : vector<4x1xf32>
    %cst_79 = arith.constant dense<0.000000e+00> : vector<4xf32>
    %133 = vector.multi_reduction <add>, %129, %cst_79 [1] : vector<4x4xf32> to vector<4xf32>
    %134 = vector.shape_cast %133 : vector<4xf32> to vector<4x1xf32>
    %135 = arith.addf %132, %134 : vector<4x1xf32>
    %c3_80 = arith.constant 3 : index
    %c0_81 = arith.constant 0 : index
    %c0_82 = arith.constant 0 : index
    %136 = vector.load %arg8[%c3_80, %c0_81, %c0_82] : memref<4x4x1xf32, #tpu.memory_space<vmem>>, vector<1x4x1xf32>
    %137 = vector.shape_cast %136 : vector<1x4x1xf32> to vector<4x1xf32>
    %138 = vector.shape_cast %135 : vector<4x1xf32> to vector<1x4x1xf32>
    tpu.vector_store %arg8[%c3_80, %c0_81, %c0_82], %138 {strides = array<i32>} : memref<4x4x1xf32, #tpu.memory_space<vmem>>, vector<1x4x1xf32>,
    %c3_83 = arith.constant 3 : index
    %c0_84 = arith.constant 0 : index
    %c0_85 = arith.constant 0 : index
    %139 = vector.load %arg9[%c3_83, %c0_84, %c0_85] : memref<4x4x32xf32, #tpu.memory_space<vmem>>, vector<1x4x32xf32>
    %140 = vector.shape_cast %139 : vector<1x4x32xf32> to vector<4x32xf32>
    %141 = vector.broadcast %126 : vector<4x1xf32> to vector<4x32xf32>
    %142 = arith.mulf %141, %140 : vector<4x32xf32>
    %143 = arith.truncf %129 : vector<4x4xf32> to vector<4x4xbf16>
    %144 = vector.extract_strided_slice %8 {offsets = [0, 96], sizes = [4, 32], strides = [1, 1]} : vector<4x128xbf16> to vector<4x32xbf16>
    %cst_86 = arith.constant dense<0.000000e+00> : vector<4x32xf32>
    %145 = tpu.matmul %143, %144, %cst_86 {dimension_numbers = #tpu.dot_dimension_numbers<[1], [0], [0], [1], [0, 0, 1, 1], [], []>} : vector<4x4xbf16>, vector<4x32xbf16>, vector<4x32xf32> -> vector<4x32xf32>
    %146 = arith.addf %142, %145 : vector<4x32xf32>
    %c3_87 = arith.constant 3 : index
    %c0_88 = arith.constant 0 : index
    %c0_89 = arith.constant 0 : index
    %147 = vector.load %arg9[%c3_87, %c0_88, %c0_89] : memref<4x4x32xf32, #tpu.memory_space<vmem>>, vector<1x4x32xf32>
    %148 = vector.shape_cast %147 : vector<1x4x32xf32> to vector<4x32xf32>
    %149 = vector.shape_cast %146 : vector<4x32xf32> to vector<1x4x32xf32>
    tpu.vector_store %arg9[%c3_87, %c0_88, %c0_89], %149 {strides = array<i32>} : memref<4x4x32xf32, #tpu.memory_space<vmem>>, vector<1x4x32xf32>,
    %c3_90 = arith.constant 3 : index
    %c0_91 = arith.constant 0 : index
    %c0_92 = arith.constant 0 : index
    %150 = vector.load %arg7[%c3_90, %c0_91, %c0_92] : memref<4x4x1xf32, #tpu.memory_space<vmem>>, vector<1x4x1xf32>
    %151 = vector.shape_cast %150 : vector<1x4x1xf32> to vector<4x1xf32>
    %152 = vector.shape_cast %124 : vector<4x1xf32> to vector<1x4x1xf32>
    tpu.vector_store %arg7[%c3_90, %c0_91, %c0_92], %152 {strides = array<i32>} : memref<4x4x1xf32, #tpu.memory_space<vmem>>, vector<1x4x1xf32>,
    %c0_i32_93 = arith.constant 0 : i32
    %153 = arith.cmpi eq, %arg2, %c0_i32_93 : i32
    %154 = arith.extui %153 : i1 to i32
    %c0_i32_94 = arith.constant 0 : i32
    %155 = arith.cmpi ne, %154, %c0_i32_94 : i32
    scf.if %155 {
      %c0_95 = arith.constant 0 : index
      %c0_96 = arith.constant 0 : index
      %c0_97 = arith.constant 0 : index
      %156 = vector.load %arg8[%c0_95, %c0_96, %c0_97] : memref<4x4x1xf32, #tpu.memory_space<vmem>>, vector<1x4x1xf32>
      %157 = vector.shape_cast %156 : vector<1x4x1xf32> to vector<4x1xf32>
      %158 = tpu.reciprocal %157 {approx = true} : vector<4x1xf32> -> vector<4x1xf32>
      %c0_98 = arith.constant 0 : index
      %c0_99 = arith.constant 0 : index
      %c0_100 = arith.constant 0 : index
      %159 = vector.load %arg9[%c0_98, %c0_99, %c0_100] : memref<4x4x32xf32, #tpu.memory_space<vmem>>, vector<1x4x32xf32>
      %160 = vector.shape_cast %159 : vector<1x4x32xf32> to vector<4x32xf32>
      %161 = vector.broadcast %158 : vector<4x1xf32> to vector<4x32xf32>
      %162 = arith.mulf %160, %161 : vector<4x32xf32>
      %c1_101 = arith.constant 1 : index
      %c0_102 = arith.constant 0 : index
      %c0_103 = arith.constant 0 : index
      %163 = vector.load %arg8[%c1_101, %c0_102, %c0_103] : memref<4x4x1xf32, #tpu.memory_space<vmem>>, vector<1x4x1xf32>
      %164 = vector.shape_cast %163 : vector<1x4x1xf32> to vector<4x1xf32>
      %165 = tpu.reciprocal %164 {approx = true} : vector<4x1xf32> -> vector<4x1xf32>
      %c1_104 = arith.constant 1 : index
      %c0_105 = arith.constant 0 : index
      %c0_106 = arith.constant 0 : index
      %166 = vector.load %arg9[%c1_104, %c0_105, %c0_106] : memref<4x4x32xf32, #tpu.memory_space<vmem>>, vector<1x4x32xf32>
      %167 = vector.shape_cast %166 : vector<1x4x32xf32> to vector<4x32xf32>
      %168 = vector.broadcast %165 : vector<4x1xf32> to vector<4x32xf32>
      %169 = arith.mulf %167, %168 : vector<4x32xf32>
      %c2_107 = arith.constant 2 : index
      %c0_108 = arith.constant 0 : index
      %c0_109 = arith.constant 0 : index
      %170 = vector.load %arg8[%c2_107, %c0_108, %c0_109] : memref<4x4x1xf32, #tpu.memory_space<vmem>>, vector<1x4x1xf32>
      %171 = vector.shape_cast %170 : vector<1x4x1xf32> to vector<4x1xf32>
      %172 = tpu.reciprocal %171 {approx = true} : vector<4x1xf32> -> vector<4x1xf32>
      %c2_110 = arith.constant 2 : index
      %c0_111 = arith.constant 0 : index
      %c0_112 = arith.constant 0 : index
      %173 = vector.load %arg9[%c2_110, %c0_111, %c0_112] : memref<4x4x32xf32, #tpu.memory_space<vmem>>, vector<1x4x32xf32>
      %174 = vector.shape_cast %173 : vector<1x4x32xf32> to vector<4x32xf32>
      %175 = vector.broadcast %172 : vector<4x1xf32> to vector<4x32xf32>
      %176 = arith.mulf %174, %175 : vector<4x32xf32>
      %c3_113 = arith.constant 3 : index
      %c0_114 = arith.constant 0 : index
      %c0_115 = arith.constant 0 : index
      %177 = vector.load %arg8[%c3_113, %c0_114, %c0_115] : memref<4x4x1xf32, #tpu.memory_space<vmem>>, vector<1x4x1xf32>
      %178 = vector.shape_cast %177 : vector<1x4x1xf32> to vector<4x1xf32>
      %179 = tpu.reciprocal %178 {approx = true} : vector<4x1xf32> -> vector<4x1xf32>
      %c3_116 = arith.constant 3 : index
      %c0_117 = arith.constant 0 : index
      %c0_118 = arith.constant 0 : index
      %180 = vector.load %arg9[%c3_116, %c0_117, %c0_118] : memref<4x4x32xf32, #tpu.memory_space<vmem>>, vector<1x4x32xf32>
      %181 = vector.shape_cast %180 : vector<1x4x32xf32> to vector<4x32xf32>
      %182 = vector.broadcast %179 : vector<4x1xf32> to vector<4x32xf32>
      %183 = arith.mulf %181, %182 : vector<4x32xf32>
      %184 = tpu.concatenate %162, %169, %176, %183 in 1 : vector<4x32xf32>, vector<4x32xf32>, vector<4x32xf32>, vector<4x32xf32> -> vector<4x128xf32>
      %185 = arith.truncf %184 : vector<4x128xf32> to vector<4x128xbf16>
      %c0_119 = arith.constant 0 : index
      %c0_120 = arith.constant 0 : index
      %c0_121 = arith.constant 0 : index
      %186 = vector.load %arg6[%c0_119, %c0_120, %c0_121] : memref<1x4x128xbf16, #tpu.memory_space<vmem>>, vector<1x4x128xbf16>
      %187 = vector.shape_cast %186 : vector<1x4x128xbf16> to vector<4x128xbf16>
      %188 = vector.shape_cast %185 : vector<4x128xbf16> to vector<1x4x128xbf16>
      tpu.vector_store %arg6[%c0_119, %c0_120, %c0_121], %188 {strides = array<i32>} : memref<1x4x128xbf16, #tpu.memory_space<vmem>>, vector<1x4x128xbf16>,
    } else {
    }
    return
  }
  func.func @transform_0(%arg0: i32, %arg1: i32, %arg2: i32) -> (i32, i32, i32) {
    %c0_i32 = arith.constant 0 : i32
    %c0_i32_0 = arith.constant 0 : i32
    return %arg0, %arg1, %c0_i32 : i32, i32, i32
  }
  func.func @transform_1(%arg0: i32, %arg1: i32, %arg2: i32) -> (i32, i32, i32) {
    %c0_i32 = arith.constant 0 : i32
    %c0_i32_0 = arith.constant 0 : i32
    return %arg0, %arg2, %c0_i32 : i32, i32, i32
  }
  func.func @transform_2(%arg0: i32, %arg1: i32, %arg2: i32) -> (i32, i32, i32) {
    %c1_i32 = arith.constant 1 : i32
    %c0_i32 = arith.constant 0 : i32
    return %arg0, %arg2, %c1_i32 : i32, i32, i32
  }
  func.func @transform_3(%arg0: i32, %arg1: i32, %arg2: i32) -> (i32, i32, i32) {
    %c0_i32 = arith.constant 0 : i32
    %c0_i32_0 = arith.constant 0 : i32
    return %arg0, %arg1, %c0_i32 : i32, i32, i32
  }
}

module attributes {stable_mosaic.version = 11 : i64} {
  func.func @_proj_kernel(%arg0: i32, %arg1: i32, %arg2: i32, %arg3: memref<32x128xbf16, #tpu.memory_space<vmem>>, %arg4: memref<128x128xbf16, #tpu.memory_space<vmem>>, %arg5: memref<1x128xf32, #tpu.memory_space<vmem>>, %arg6: memref<32x128xf32, #tpu.memory_space<vmem>>, %arg7: memref<32x128xf32, #tpu.memory_space<vmem>>) attributes {dimension_semantics = [#tpu.dimension_semantics<parallel>, #tpu.dimension_semantics<parallel>, #tpu.dimension_semantics<arbitrary>], iteration_bounds = array<i64: 2, 1, 1>, scalar_prefetch = 0 : i64, scratch_operands = 1 : i64, tpu.core_type = #tpu.core_type<tc>, window_params = [{transform_indices = @transform_0, window_bounds = array<i64: 32, 128>}, {transform_indices = @transform_1, window_bounds = array<i64: 128, 128>}, {transform_indices = @transform_2, window_bounds = array<i64: 1, 128>}, {transform_indices = @transform_3, window_bounds = array<i64: 32, 128>}]} {
    %c0_i32 = arith.constant 0 : i32
    %0 = arith.cmpi eq, %arg2, %c0_i32 : i32
    %1 = arith.extui %0 : i1 to i32
    %c0_i32_0 = arith.constant 0 : i32
    %2 = arith.cmpi ne, %1, %c0_i32_0 : i32
    scf.if %2 {
      %cst_10 = arith.constant 0.000000e+00 : f32
      %12 = vector.broadcast %cst_10 : f32 to vector<32x128xf32>
      %c0_11 = arith.constant 0 : index
      %c0_12 = arith.constant 0 : index
      %13 = vector.load %arg7[%c0_11, %c0_12] : memref<32x128xf32, #tpu.memory_space<vmem>>, vector<32x128xf32>
      tpu.vector_store %arg7[%c0_11, %c0_12], %12 {strides = array<i32>} : memref<32x128xf32, #tpu.memory_space<vmem>>, vector<32x128xf32>,
    } else {
    }
    %c0 = arith.constant 0 : index
    %c0_1 = arith.constant 0 : index
    %3 = vector.load %arg3[%c0, %c0_1] : memref<32x128xbf16, #tpu.memory_space<vmem>>, vector<32x128xbf16>
    %c0_2 = arith.constant 0 : index
    %c0_3 = arith.constant 0 : index
    %4 = vector.load %arg7[%c0_2, %c0_3] : memref<32x128xf32, #tpu.memory_space<vmem>>, vector<32x128xf32>
    %c0_4 = arith.constant 0 : index
    %c0_5 = arith.constant 0 : index
    %5 = vector.load %arg4[%c0_4, %c0_5] : memref<128x128xbf16, #tpu.memory_space<vmem>>, vector<128x128xbf16>
    %cst = arith.constant dense<0.000000e+00> : vector<32x128xf32>
    %6 = tpu.matmul %3, %5, %cst {dimension_numbers = #tpu.dot_dimension_numbers<[1], [0], [0], [1], [0, 0, 1, 1], [], []>} : vector<32x128xbf16>, vector<128x128xbf16>, vector<32x128xf32> -> vector<32x128xf32>
    %7 = arith.addf %4, %6 : vector<32x128xf32>
    %c0_6 = arith.constant 0 : index
    %c0_7 = arith.constant 0 : index
    %8 = vector.load %arg7[%c0_6, %c0_7] : memref<32x128xf32, #tpu.memory_space<vmem>>, vector<32x128xf32>
    tpu.vector_store %arg7[%c0_6, %c0_7], %7 {strides = array<i32>} : memref<32x128xf32, #tpu.memory_space<vmem>>, vector<32x128xf32>,
    %c0_i32_8 = arith.constant 0 : i32
    %9 = arith.cmpi eq, %arg2, %c0_i32_8 : i32
    %10 = arith.extui %9 : i1 to i32
    %c0_i32_9 = arith.constant 0 : i32
    %11 = arith.cmpi ne, %10, %c0_i32_9 : i32
    scf.if %11 {
      %c0_10 = arith.constant 0 : index
      %c0_11 = arith.constant 0 : index
      %12 = vector.load %arg7[%c0_10, %c0_11] : memref<32x128xf32, #tpu.memory_space<vmem>>, vector<32x128xf32>
      %c0_12 = arith.constant 0 : index
      %c0_13 = arith.constant 0 : index
      %13 = vector.load %arg5[%c0_12, %c0_13] : memref<1x128xf32, #tpu.memory_space<vmem>>, vector<1x128xf32>
      %14 = vector.broadcast %13 : vector<1x128xf32> to vector<32x128xf32>
      %15 = arith.addf %12, %14 : vector<32x128xf32>
      %cst_14 = arith.constant 2.000000e+00 : f32
      %16 = vector.broadcast %cst_14 : f32 to vector<32x128xf32>
      %17 = arith.mulf %15, %16 : vector<32x128xf32>
      %c0_15 = arith.constant 0 : index
      %c0_16 = arith.constant 0 : index
      %18 = vector.load %arg6[%c0_15, %c0_16] : memref<32x128xf32, #tpu.memory_space<vmem>>, vector<32x128xf32>
      tpu.vector_store %arg6[%c0_15, %c0_16], %17 {strides = array<i32>} : memref<32x128xf32, #tpu.memory_space<vmem>>, vector<32x128xf32>,
    } else {
    }
    return
  }
  func.func @transform_0(%arg0: i32, %arg1: i32, %arg2: i32) -> (i32, i32) {
    %c0_i32 = arith.constant 0 : i32
    return %arg0, %arg2 : i32, i32
  }
  func.func @transform_1(%arg0: i32, %arg1: i32, %arg2: i32) -> (i32, i32) {
    %c0_i32 = arith.constant 0 : i32
    return %arg2, %arg1 : i32, i32
  }
  func.func @transform_2(%arg0: i32, %arg1: i32, %arg2: i32) -> (i32, i32) {
    %c0_i32 = arith.constant 0 : i32
    %c0_i32_0 = arith.constant 0 : i32
    return %c0_i32, %arg1 : i32, i32
  }
  func.func @transform_3(%arg0: i32, %arg1: i32, %arg2: i32) -> (i32, i32) {
    %c0_i32 = arith.constant 0 : i32
    return %arg0, %arg1 : i32, i32
  }
}

module attributes {stable_mosaic.version = 11 : i64} {
  func.func @_ffn_kernel(%arg0: i32, %arg1: i32, %arg2: memref<32x128xf32, #tpu.memory_space<vmem>>, %arg3: memref<128x256xbf16, #tpu.memory_space<vmem>>, %arg4: memref<1x256xf32, #tpu.memory_space<vmem>>, %arg5: memref<256x128xbf16, #tpu.memory_space<vmem>>, %arg6: memref<1x128xf32, #tpu.memory_space<vmem>>, %arg7: memref<1x128xf32, #tpu.memory_space<vmem>>, %arg8: memref<1x128xf32, #tpu.memory_space<vmem>>, %arg9: memref<32x128xf32, #tpu.memory_space<vmem>>, %arg10: memref<32x128xbf16, #tpu.memory_space<vmem>>, %arg11: memref<32x128xf32, #tpu.memory_space<vmem>>) attributes {dimension_semantics = [#tpu.dimension_semantics<parallel>, #tpu.dimension_semantics<arbitrary>], iteration_bounds = array<i64: 2, 1>, scalar_prefetch = 0 : i64, scratch_operands = 2 : i64, tpu.core_type = #tpu.core_type<tc>, window_params = [{transform_indices = @transform_0, window_bounds = array<i64: 32, 128>}, {transform_indices = @transform_1, window_bounds = array<i64: 128, 256>}, {transform_indices = @transform_2, window_bounds = array<i64: 1, 256>}, {transform_indices = @transform_3, window_bounds = array<i64: 256, 128>}, {pipeline_mode = #tpu.pipeline_mode<synchronous>, transform_indices = @transform_4, window_bounds = array<i64: 1, 128>}, {pipeline_mode = #tpu.pipeline_mode<synchronous>, transform_indices = @transform_5, window_bounds = array<i64: 1, 128>}, {pipeline_mode = #tpu.pipeline_mode<synchronous>, transform_indices = @transform_6, window_bounds = array<i64: 1, 128>}, {transform_indices = @transform_7, window_bounds = array<i64: 32, 128>}]} {
    %c0_i32 = arith.constant 0 : i32
    %0 = arith.cmpi eq, %arg1, %c0_i32 : i32
    %1 = arith.extui %0 : i1 to i32
    %c0_i32_0 = arith.constant 0 : i32
    %2 = arith.cmpi ne, %1, %c0_i32_0 : i32
    scf.if %2 {
      %c0_16 = arith.constant 0 : index
      %c0_17 = arith.constant 0 : index
      %20 = vector.load %arg2[%c0_16, %c0_17] : memref<32x128xf32, #tpu.memory_space<vmem>>, vector<32x128xf32>
      %cst_18 = arith.constant dense<0.000000e+00> : vector<32xf32>
      %21 = vector.multi_reduction <add>, %20, %cst_18 [1] : vector<32x128xf32> to vector<32xf32>
      %22 = vector.shape_cast %21 : vector<32xf32> to vector<32x1xf32>
      %cst_19 = arith.constant 1.280000e+02 : f32
      %23 = vector.broadcast %cst_19 : f32 to vector<32x1xf32>
      %24 = arith.divf %22, %23 : vector<32x1xf32>
      %25 = vector.broadcast %24 : vector<32x1xf32> to vector<32x128xf32>
      %26 = arith.subf %20, %25 : vector<32x128xf32>
      %27 = arith.mulf %26, %26 : vector<32x128xf32>
      %cst_20 = arith.constant dense<0.000000e+00> : vector<32xf32>
      %28 = vector.multi_reduction <add>, %27, %cst_20 [1] : vector<32x128xf32> to vector<32xf32>
      %29 = vector.shape_cast %28 : vector<32xf32> to vector<32x1xf32>
      %cst_21 = arith.constant 1.280000e+02 : f32
      %30 = vector.broadcast %cst_21 : f32 to vector<32x1xf32>
      %31 = arith.divf %29, %30 : vector<32x1xf32>
      %32 = vector.broadcast %24 : vector<32x1xf32> to vector<32x128xf32>
      %33 = arith.subf %20, %32 : vector<32x128xf32>
      %cst_22 = arith.constant 9.99999974E-6 : f32
      %34 = vector.broadcast %cst_22 : f32 to vector<32x1xf32>
      %35 = arith.addf %31, %34 : vector<32x1xf32>
      %36 = math.rsqrt %35 : vector<32x1xf32>
      %37 = vector.broadcast %36 : vector<32x1xf32> to vector<32x128xf32>
      %38 = arith.mulf %33, %37 : vector<32x128xf32>
      %c0_23 = arith.constant 0 : index
      %c0_24 = arith.constant 0 : index
      %39 = vector.load %arg7[%c0_23, %c0_24] : memref<1x128xf32, #tpu.memory_space<vmem>>, vector<1x128xf32>
      %40 = vector.broadcast %39 : vector<1x128xf32> to vector<32x128xf32>
      %41 = arith.mulf %38, %40 : vector<32x128xf32>
      %c0_25 = arith.constant 0 : index
      %c0_26 = arith.constant 0 : index
      %42 = vector.load %arg8[%c0_25, %c0_26] : memref<1x128xf32, #tpu.memory_space<vmem>>, vector<1x128xf32>
      %43 = vector.broadcast %42 : vector<1x128xf32> to vector<32x128xf32>
      %44 = arith.addf %41, %43 : vector<32x128xf32>
      %45 = arith.truncf %44 : vector<32x128xf32> to vector<32x128xbf16>
      %c0_27 = arith.constant 0 : index
      %c0_28 = arith.constant 0 : index
      %46 = vector.load %arg10[%c0_27, %c0_28] : memref<32x128xbf16, #tpu.memory_space<vmem>>, vector<32x128xbf16>
      tpu.vector_store %arg10[%c0_27, %c0_28], %45 {strides = array<i32>} : memref<32x128xbf16, #tpu.memory_space<vmem>>, vector<32x128xbf16>,
      %cst_29 = arith.constant 0.000000e+00 : f32
      %47 = vector.broadcast %cst_29 : f32 to vector<32x128xf32>
      %c0_30 = arith.constant 0 : index
      %c0_31 = arith.constant 0 : index
      %48 = vector.load %arg11[%c0_30, %c0_31] : memref<32x128xf32, #tpu.memory_space<vmem>>, vector<32x128xf32>
      tpu.vector_store %arg11[%c0_30, %c0_31], %47 {strides = array<i32>} : memref<32x128xf32, #tpu.memory_space<vmem>>, vector<32x128xf32>,
    } else {
    }
    %c0 = arith.constant 0 : index
    %c0_1 = arith.constant 0 : index
    %3 = vector.load %arg10[%c0, %c0_1] : memref<32x128xbf16, #tpu.memory_space<vmem>>, vector<32x128xbf16>
    %c0_2 = arith.constant 0 : index
    %c0_3 = arith.constant 0 : index
    %4 = vector.load %arg3[%c0_2, %c0_3] : memref<128x256xbf16, #tpu.memory_space<vmem>>, vector<128x256xbf16>
    %cst = arith.constant dense<0.000000e+00> : vector<32x256xf32>
    %5 = tpu.matmul %3, %4, %cst {dimension_numbers = #tpu.dot_dimension_numbers<[1], [0], [0], [1], [0, 0, 1, 1], [], []>} : vector<32x128xbf16>, vector<128x256xbf16>, vector<32x256xf32> -> vector<32x256xf32>
    %c0_4 = arith.constant 0 : index
    %c0_5 = arith.constant 0 : index
    %6 = vector.load %arg4[%c0_4, %c0_5] : memref<1x256xf32, #tpu.memory_space<vmem>>, vector<1x256xf32>
    %7 = vector.broadcast %6 : vector<1x256xf32> to vector<32x256xf32>
    %8 = arith.addf %5, %7 : vector<32x256xf32>
    %cst_6 = arith.constant 0.000000e+00 : f32
    %9 = vector.broadcast %cst_6 : f32 to vector<32x256xf32>
    %10 = arith.maximumf %8, %9 : vector<32x256xf32>
    %c0_7 = arith.constant 0 : index
    %c0_8 = arith.constant 0 : index
    %11 = vector.load %arg11[%c0_7, %c0_8] : memref<32x128xf32, #tpu.memory_space<vmem>>, vector<32x128xf32>
    %12 = arith.truncf %10 : vector<32x256xf32> to vector<32x256xbf16>
    %c0_9 = arith.constant 0 : index
    %c0_10 = arith.constant 0 : index
    %13 = vector.load %arg5[%c0_9, %c0_10] : memref<256x128xbf16, #tpu.memory_space<vmem>>, vector<256x128xbf16>
    %cst_11 = arith.constant dense<0.000000e+00> : vector<32x128xf32>
    %14 = tpu.matmul %12, %13, %cst_11 {dimension_numbers = #tpu.dot_dimension_numbers<[1], [0], [0], [1], [0, 0, 1, 1], [], []>} : vector<32x256xbf16>, vector<256x128xbf16>, vector<32x128xf32> -> vector<32x128xf32>
    %15 = arith.addf %11, %14 : vector<32x128xf32>
    %c0_12 = arith.constant 0 : index
    %c0_13 = arith.constant 0 : index
    %16 = vector.load %arg11[%c0_12, %c0_13] : memref<32x128xf32, #tpu.memory_space<vmem>>, vector<32x128xf32>
    tpu.vector_store %arg11[%c0_12, %c0_13], %15 {strides = array<i32>} : memref<32x128xf32, #tpu.memory_space<vmem>>, vector<32x128xf32>,
    %c0_i32_14 = arith.constant 0 : i32
    %17 = arith.cmpi eq, %arg1, %c0_i32_14 : i32
    %18 = arith.extui %17 : i1 to i32
    %c0_i32_15 = arith.constant 0 : i32
    %19 = arith.cmpi ne, %18, %c0_i32_15 : i32
    scf.if %19 {
      %c0_16 = arith.constant 0 : index
      %c0_17 = arith.constant 0 : index
      %20 = vector.load %arg11[%c0_16, %c0_17] : memref<32x128xf32, #tpu.memory_space<vmem>>, vector<32x128xf32>
      %c0_18 = arith.constant 0 : index
      %c0_19 = arith.constant 0 : index
      %21 = vector.load %arg6[%c0_18, %c0_19] : memref<1x128xf32, #tpu.memory_space<vmem>>, vector<1x128xf32>
      %22 = vector.broadcast %21 : vector<1x128xf32> to vector<32x128xf32>
      %23 = arith.addf %20, %22 : vector<32x128xf32>
      %c0_20 = arith.constant 0 : index
      %c0_21 = arith.constant 0 : index
      %24 = vector.load %arg2[%c0_20, %c0_21] : memref<32x128xf32, #tpu.memory_space<vmem>>, vector<32x128xf32>
      %25 = arith.addf %23, %24 : vector<32x128xf32>
      %c0_22 = arith.constant 0 : index
      %c0_23 = arith.constant 0 : index
      %26 = vector.load %arg9[%c0_22, %c0_23] : memref<32x128xf32, #tpu.memory_space<vmem>>, vector<32x128xf32>
      tpu.vector_store %arg9[%c0_22, %c0_23], %25 {strides = array<i32>} : memref<32x128xf32, #tpu.memory_space<vmem>>, vector<32x128xf32>,
    } else {
    }
    return
  }
  func.func @transform_0(%arg0: i32, %arg1: i32) -> (i32, i32) {
    %c0_i32 = arith.constant 0 : i32
    %c0_i32_0 = arith.constant 0 : i32
    return %arg0, %c0_i32 : i32, i32
  }
  func.func @transform_1(%arg0: i32, %arg1: i32) -> (i32, i32) {
    %c0_i32 = arith.constant 0 : i32
    %c0_i32_0 = arith.constant 0 : i32
    return %c0_i32, %arg1 : i32, i32
  }
  func.func @transform_2(%arg0: i32, %arg1: i32) -> (i32, i32) {
    %c0_i32 = arith.constant 0 : i32
    %c0_i32_0 = arith.constant 0 : i32
    return %c0_i32, %arg1 : i32, i32
  }
  func.func @transform_3(%arg0: i32, %arg1: i32) -> (i32, i32) {
    %c0_i32 = arith.constant 0 : i32
    %c0_i32_0 = arith.constant 0 : i32
    return %arg1, %c0_i32 : i32, i32
  }
  func.func @transform_4(%arg0: i32, %arg1: i32) -> (i32, i32) {
    %c0_i32 = arith.constant 0 : i32
    %c0_i32_0 = arith.constant 0 : i32
    %c0_i32_1 = arith.constant 0 : i32
    return %c0_i32, %c0_i32_0 : i32, i32
  }
  func.func @transform_5(%arg0: i32, %arg1: i32) -> (i32, i32) {
    %c0_i32 = arith.constant 0 : i32
    %c0_i32_0 = arith.constant 0 : i32
    %c0_i32_1 = arith.constant 0 : i32
    return %c0_i32, %c0_i32_0 : i32, i32
  }
  func.func @transform_6(%arg0: i32, %arg1: i32) -> (i32, i32) {
    %c0_i32 = arith.constant 0 : i32
    %c0_i32_0 = arith.constant 0 : i32
    %c0_i32_1 = arith.constant 0 : i32
    return %c0_i32, %c0_i32_0 : i32, i32
  }
  func.func @transform_7(%arg0: i32, %arg1: i32) -> (i32, i32) {
    %c0_i32 = arith.constant 0 : i32
    %c0_i32_0 = arith.constant 0 : i32
    return %arg0, %c0_i32 : i32, i32
  }
}

</mosaic_0001>

<bundles_post_ra>
// kernel: transformer_decoder_layer.10
= control target key start
LH: loop header
LB: loop body
LE: loop exit
PB: predicated region body
PF: predicated region fallthrough
CT: control target
= control target key end

     0   :  { %s738_s15 = smov 0   ;;  %s740_s16 = smov 0   ;;  %s801_s0 = inlined_call_operand.vmem [shape: bf16[64,128], index: 0, kind: input, shape index: {}]   ;;  %s802_s1 = inlined_call_operand.vmem [shape: bf16[128,128], index: 1, kind: input, shape index: {}]   ;;  %s803_s2 = inlined_call_operand.vmem [shape: f32[1,128], index: 2, kind: input, shape index: {}]   ;;  %s804_s3 = inlined_call_operand.vmem [shape: f32[64,128], index: 3, kind: input, shape index: {}]   ;;  %s805_s4 = inlined_call_operand.vmem [shape: f32[64,128], index: 4, kind: output, shape index: {}]  }
   0x1   :  { %s742_s17 = smov 0  }
   0x2 LB: > { %s33_s18 = sadd.s32 1, %s707_s16  ;;  %p597_p0 = scmp.ge.s32.totalorder %s711_s17, 1  ;;  %s711_s17 = sphi %s742_s17, %s14_s17   ;;  %s707_s16 = sphi %s740_s16, %s807_s16   ;;  %s703_s15 = sphi %s738_s15, %s806_s15  }
   0x3   : > { %p35_p1 = scmp.ge.s32.totalorder %s33_s18, 2  ;;  %p229_p2 = scmp.lt.s32.totalorder %s711_s17, 3 }
   0x5   : > { %s809_s18 = smov (%p35_p1, %s33_s18), 0  ;;  %p230_p3 = pnand %p597_p0, %p229_p2 }
   0x6   : > { %s598_s27 = sshll.u32 (!%p230_p3), %s703_s15, 2 }
   0x7   : > { %233 = sbr.rel (%p230_p3) target bundleno = 184 (0xb8), region = 36  ;;  %p281_p4 = scmp.lt.s32.totalorder (!%p230_p3), %s598_s27, 7 }
   0xc   : > { %v655_v0 = vld [vmem:[%s802_s1 + $0x38] sm:$0xff]  ;;  %v654_v1 = vld [vmem:[%s802_s1 + $0x30] sm:$0xff]  ;;  %v653_v2 = vld [vmem:[%s802_s1 + $0x28] sm:$0xff]  ;;  %s811_s27 = smov (!%p281_p4, %s598_s27), 7 }
   0xd   : > { %411 = vmatpush.bf16.msra.mxu0 %v655_v0  ;;  %656 = vmatpush.bf16.msra.mxu1 %v655_v0  ;;  %v652_v3 = vld [vmem:[%s802_s1 + $0x20] sm:$0xff]  ;;  %v651_v4 = vld [vmem:[%s802_s1 + $0x18] sm:$0xff]  ;;  %v650_v5 = vld [vmem:[%s802_s1 + $0x10] sm:$0xff]  ;;  %s599_s8 = sshll.u32 %s811_s27, 2  ;;  %s601_s14 = sshll.u32 %s811_s27, 3 }
   0xe   : > { %v649_v6 = vld [vmem:[%s802_s1 + $0x8] sm:$0xff]  ;;  %v648_v7 = vld [vmem:[%s802_s1] sm:$0xff]  ;;  %s287_s13 = scalar_lea.vmem %s801_s0, %s599_s8  ;;  %s308_s20 = scalar_lea.vmem %s804_s3, %s601_s14 }
   0xf   : > { %v646_v8 = vld [vmem:[%s287_s13] sm:$0xff]  ;;  %v647_v9 = vld [vmem:[%s287_s13 + $0x8] sm:$0xff]  ;;  %s317_s25 = scalar_lea.vmem %s805_s4, %s601_s14  ;;  %v455_v20 = vld [vmem:[%s308_s20 + $0x10] sm:$0xff] }
  0x10   : > { %v688_v10 = vld [vmem:[%s803_s2] ss:$0 sm:$0xff]  ;;  %v454_v18 = vld [vmem:[%s308_s20 + $0x8] sm:$0xff]  ;;  %v456_v23 = vld [vmem:[%s308_s20 + $0x18] sm:$0xff] }
  0x11   : > { %412 = vmatpush.bf16.msra.mxu0 %v654_v1  ;;  %657 = vmatpush.bf16.msra.mxu1 %v654_v1  ;;  %v453_v12 = vld [vmem:[%s308_s20] sm:$0xff] }
  0x15   : > { %413 = vmatpush.bf16.msra.mxu0 %v653_v2  ;;  %658 = vmatpush.bf16.msra.mxu1 %v653_v2 }
  0x19   : > { %414 = vmatpush.bf16.msra.mxu0 %v652_v3  ;;  %659 = vmatpush.bf16.msra.mxu1 %v652_v3 }
  0x1d   : > { %415 = vmatpush.bf16.msra.mxu0 %v651_v4  ;;  %660 = vmatpush.bf16.msra.mxu1 %v651_v4 }
  0x21   : > { %416 = vmatpush.bf16.msra.mxu0 %v650_v5  ;;  %661 = vmatpush.bf16.msra.mxu1 %v650_v5 }
  0x25   : > { %417 = vmatpush.bf16.msra.mxu0 %v649_v6  ;;  %662 = vmatpush.bf16.msra.mxu1 %v649_v6 }
  0x29   : > { %418 = vmatpush.bf16.msra.mxu0 %v648_v7  ;;  %663 = vmatpush.bf16.msra.mxu1 %v648_v7 }
  0x2c   : > { %419 = vmatmul.bf16.vlgmr.msra.gmra.mxu0 %v646_v8  ;;  %424 = vmatmul.bf16.vlgmr.msra.gmra.mxu1 %v647_v9 }
  0xa9   : > { %v420_v11 = vpop.f32.mrf.mxu0  ;;  %v425_v13 = vpop.f32.mrf.mxu1 }
  0xaa   : > { %v449_v14 = vadd.f32 %v688_v10, %v420_v11  ;;  %v451_v16 = vadd.f32 %v688_v10, %v425_v13 }
  0xac   : > { %v457_v15 = vadd.f32 %v453_v12, %v449_v14  ;;  %v459_v25 = vadd.f32 %v455_v20, %v451_v16 }
  0xae   : > { %461 = vst [vmem:[%s317_s25] sm:$0xff] %v457_v15 }
  0xaf   : > { %463 = vst [vmem:[%s317_s25 + $0x10] sm:$0xff] %v459_v25 }
  0xb1   : > { %v422_v17 = vpop.f32.mrf.mxu0  ;;  %v427_v19 = vpop.f32.mrf.mxu1 }
  0xb2   : > { %v450_v21 = vadd.f32 %v688_v10, %v422_v17  ;;  %v452_v22 = vadd.f32 %v688_v10, %v427_v19 }
  0xb4   : > { %v458_v24 = vadd.f32 %v454_v18, %v450_v21  ;;  %v460_v26 = vadd.f32 %v456_v23, %v452_v22 }
  0xb6   : > { %462 = vst [vmem:[%s317_s25 + $0x8] sm:$0xff] %v458_v24 }
  0xb7   : > { %464 = vst [vmem:[%s317_s25 + $0x18] sm:$0xff] %v460_v26 }
  0xb8 PF: > { %s14_s17 = sadd.s32 1, %s711_s17   ;;  %s806_s15 = smov %s707_s16 }
  0xb9   : > { %p11_p5 = scmp.ge.s32.totalorder %s14_s17, 4   ;;  %s807_s16 = smov %s809_s18 }
  0xbb   :  { %13 = sbr.rel (!%p11_p5) target bundleno = 2 (0x2), region = 83 }

// kernel: transformer_decoder_layer.8
= control target key start
LH: loop header
LB: loop body
LE: loop exit
PB: predicated region body
PF: predicated region fallthrough
CT: control target
= control target key end

     0   :  { %10 = vsyncpa [#allocation5], 0  ;;  %s1196_s18 = smov 0   ;;  %s1198_s19 = smov 0   ;;  %s1296_s0 = inlined_call_operand.vmem [shape: f32[64,128], index: 0, kind: input, shape index: {}]   ;;  %s1297_s1 = inlined_call_operand.hbm [shape: bf16[128,384], index: 1, kind: input, shape index: {}]   ;;  %s1298_s2 = inlined_call_operand.vmem [shape: f32[1,384], index: 2, kind: input, shape index: {}]   ;;  %s1299_s3 = inlined_call_operand.vmem [shape: f32[1,128], index: 3, kind: input, shape index: {}]   ;;  %s1300_s4 = inlined_call_operand.vmem [shape: f32[1,128], index: 4, kind: input, shape index: {}]   ;;  %s1301_s5 = inlined_call_operand.vmem [shape: bf16[64,384], index: 5, kind: output, shape index: {}]  }
   0x1   :  { %s1200_s20 = smov 0  }
   0x2 LB: > { %s890_s21 = sadd.s32 4294967295, %s1160_s20   ;;  %s35_s22 = sadd.s32 1, %s1156_s19  ;;  %s1160_s20 = sphi %s1200_s20, %s16_s20   ;;  %s1156_s19 = sphi %s1198_s19, %s1303_s19   ;;  %s1152_s18 = sphi %s1196_s18, %s1302_s18  }
   0x3   : > { %p37_p0 = scmp.ge.s32.totalorder %s35_s22, 2  ;;  %p892_p1 = scmp.ge.s32.totalorder %s1160_s20, 1 }
   0x4   : > { %p190_p2 = scmp.lt.s32.totalorder %s1160_s20, 3  ;;  %p1062_p4 = scmp.eq.s32.totalorder %s890_s21, 0 }
   0x5   : > { %s1305_s22 = smov (%p37_p0, %s35_s22), 0  ;;  %s207_s25 = sshll.u32 %s1297_s1, 4  ;;  %s208_s25 = int_to_ptr.hbm [resolvable:$true] %s207_s25 }
   0x6   : > { %p191_p3 = pnand %p892_p1, %p190_p2  ;;  %s1162_s26 = smov [#allocation4]  }
   0x7   : > { %s209_s27 = sshll.u32 %s1162_s26, 4  ;;  %s1163_s28 = smov 192   ;;  %s210_s27 = int_to_ptr.vmem [resolvable:$true] %s209_s27 }
   0x8   : > { %p1058_p5 = pneg %p191_p3  ;;  %s1164_s29 = smov 12  }
   0x9   : > { %248 = sbr.rel (%p191_p3) target bundleno = 469 (0x1d5), region = 40 }
   0xa   : > { %p1059_p6 = pnand %p1062_p4, %p1058_p5 }
   0xc   : > { %1061 = dma.hbm_to_vmem [thread:$0]  (!%p1059_p6), %s208_s25, 3072, %s210_s27, [#allocation5], %s1163_s28, %s1163_s28, %s1164_s29  }
   0xe   : > { %1147 = dma.done.wait (%p1062_p4), [#allocation5], 3072  }
   0xf   : > { %1149 = vsyncadd (%p1062_p4), [#allocation5], 4294964224  ;;  %s898_s30 = sshll.u32 %s1152_s18, 2  ;;  %v1165_v4 = vmov 128.0   ;;  %v996_v27 = vld [vmem:[#allocation4 + $0xa8] sm:$0xf] }
  0x10   : > { %p287_p7 = scmp.lt.s32.totalorder %s898_s30, 7  ;;  %1094 = vrcp.f32 %v1165_v4  ;;  %v1032_v28 = vld [vmem:[#allocation4 + $0xb0] sm:$0xf0]  ;;  %v1031_v29 = vld [vmem:[#allocation4 + $0xac] sm:$0xf] }
  0x11   : > { %v997_v30 = vor.u32 %v1032_v28, %v996_v27  ;;  %v998_v31 = vld [vmem:[#allocation4 + $0xb4] sm:$0xf0]  ;;  %v1004_v32 = vld [vmem:[#allocation4 + $0xb0] sm:$0xf]  ;;  %v1033_v33 = vld [vmem:[#allocation4 + $0xb8] sm:$0xf0] }
  0x12   : > { %s1307_s30 = smov (!%p287_p7, %s898_s30), 7  ;;  %v1001_v34 = vor.u32 %v1031_v29, %v998_v31  ;;  %v1005_v35 = vor.u32 %v1033_v33, %v1004_v32  ;;  %v984_v36 = vld [vmem:[#allocation4 + $0x90] sm:$0xf]  ;;  %v1029_v37 = vld [vmem:[#allocation4 + $0x98] sm:$0xf0] }
  0x13   : > { %s899_s6 = sshll.u32 %s1307_s30, 3  ;;  %640 = vmatpush.bf16.msra.mxu0 %v997_v30  ;;  %1045 = vmatpush.bf16.msra.mxu3 %v997_v30  ;;  %v1028_v38 = vld [vmem:[#allocation4 + $0x94] sm:$0xf]  ;;  %v985_v39 = vor.u32 %v1029_v37, %v984_v36  ;;  %v986_v40 = vld [vmem:[#allocation4 + $0x9c] sm:$0xf0]  ;;  %s1053_s16 = smul.u32 12, %s1307_s30 }
  0x14   : > { %s290_s9 = scalar_lea.vmem %s1296_s0, %s899_s6  ;;  %659 = vmatpush.bf16.msra.mxu1 %v1001_v34  ;;  %678 = vmatpush.bf16.msra.mxu2 %v1005_v35  ;;  %v992_v41 = vld [vmem:[#allocation4 + $0x98] sm:$0xf]  ;;  %v1030_v42 = vld [vmem:[#allocation4 + $0xa0] sm:$0xf0]  ;;  %v989_v43 = vor.u32 %v1028_v38, %v986_v40  ;;  %v1025_v47 = vld [vmem:[#allocation4 + $0x7c] sm:$0xf] }
  0x15   : > { %v319_v0 = vld [vmem:[%s290_s9 + $0x10] sm:$0xff]  ;;  %v317_v1 = vld [vmem:[%s290_s9] sm:$0xff]  ;;  %v320_v2 = vld [vmem:[%s290_s9 + $0x18] sm:$0xff]  ;;  %v993_v44 = vor.u32 %v1030_v42, %v992_v41  ;;  %s1277_s21 = scalar_lea.vmem %s1301_s5, %s1053_s16 }
  0x16   : > { %325 = vadd.xlane.f32.xlu1 %v319_v0  ;;  %321 = vadd.xlane.f32.xlu0 %v317_v1  ;;  %v318_v3 = vld [vmem:[%s290_s9 + $0x8] sm:$0xff]  ;;  %v1095_v5 = vpop.eup %1094  ;;  %v1026_v46 = vld [vmem:[#allocation4 + $0x80] sm:$0xf0]  ;;  %v974_v49 = vld [vmem:[#allocation4 + $0x84] sm:$0xf0] }
  0x17   : > { %v330_v6 = vmul.f32 128.0, %v1095_v5  ;;  %vm334_vm0 = vweird.f32 %v1095_v5  ;;  %641 = vmatpush.bf16.msra.mxu0 %v985_v39  ;;  %1046 = vmatpush.bf16.msra.mxu3 %v985_v39  ;;  %v972_v45 = vld [vmem:[#allocation4 + $0x78] sm:$0xf]  ;;  %v980_v50 = vld [vmem:[#allocation4 + $0x80] sm:$0xf]  ;;  %v977_v52 = vor.u32 %v1025_v47, %v974_v49 }
  0x18   : > { %660 = vmatpush.bf16.msra.mxu1 %v989_v43  ;;  %679 = vmatpush.bf16.msra.mxu2 %v993_v44  ;;  %v973_v48 = vor.u32 %v1026_v46, %v972_v45  ;;  %v1027_v51 = vld [vmem:[#allocation4 + $0x88] sm:$0xf0]  ;;  %v960_v54 = vld [vmem:[#allocation4 + $0x60] sm:$0xf]  ;;  %v1022_v56 = vld [vmem:[#allocation4 + $0x64] sm:$0xf] }
  0x19   : > { %v331_v7 = vsub.f32 1.0, %v330_v6  ;;  %v981_v53 = vor.u32 %v1027_v51, %v980_v50  ;;  %v1023_v55 = vld [vmem:[#allocation4 + $0x68] sm:$0xf0]  ;;  %v962_v58 = vld [vmem:[#allocation4 + $0x6c] sm:$0xf0] }
  0x1a   : > { %v961_v57 = vor.u32 %v1023_v55, %v960_v54  ;;  %v968_v59 = vld [vmem:[#allocation4 + $0x68] sm:$0xf]  ;;  %v1024_v60 = vld [vmem:[#allocation4 + $0x70] sm:$0xf0]  ;;  %v965_v61 = vor.u32 %v1022_v56, %v962_v58  ;;  %v956_v6 = vld [vmem:[#allocation4 + $0x50] sm:$0xf] }
  0x1b   : > { %v332_v8 = vmul.f32 %v1095_v5, %v331_v7  ;;  %642 = vmatpush.bf16.msra.mxu0 %v973_v48  ;;  %1047 = vmatpush.bf16.msra.mxu3 %v973_v48  ;;  %v969_v62 = vor.u32 %v1024_v60, %v968_v59  ;;  %v948_v63 = vld [vmem:[#allocation4 + $0x48] sm:$0xf]  ;;  %v1021_v7 = vld [vmem:[#allocation4 + $0x58] sm:$0xf0]  ;;  %v924_v28 = vld [vmem:[#allocation4 + $0x18] sm:$0xf] }
  0x1c   : > { %661 = vmatpush.bf16.msra.mxu1 %v977_v52  ;;  %680 = vmatpush.bf16.msra.mxu2 %v981_v53  ;;  %v1014_v29 = vld [vmem:[#allocation4 + $0x20] sm:$0xf0]  ;;  %v1013_v30 = vld [vmem:[#allocation4 + $0x1c] sm:$0xf]  ;;  %v926_v34 = vld [vmem:[#allocation4 + $0x24] sm:$0xf0] }
  0x1d   : > { %v333_v9 = vadd.f32 %v1095_v5, %v332_v8  ;;  %v925_v33 = vor.u32 %v1014_v29, %v924_v28  ;;  %v932_v35 = vld [vmem:[#allocation4 + $0x20] sm:$0xf]  ;;  %v1015_v36 = vld [vmem:[#allocation4 + $0x28] sm:$0xf0]  ;;  %v929_v39 = vor.u32 %v1013_v30, %v926_v34  ;;  %v1010_v43 = vld [vmem:[#allocation4 + $0x4] sm:$0xf] }
  0x1e   : > { %327 = vadd.xlane.f32.xlu1 %v320_v2  ;;  %323 = vadd.xlane.f32.xlu0 %v318_v3  ;;  %v933_v40 = vor.u32 %v1015_v36, %v932_v35  ;;  %v912_v41 = vld [vmem:[#allocation4] sm:$0xf]  ;;  %v1011_v42 = vld [vmem:[#allocation4 + $0x8] sm:$0xf0]  ;;  %v914_v44 = vld [vmem:[#allocation4 + $0xc] sm:$0xf0] }
  0x1f   : > { %v1224_v10 = vsel %vm334_vm0, %v1095_v5, %v333_v9  ;;  %643 = vmatpush.bf16.msra.mxu0 %v961_v57  ;;  %1048 = vmatpush.bf16.msra.mxu3 %v961_v57  ;;  %v950_v5 = vld [vmem:[#allocation4 + $0x54] sm:$0xf0]  ;;  %v920_v45 = vld [vmem:[#allocation4 + $0x8] sm:$0xf]  ;;  %v1012_v46 = vld [vmem:[#allocation4 + $0x10] sm:$0xf0]  ;;  %v913_v50 = vor.u32 %v1011_v42, %v912_v41 }
  0x20   : > { %662 = vmatpush.bf16.msra.mxu1 %v965_v61  ;;  %681 = vmatpush.bf16.msra.mxu2 %v969_v62  ;;  %v921_v53 = vor.u32 %v1012_v46, %v920_v45 }
  0x89   : > { %v326_v11 = vpop.xlane.xlu1 %325  ;;  %v322_v12 = vpop.xlane.xlu0 %321 }
  0x8a   : > { %v338_v13 = vmul.f32 %v1224_v10, %v326_v11  ;;  %v336_v14 = vmul.f32 %v1224_v10, %v322_v12  ;;  %v957_v12 = vor.u32 %v1021_v7, %v956_v6 }
  0x8c   : > { %v1228_v15 = vsub.f32 %v319_v0, %v338_v13  ;;  %v1230_v16 = vsub.f32 %v317_v1, %v336_v14  ;;  %v1020_v0 = vld [vmem:[#allocation4 + $0x50] sm:$0xf0]  ;;  %v1019_v1 = vld [vmem:[#allocation4 + $0x4c] sm:$0xf]  ;;  %682 = vmatpush.bf16.msra.mxu2 %v957_v12 }
  0x8d   : > { %v949_v4 = vor.u32 %v1020_v0, %v948_v63  ;;  %v953_v11 = vor.u32 %v1019_v1, %v950_v5 }
  0x8e   : > { %v346_v17 = vmul.f32 %v1228_v15, %v1228_v15  ;;  %v344_v18 = vmul.f32 %v1230_v16, %v1230_v16 }
  0x8f   : > { %644 = vmatpush.bf16.msra.mxu0 %v949_v4  ;;  %1049 = vmatpush.bf16.msra.mxu3 %v949_v4 }
  0x90   : > { %352 = vadd.xlane.f32.xlu0 %v346_v17  ;;  %348 = vadd.xlane.f32.xlu2 %v344_v18  ;;  %v936_v17 = vld [vmem:[#allocation4 + $0x30] sm:$0xf]  ;;  %v1017_v18 = vld [vmem:[#allocation4 + $0x38] sm:$0xf0] }
  0x91   : > { %v328_v19 = vpop.xlane.xlu1 %327  ;;  %v324_v20 = vpop.xlane.xlu0 %323  ;;  %663 = vmatpush.bf16.msra.mxu1 %v953_v11  ;;  %v1092_v11 = vld [vmem:[%s1299_s3] ss:$0 sm:$0xff] }
  0x92   : > { %v339_v21 = vmul.f32 %v1224_v10, %v328_v19  ;;  %v337_v22 = vmul.f32 %v1224_v10, %v324_v20  ;;  %v1016_v19 = vld [vmem:[#allocation4 + $0x34] sm:$0xf]  ;;  %v938_v20 = vld [vmem:[#allocation4 + $0x3c] sm:$0xf0] }
  0x94   : > { %v1238_v23 = vsub.f32 %v320_v2, %v339_v21  ;;  %v1240_v24 = vsub.f32 %v318_v3, %v337_v22  ;;  %v937_v21 = vor.u32 %v1017_v18, %v936_v17  ;;  %v944_v22 = vld [vmem:[#allocation4 + $0x38] sm:$0xf] }
  0x96   : > { %v347_v25 = vmul.f32 %v1238_v23, %v1238_v23  ;;  %v345_v26 = vmul.f32 %v1240_v24, %v1240_v24  ;;  %645 = vmatpush.bf16.msra.mxu0 %v937_v21  ;;  %1050 = vmatpush.bf16.msra.mxu3 %v937_v21 }
  0x98   : > { %354 = vadd.xlane.f32.xlu1 %v347_v25  ;;  %350 = vadd.xlane.f32.xlu2 %v345_v26  ;;  %v1018_v25 = vld [vmem:[#allocation4 + $0x40] sm:$0xf0]  ;;  %v941_v26 = vor.u32 %v1016_v19, %v938_v20  ;;  %v1093_v20 = vld [vmem:[%s1300_s4] ss:$0 sm:$0xff] }
  0x99   : > { %v945_v27 = vor.u32 %v1018_v25, %v944_v22 }
  0x9a   : > { %664 = vmatpush.bf16.msra.mxu1 %v941_v26  ;;  %646 = vmatpush.bf16.msra.mxu0 %v925_v33 }
  0x9b   : > { %683 = vmatpush.bf16.msra.mxu2 %v945_v27  ;;  %1051 = vmatpush.bf16.msra.mxu3 %v925_v33 }
  0x9e   : > { %665 = vmatpush.bf16.msra.mxu1 %v929_v39  ;;  %647 = vmatpush.bf16.msra.mxu0 %v913_v50 }
  0x9f   : > { %684 = vmatpush.bf16.msra.mxu2 %v933_v40  ;;  %1052 = vmatpush.bf16.msra.mxu3 %v913_v50 }
  0xa3   : > { %685 = vmatpush.bf16.msra.mxu2 %v921_v53 }
 0x103   : > { %v349_v2 = vpop.xlane.xlu2 %348  ;;  %v353_v3 = vpop.xlane.xlu0 %352 }
 0x104   : > { %v356_v8 = vmul.f32 %v349_v2, %v1224_v10  ;;  %v358_v9 = vmul.f32 %v353_v3, %v1224_v10 }
 0x106   : > { %v1248_v13 = vadd.f32 1e-05, %v356_v8  ;;  %v1250_v14 = vadd.f32 1e-05, %v358_v9 }
 0x108   : > { %1096 = vrsqrt.f32 %v1248_v13  ;;  %vm390_vm1 = vweird.f32 %v1250_v14  ;;  %vm370_vm5 = vweird.f32 %v1248_v13 }
 0x109   : > { %1098 = vrsqrt.f32 %v1250_v14 }
 0x10b   : > { %v355_v31 = vpop.xlane.xlu1 %354  ;;  %v351_v32 = vpop.xlane.xlu2 %350 }
 0x10c   : > { %v359_v37 = vmul.f32 %v355_v31, %v1224_v10  ;;  %v357_v38 = vmul.f32 %v351_v32, %v1224_v10  ;;  %v917_v10 = vor.u32 %v1010_v43, %v914_v44 }
 0x10e   : > { %v1097_v47 = vpop.eup %1096  ;;  %v363_v48 = vadd.f32 1e-05, %v359_v37  ;;  %v361_v49 = vadd.f32 1e-05, %v357_v38  ;;  %666 = vmatpush.bf16.msra.mxu1 %v917_v10 }
 0x10f   : > { %v1099_v51 = vpop.eup %1098  ;;  %v365_v52 = vmul.f32 %v1097_v47, %v1248_v13  ;;  %vm371_vm3 = vweird.f32 %v1097_v47 }
 0x110   : > { %v385_v54 = vmul.f32 %v1099_v51, %v1250_v14  ;;  %1100 = vrsqrt.f32 %v363_v48  ;;  %vm391_vm2 = vweird.f32 %v1099_v51  ;;  %vm372_vm6 = vmor %vm370_vm5, %vm371_vm3  ;;  %vm400_vm7 = vweird.f32 %v363_v48 }
 0x111   : > { %v366_v55 = vmul.f32 %v1097_v47, %v365_v52  ;;  %1102 = vrsqrt.f32 %v361_v49  ;;  %vm392_vm4 = vmor %vm390_vm1, %vm391_vm2  ;;  %vm380_vm11 = vweird.f32 %v361_v49 }
 0x112   : > { %v386_v56 = vmul.f32 %v1099_v51, %v385_v54 }
 0x113   : > { %v367_v57 = vmul.f32 0.5, %v366_v55 }
 0x114   : > { %v387_v58 = vmul.f32 0.5, %v386_v56 }
 0x115   : > { %v368_v59 = vsub.f32 1.5, %v367_v57 }
 0x116   : > { %v1101_v60 = vpop.eup %1100  ;;  %v388_v61 = vsub.f32 1.5, %v387_v58 }
 0x117   : > { %v1103_v62 = vpop.eup %1102  ;;  %v395_v63 = vmul.f32 %v1101_v60, %v363_v48  ;;  %v369_v0 = vmul.f32 %v1097_v47, %v368_v59  ;;  %vm401_vm8 = vweird.f32 %v1101_v60 }
 0x118   : > { %v389_v1 = vmul.f32 %v1099_v51, %v388_v61  ;;  %v375_v2 = vmul.f32 %v1103_v62, %v361_v49  ;;  %vm402_vm9 = vmor %vm400_vm7, %vm401_vm8  ;;  %vm381_vm10 = vweird.f32 %v1103_v62 }
 0x119   : > { %v396_v3 = vmul.f32 %v1101_v60, %v395_v63  ;;  %v373_v7 = vsel %vm372_vm6, %v1097_v47, %v369_v0  ;;  %vm382_vm12 = vmor %vm380_vm11, %vm381_vm10 }
 0x11a   : > { %v376_v4 = vmul.f32 %v1103_v62, %v375_v2  ;;  %v393_v5 = vsel %vm392_vm4, %v1099_v51, %v389_v1  ;;  %v404_v13 = vmul.f32 %v373_v7, %v1230_v16 }
 0x11b   : > { %v397_v6 = vmul.f32 0.5, %v396_v3  ;;  %v406_v12 = vmul.f32 %v393_v5, %v1228_v15 }
 0x11c   : > { %v377_v8 = vmul.f32 0.5, %v376_v4  ;;  %v412_v26 = vmul.f32 %v1092_v11, %v404_v13 }
 0x11d   : > { %v398_v9 = vsub.f32 1.5, %v397_v6  ;;  %v414_v21 = vmul.f32 %v1092_v11, %v406_v12 }
 0x11e   : > { %v378_v14 = vsub.f32 1.5, %v377_v8  ;;  %v420_v30 = vadd.f32 %v1093_v20, %v412_v26 }
 0x11f   : > { %v399_v17 = vmul.f32 %v1101_v60, %v398_v9  ;;  %v422_v29 = vadd.f32 %v1093_v20, %v414_v21 }
 0x120   : > { %v379_v18 = vmul.f32 %v1103_v62, %v378_v14 }
 0x121   : > { %v403_v19 = vsel %vm402_vm9, %v1101_v60, %v399_v17 }
 0x122   : > { %v407_v22 = vmul.f32 %v403_v19, %v1238_v23  ;;  %v383_v25 = vsel %vm382_vm12, %v1103_v62, %v379_v18  ;;  %v736_v23 = vld [vmem:[%s1298_s2] sm:$0x7] }
 0x123   : > { %v405_v15 = vmul.f32 %v383_v25, %v1240_v24  ;;  %v738_v24 = vperm.slane %v736_v23, 0  ;;  %v739_v36 = vperm.slane %v736_v23, 1  ;;  %v740_v42 = vperm.slane %v736_v23, 2 }
 0x124   : > { %v415_v27 = vmul.f32 %v1092_v11, %v407_v22 }
 0x125   : > { %v413_v28 = vmul.f32 %v1092_v11, %v405_v15 }
 0x126   : > { %v423_v16 = vadd.f32 %v1093_v20, %v415_v27 }
 0x127   : > { %v421_v31 = vadd.f32 %v1093_v20, %v413_v28 }
 0x128   : > { %v1042_v32 = vpack.c.bf16 %v423_v16, %v422_v29 }
 0x129   : > { %v1037_v33 = vpack.c.bf16 %v421_v31, %v420_v30 }
 0x12a   : > { %1044 = vst [vmem:[#allocation3 + $0x8] sm:$0xff] %v1042_v32  }
 0x12b   : > { %1038 = vst [vmem:[#allocation3] sm:$0xff] %v1037_v33  }
 0x131   : > { %v1009_v34 = vld [vmem:[#allocation3 + $0x8] sm:$0xff] }
 0x132   : > { %v1008_v35 = vld [vmem:[#allocation3] sm:$0xff]  ;;  %653 = vmatmul.bf16.vlgmr.msra.gmra.mxu3 %v1009_v34 }
 0x133   : > { %648 = vmatmul.bf16.vlgmr.msra.gmra.mxu0 %v1008_v35  ;;  %667 = vmatmul.bf16.vlgmr.msra.gmra.mxu1 %v1008_v35 }
 0x134   : > { %686 = vmatmul.bf16.vlgmr.msra.gmra.mxu2 %v1008_v35 }
 0x143   : > { %672 = vmatmul.bf16.gmra.mxu1 %v1009_v34 }
 0x144   : > { %691 = vmatmul.bf16.gmra.mxu2 %v1009_v34 }
 0x1b0   : > { %v649_v37 = vpop.f32.mrf.mxu0  ;;  %v668_v38 = vpop.f32.mrf.mxu1 }
 0x1b1   : > { %v744_v39 = vadd.f32 %v738_v24, %v649_v37  ;;  %v745_v40 = vadd.f32 %v739_v36, %v668_v38 }
 0x1b3   : > { %v756_v41 = vpack.c.bf16 %v745_v40, %v744_v39 }
 0x1b5   : > { %764 = vst [vmem:[%s1277_s21] sm:$0xff] %v756_v41  ;;  %v654_v51 = vpop.f32.mrf.mxu3 }
 0x1b6   : > { %v750_v54 = vadd.f32 %v738_v24, %v654_v51 }
 0x1b7   : > { %v687_v43 = vpop.f32.mrf.mxu2 }
 0x1b8   : > { %v746_v44 = vadd.f32 %v740_v42, %v687_v43  ;;  %v651_v45 = vpop.f32.mrf.mxu0  ;;  %v670_v46 = vpop.f32.mrf.mxu1 }
 0x1b9   : > { %v747_v47 = vadd.f32 %v738_v24, %v651_v45  ;;  %v748_v48 = vadd.f32 %v739_v36, %v670_v46 }
 0x1ba   : > { %v757_v49 = vpack.c.bf16 %v746_v44, %v746_v44 }
 0x1bb   : > { %v758_v50 = vpack.c.bf16 %v748_v48, %v747_v47 }
 0x1bc   : > { %765 = vst [vmem:[%s1277_s21 + $0x8] sm:$0xf] %v757_v49 }
 0x1bd   : > { %766 = vst [vmem:[%s1277_s21 + $0xc] sm:$0xff] %v758_v50  ;;  %v656_v58 = vpop.f32.mrf.mxu3 }
 0x1be   : > { %v753_v62 = vadd.f32 %v738_v24, %v656_v58 }
 0x1bf   : > { %v689_v52 = vpop.f32.mrf.mxu2 }
 0x1c0   : > { %v749_v10 = vadd.f32 %v740_v42, %v689_v52  ;;  %v673_v53 = vpop.f32.mrf.mxu1 }
 0x1c1   : > { %v751_v55 = vadd.f32 %v739_v36, %v673_v53 }
 0x1c2   : > { %v759_v56 = vpack.c.bf16 %v749_v10, %v749_v10 }
 0x1c3   : > { %v760_v57 = vpack.c.bf16 %v751_v55, %v750_v54 }
 0x1c4   : > { %767 = vst [vmem:[%s1277_s21 + $0x14] sm:$0xf] %v759_v56 }
 0x1c5   : > { %768 = vst [vmem:[%s1277_s21 + $0x18] sm:$0xff] %v760_v57 }
 0x1c7   : > { %v692_v59 = vpop.f32.mrf.mxu2 }
 0x1c8   : > { %v752_v60 = vadd.f32 %v740_v42, %v692_v59  ;;  %v675_v61 = vpop.f32.mrf.mxu1 }
 0x1c9   : > { %v754_v63 = vadd.f32 %v739_v36, %v675_v61 }
 0x1ca   : > { %v761_v0 = vpack.c.bf16 %v752_v60, %v752_v60 }
 0x1cb   : > { %v762_v1 = vpack.c.bf16 %v754_v63, %v753_v62 }
 0x1cc   : > { %769 = vst [vmem:[%s1277_s21 + $0x20] sm:$0xf] %v761_v0 }
 0x1cd   : > { %770 = vst [vmem:[%s1277_s21 + $0x24] sm:$0xff] %v762_v1 }
 0x1cf   : > { %v694_v2 = vpop.f32.mrf.mxu2 }
 0x1d0   : > { %v755_v3 = vadd.f32 %v740_v42, %v694_v2 }
 0x1d2   : > { %v763_v4 = vpack.c.bf16 %v755_v3, %v755_v3 }
 0x1d4   : > { %771 = vst [vmem:[%s1277_s21 + $0x2c] sm:$0xf] %v763_v4 }
 0x1d5 PF: > { %s16_s20 = sadd.s32 1, %s1160_s20   ;;  %s1302_s18 = smov %s1156_s19 }
 0x1d6   : > { %p13_p8 = scmp.ge.s32.totalorder %s16_s20, 4   ;;  %s1303_s19 = smov %s1305_s22 }
 0x1d8   :  { %15 = sbr.rel (!%p13_p8) target bundleno = 2 (0x2), region = 92 }
 0x1dd   :  { %805 = vsyncpa [#allocation5], 1 }
 0x1de   :  { %807 = vsyncpa [#allocation5 + $0x1], 1 }

// kernel: transformer_decoder_layer.11
= control target key start
LH: loop header
LB: loop body
LE: loop exit
PB: predicated region body
PF: predicated region fallthrough
CT: control target
= control target key end

     0   :  { %s865_s18 = smov 0   ;;  %s867_s19 = smov 0   ;;  %s955_s0 = inlined_call_operand.vmem [shape: f32[64,128], index: 0, kind: input, shape index: {}]   ;;  %s956_s1 = inlined_call_operand.vmem [shape: bf16[128,128], index: 1, kind: input, shape index: {}]   ;;  %s957_s2 = inlined_call_operand.vmem [shape: f32[1,128], index: 2, kind: input, shape index: {}]   ;;  %s958_s3 = inlined_call_operand.vmem [shape: f32[1,128], index: 3, kind: input, shape index: {}]   ;;  %s959_s4 = inlined_call_operand.vmem [shape: f32[1,128], index: 4, kind: input, shape index: {}]   ;;  %s960_s5 = inlined_call_operand.vmem [shape: bf16[64,128], index: 5, kind: output, shape index: {}]  }
   0x1   :  { %s869_s20 = smov 0  }
   0x2 LB: > { %s34_s21 = sadd.s32 1, %s828_s19  ;;  %p685_p0 = scmp.ge.s32.totalorder %s832_s20, 1  ;;  %s832_s20 = sphi %s869_s20, %s15_s20   ;;  %s828_s19 = sphi %s867_s19, %s962_s19   ;;  %s824_s18 = sphi %s865_s18, %s961_s18  }
   0x3   : > { %p36_p1 = scmp.ge.s32.totalorder %s34_s21, 2  ;;  %p233_p2 = scmp.lt.s32.totalorder %s832_s20, 3 }
   0x5   : > { %s964_s21 = smov (%p36_p1, %s34_s21), 0  ;;  %p234_p3 = pnand %p685_p0, %p233_p2 }
   0x6   : > { %s686_s22 = sshll.u32 (!%p234_p3), %s824_s18, 2 }
   0x7   : > { %237 = sbr.rel (%p234_p3) target bundleno = 440 (0x1b8), region = 40  ;;  %p276_p4 = scmp.lt.s32.totalorder (!%p234_p3), %s686_s22, 7 }
   0xc   : > { %s966_s22 = smov (!%p276_p4, %s686_s22), 7  ;;  %v834_v4 = vmov 128.0   ;;  %v741_v27 = vld [vmem:[%s956_s1 + $0x38] sm:$0xff]  ;;  %v740_v28 = vld [vmem:[%s956_s1 + $0x30] sm:$0xff]  ;;  %v739_v29 = vld [vmem:[%s956_s1 + $0x28] sm:$0xff] }
   0xd   : > { %s687_s23 = sshll.u32 %s966_s22, 3  ;;  %800 = vrcp.f32 %v834_v4  ;;  %519 = vmatpush.bf16.msra.mxu0 %v741_v27  ;;  %764 = vmatpush.bf16.msra.mxu1 %v741_v27  ;;  %v738_v30 = vld [vmem:[%s956_s1 + $0x20] sm:$0xff]  ;;  %v737_v33 = vld [vmem:[%s956_s1 + $0x18] sm:$0xff]  ;;  %v736_v38 = vld [vmem:[%s956_s1 + $0x10] sm:$0xff]  ;;  %s689_s28 = sshll.u32 %s966_s22, 2 }
   0xe   : > { %s279_s26 = scalar_lea.vmem %s955_s0, %s687_s23  ;;  %v735_v41 = vld [vmem:[%s956_s1 + $0x8] sm:$0xff]  ;;  %v734_v44 = vld [vmem:[%s956_s1] sm:$0xff]  ;;  %s300_s6 = scalar_lea.vmem %s960_s5, %s689_s28 }
   0xf   : > { %v310_v0 = vld [vmem:[%s279_s26 + $0x10] sm:$0xff]  ;;  %v308_v1 = vld [vmem:[%s279_s26] sm:$0xff]  ;;  %v311_v2 = vld [vmem:[%s279_s26 + $0x18] sm:$0xff] }
  0x10   : > { %316 = vadd.xlane.f32.xlu1 %v310_v0  ;;  %312 = vadd.xlane.f32.xlu0 %v308_v1  ;;  %v309_v3 = vld [vmem:[%s279_s26 + $0x8] sm:$0xff] }
  0x11   : > { %520 = vmatpush.bf16.msra.mxu0 %v740_v28  ;;  %765 = vmatpush.bf16.msra.mxu1 %v740_v28 }
  0x13   : > { %v801_v5 = vpop.eup %800 }
  0x14   : > { %v321_v6 = vmul.f32 128.0, %v801_v5  ;;  %vm325_vm0 = vweird.f32 %v801_v5 }
  0x15   : > { %521 = vmatpush.bf16.msra.mxu0 %v739_v29  ;;  %766 = vmatpush.bf16.msra.mxu1 %v739_v29 }
  0x16   : > { %v322_v7 = vsub.f32 1.0, %v321_v6  ;;  %v797_v6 = vld [vmem:[%s958_s3] ss:$0 sm:$0xff] }
  0x18   : > { %318 = vadd.xlane.f32.xlu1 %v311_v2  ;;  %314 = vadd.xlane.f32.xlu0 %v309_v3  ;;  %v323_v8 = vmul.f32 %v801_v5, %v322_v7 }
  0x19   : > { %522 = vmatpush.bf16.msra.mxu0 %v738_v30  ;;  %767 = vmatpush.bf16.msra.mxu1 %v738_v30 }
  0x1a   : > { %v324_v9 = vadd.f32 %v801_v5, %v323_v8 }
  0x1c   : > { %v326_v10 = vsel %vm325_vm0, %v801_v5, %v324_v9 }
  0x1d   : > { %523 = vmatpush.bf16.msra.mxu0 %v737_v33  ;;  %768 = vmatpush.bf16.msra.mxu1 %v737_v33 }
  0x21   : > { %524 = vmatpush.bf16.msra.mxu0 %v736_v38  ;;  %769 = vmatpush.bf16.msra.mxu1 %v736_v38 }
  0x25   : > { %525 = vmatpush.bf16.msra.mxu0 %v735_v41  ;;  %770 = vmatpush.bf16.msra.mxu1 %v735_v41 }
  0x29   : > { %526 = vmatpush.bf16.msra.mxu0 %v734_v44  ;;  %771 = vmatpush.bf16.msra.mxu1 %v734_v44 }
  0x83   : > { %v317_v11 = vpop.xlane.xlu1 %316  ;;  %v313_v12 = vpop.xlane.xlu0 %312 }
  0x84   : > { %v329_v13 = vmul.f32 %v326_v10, %v317_v11  ;;  %v327_v14 = vmul.f32 %v326_v10, %v313_v12 }
  0x86   : > { %v889_v15 = vsub.f32 %v310_v0, %v329_v13  ;;  %v891_v16 = vsub.f32 %v308_v1, %v327_v14  ;;  %v798_v13 = vld [vmem:[%s959_s4] ss:$0 sm:$0xff] }
  0x88   : > { %v337_v17 = vmul.f32 %v889_v15, %v889_v15  ;;  %v335_v18 = vmul.f32 %v891_v16, %v891_v16 }
  0x8a   : > { %343 = vadd.xlane.f32.xlu0 %v337_v17  ;;  %339 = vadd.xlane.f32.xlu2 %v335_v18 }
  0x8b   : > { %v319_v19 = vpop.xlane.xlu1 %318  ;;  %v315_v20 = vpop.xlane.xlu0 %314 }
  0x8c   : > { %v330_v21 = vmul.f32 %v326_v10, %v319_v19  ;;  %v328_v22 = vmul.f32 %v326_v10, %v315_v20 }
  0x8e   : > { %v897_v23 = vsub.f32 %v311_v2, %v330_v21  ;;  %v899_v24 = vsub.f32 %v309_v3, %v328_v22 }
  0x90   : > { %v338_v25 = vmul.f32 %v897_v23, %v897_v23  ;;  %v336_v26 = vmul.f32 %v899_v24, %v899_v24 }
  0x92   : > { %345 = vadd.xlane.f32.xlu1 %v338_v25  ;;  %341 = vadd.xlane.f32.xlu2 %v336_v26 }
  0xfd   : > { %v340_v31 = vpop.xlane.xlu2 %339  ;;  %v344_v32 = vpop.xlane.xlu0 %343 }
  0xfe   : > { %v347_v34 = vmul.f32 %v340_v31, %v326_v10  ;;  %v349_v35 = vmul.f32 %v344_v32, %v326_v10 }
 0x100   : > { %v351_v36 = vadd.f32 1e-05, %v347_v34  ;;  %v353_v37 = vadd.f32 1e-05, %v349_v35 }
 0x102   : > { %802 = vrsqrt.f32 %v351_v36  ;;  %vm381_vm3 = vweird.f32 %v353_v37  ;;  %vm361_vm4 = vweird.f32 %v351_v36 }
 0x103   : > { %804 = vrsqrt.f32 %v353_v37 }
 0x105   : > { %v346_v39 = vpop.xlane.xlu1 %345  ;;  %v342_v40 = vpop.xlane.xlu2 %341 }
 0x106   : > { %v350_v42 = vmul.f32 %v346_v39, %v326_v10  ;;  %v348_v43 = vmul.f32 %v342_v40, %v326_v10 }
 0x108   : > { %v803_v45 = vpop.eup %802  ;;  %v354_v46 = vadd.f32 1e-05, %v350_v42  ;;  %v352_v47 = vadd.f32 1e-05, %v348_v43 }
 0x109   : > { %v805_v48 = vpop.eup %804  ;;  %v356_v49 = vmul.f32 %v803_v45, %v351_v36  ;;  %vm362_vm2 = vweird.f32 %v803_v45 }
 0x10a   : > { %v376_v50 = vmul.f32 %v805_v48, %v353_v37  ;;  %806 = vrsqrt.f32 %v354_v46  ;;  %vm382_vm1 = vweird.f32 %v805_v48  ;;  %vm363_vm6 = vmor %vm361_vm4, %vm362_vm2  ;;  %vm391_vm9 = vweird.f32 %v354_v46 }
 0x10b   : > { %v357_v51 = vmul.f32 %v803_v45, %v356_v49  ;;  %808 = vrsqrt.f32 %v352_v47  ;;  %vm383_vm5 = vmor %vm381_vm3, %vm382_vm1  ;;  %vm371_vm11 = vweird.f32 %v352_v47 }
 0x10c   : > { %v377_v52 = vmul.f32 %v805_v48, %v376_v50 }
 0x10d   : > { %v358_v53 = vmul.f32 0.5, %v357_v51 }
 0x10e   : > { %v378_v54 = vmul.f32 0.5, %v377_v52 }
 0x10f   : > { %v359_v55 = vsub.f32 1.5, %v358_v53 }
 0x110   : > { %v807_v56 = vpop.eup %806  ;;  %v379_v57 = vsub.f32 1.5, %v378_v54 }
 0x111   : > { %v809_v58 = vpop.eup %808  ;;  %v386_v59 = vmul.f32 %v807_v56, %v354_v46  ;;  %v360_v60 = vmul.f32 %v803_v45, %v359_v55  ;;  %vm392_vm7 = vweird.f32 %v807_v56 }
 0x112   : > { %v380_v61 = vmul.f32 %v805_v48, %v379_v57  ;;  %v366_v62 = vmul.f32 %v809_v58, %v352_v47  ;;  %vm372_vm8 = vweird.f32 %v809_v58  ;;  %vm393_vm10 = vmor %vm391_vm9, %vm392_vm7 }
 0x113   : > { %v387_v63 = vmul.f32 %v807_v56, %v386_v59  ;;  %v364_v3 = vsel %vm363_vm6, %v803_v45, %v360_v60  ;;  %vm373_vm12 = vmor %vm371_vm11, %vm372_vm8 }
 0x114   : > { %v367_v0 = vmul.f32 %v809_v58, %v366_v62  ;;  %v384_v1 = vsel %vm383_vm5, %v805_v48, %v380_v61  ;;  %v395_v9 = vmul.f32 %v364_v3, %v891_v16 }
 0x115   : > { %v388_v2 = vmul.f32 0.5, %v387_v63  ;;  %v397_v7 = vmul.f32 %v384_v1, %v889_v15 }
 0x116   : > { %v368_v4 = vmul.f32 0.5, %v367_v0  ;;  %v403_v15 = vmul.f32 %v797_v6, %v395_v9 }
 0x117   : > { %v389_v5 = vsub.f32 1.5, %v388_v2  ;;  %v405_v14 = vmul.f32 %v797_v6, %v397_v7 }
 0x118   : > { %v369_v8 = vsub.f32 1.5, %v368_v4  ;;  %v411_v25 = vadd.f32 %v798_v13, %v403_v15 }
 0x119   : > { %v390_v10 = vmul.f32 %v807_v56, %v389_v5  ;;  %v413_v21 = vadd.f32 %v798_v13, %v405_v14 }
 0x11a   : > { %v370_v11 = vmul.f32 %v809_v58, %v369_v8 }
 0x11b   : > { %v394_v12 = vsel %vm393_vm10, %v807_v56, %v390_v10 }
 0x11c   : > { %v398_v17 = vmul.f32 %v394_v12, %v897_v23  ;;  %v374_v18 = vsel %vm373_vm12, %v809_v58, %v370_v11 }
 0x11d   : > { %v396_v19 = vmul.f32 %v374_v18, %v899_v24  ;;  %v799_v24 = vld [vmem:[%s957_s2] ss:$0 sm:$0xff] }
 0x11e   : > { %v406_v20 = vmul.f32 %v797_v6, %v398_v17 }
 0x11f   : > { %v404_v16 = vmul.f32 %v797_v6, %v396_v19 }
 0x120   : > { %v414_v22 = vadd.f32 %v798_v13, %v406_v20 }
 0x121   : > { %v412_v26 = vadd.f32 %v798_v13, %v404_v16 }
 0x122   : > { %v750_v27 = vpack.c.bf16 %v414_v22, %v413_v21 }
 0x123   : > { %v745_v28 = vpack.c.bf16 %v412_v26, %v411_v25 }
 0x124   : > { %762 = vst [vmem:[#allocation3 + $0x8] sm:$0xff] %v750_v27  }
 0x125   : > { %746 = vst [vmem:[#allocation3] sm:$0xff] %v745_v28  }
 0x12b   : > { %v733_v29 = vld [vmem:[#allocation3 + $0x8] sm:$0xff] }
 0x12c   : > { %v732_v30 = vld [vmem:[#allocation3] sm:$0xff]  ;;  %532 = vmatmul.bf16.vlgmr.msra.gmra.mxu1 %v733_v29 }
 0x12d   : > { %527 = vmatmul.bf16.vlgmr.msra.gmra.mxu0 %v732_v30 }
 0x1a9   : > { %v533_v23 = vpop.f32.mrf.mxu1 }
 0x1aa   : > { %v528_v31 = vpop.f32.mrf.mxu0  ;;  %v559_v33 = vadd.f32 %v799_v24, %v533_v23 }
 0x1ab   : > { %v557_v36 = vadd.f32 %v799_v24, %v528_v31 }
 0x1b1   : > { %v535_v32 = vpop.f32.mrf.mxu1 }
 0x1b2   : > { %v530_v34 = vpop.f32.mrf.mxu0  ;;  %v560_v35 = vadd.f32 %v799_v24, %v535_v32 }
 0x1b3   : > { %v558_v37 = vadd.f32 %v799_v24, %v530_v34 }
 0x1b4   : > { %v760_v38 = vpack.c.bf16 %v560_v35, %v559_v33 }
 0x1b5   : > { %v755_v39 = vpack.c.bf16 %v558_v37, %v557_v36 }
 0x1b6   : > { %763 = vst [vmem:[%s300_s6 + $0x8] sm:$0xff] %v760_v38  }
 0x1b7   : > { %756 = vst [vmem:[%s300_s6] sm:$0xff] %v755_v39  }
 0x1b8 PF: > { %s15_s20 = sadd.s32 1, %s832_s20   ;;  %s961_s18 = smov %s828_s19 }
 0x1b9   : > { %p12_p5 = scmp.ge.s32.totalorder %s15_s20, 4   ;;  %s962_s19 = smov %s964_s21 }
 0x1bb   :  { %14 = sbr.rel (!%p12_p5) target bundleno = 2 (0x2), region = 89 }

// kernel: transformer_decoder_layer.9
= control target key start
LH: loop header
LB: loop body
LE: loop exit
PB: predicated region body
PF: predicated region fallthrough
CT: control target
= control target key end

     0   :  { %s1385_s12 = smov 0   ;;  %s1387_s13 = smov 0   ;;  %s1646_s0 = inlined_call_operand.vmem [shape: bf16[4,16,384], index: 0, kind: input, shape index: {}, may-alias: {0,1,2}]   ;;  %s1647_s1 = inlined_call_operand.vmem [shape: bf16[4,16,384], index: 1, kind: input, shape index: {}, may-alias: {0,1,2}]   ;;  %s1648_s2 = inlined_call_operand.vmem [shape: bf16[4,16,384], index: 2, kind: input, shape index: {}, may-alias: {0,1,2}]   ;;  %s1649_s3 = inlined_call_operand.vmem [shape: bf16[4,16,128], index: 3, kind: output, shape index: {}]  }
   0x1   :  { %s1389_s14 = smov 0   ;;  %s1391_s15 = smov 0  }
   0x2   :  { %s1393_s16 = smov 0  }
   0x3 LB: > { %s32_s17 = sadd.s32 1, %s1353_s15  ;;  %p48_p1 = scmp.ne.s32.totalorder %s1345_s13, %s1341_s12  ;;  %s1357_s16 = sphi %s1393_s16, %s13_s16   ;;  %s1353_s15 = sphi %s1391_s15, %s1654_s15   ;;  %s1349_s14 = sphi %s1389_s14, %s1653_s14   ;;  %s1345_s13 = sphi %s1387_s13, %s1652_s13   ;;  %s1341_s12 = sphi %s1385_s12, %s1651_s12  }
   0x4   : > { %p34_p0 = scmp.ge.s32.totalorder %s32_s17, 4  ;;  %p49_p2 = scmp.eq.s32.totalorder %s1357_s16, 0 }
   0x5   : > { %s41_s20 = sadd.s32 1, %s1345_s13  ;;  %p1158_p5 = scmp.ge.s32.totalorder %s1357_s16, 4 }
   0x6   : > { %s1656_s17 = smov (%p34_p0, %s32_s17), 0  ;;  %p1416_p3 = por %p49_p2, %p48_p1 }
   0x7   : > { %s36_s19 = ssub.s32 %s1353_s15, %s1656_s17  ;;  %158 = sbr.rel (%p1158_p5) target bundleno = 33 (0x21), region = 16 }
   0x8   : > { %p39_p4 = scmp.eq.s32.totalorder %s36_s19, 0 }
   0xa   : > { %s1424_s21 = scalar_select %p39_p4, %s1345_s13, %s41_s20  }
   0xc   : > { %161 = sbr.rel (!%p1416_p3) target bundleno = 19 (0x13), region = 20  ;;  %s163_s22 = sand.u32 (%p1416_p3), 1, %s1345_s13  }
   0xd   : > { %s1206_s23 = smul.u32 (%p1416_p3), 24, %s1353_s15  ;;  %s1159_s24 = sshll.u32 (%p1416_p3), %s163_s22, 3 }
   0xe   : > { %s165_s28 = scalar_lea.vmem (%p1416_p3), [#allocation5], %s1159_s24 }
   0xf   : > { %s171_s27 = scalar_lea.vmem (%p1416_p3), %s1646_s0, %s1206_s23 }
  0x10   : > { %v188_v0 = vld [vmem:[%s171_s27] sm:$0xf] (%p1416_p3)  ;;  %v190_v1 = vld [vmem:[%s171_s27 + $0xc] sm:$0xf] (%p1416_p3) }
  0x11   : > { %189 = vst [vmem:[%s165_s28] sm:$0xf] %v188_v0 }
  0x12   : > { %191 = vst [vmem:[%s165_s28 + $0x4] sm:$0xf] %v190_v1 }
  0x13 PF: > { %219 = sbr.rel (!%p1416_p3) target bundleno = 26 (0x1a), region = 61  ;;  %s221_s29 = sand.u32 (%p1416_p3), 1, %s1345_s13  }
  0x14   : > { %s1162_s30 = smul.u32 (%p1416_p3), 24, %s1353_s15  ;;  %s1161_s4 = sshll.u32 (%p1416_p3), %s221_s29, 3 }
  0x15   : > { %s223_s8 = scalar_lea.vmem (%p1416_p3), [#allocation6], %s1161_s4 }
  0x16   : > { %s1061_s7 = scalar_lea.vmem (%p1416_p3), %s1647_s1, %s1162_s30 }
  0x17   : > { %v1163_v2 = vld [vmem:[%s1061_s7 + $0x4] sm:$0xf] (%p1416_p3)  ;;  %v1164_v3 = vld [vmem:[%s1061_s7 + $0x10] sm:$0xf] (%p1416_p3) }
  0x18   : > { %248 = vst [vmem:[%s223_s8] sm:$0xf] %v1163_v2 }
  0x19   : > { %250 = vst [vmem:[%s223_s8 + $0x4] sm:$0xf] %v1164_v3 }
  0x1a PF: > { %278 = sbr.rel (!%p1416_p3) target bundleno = 33 (0x21), region = 102  ;;  %s280_s9 = sand.u32 (%p1416_p3), 1, %s1345_s13  }
  0x1b   : > { %s1166_s10 = smul.u32 (%p1416_p3), 24, %s1353_s15  ;;  %s1165_s11 = sshll.u32 (%p1416_p3), %s280_s9, 3 }
  0x1c   : > { %s282_s23 = scalar_lea.vmem (%p1416_p3), [#allocation7], %s1165_s11 }
  0x1d   : > { %s1069_s22 = scalar_lea.vmem (%p1416_p3), %s1648_s2, %s1166_s10 }
  0x1e   : > { %v1167_v4 = vld [vmem:[%s1069_s22 + $0x8] sm:$0xf] (%p1416_p3)  ;;  %v1168_v5 = vld [vmem:[%s1069_s22 + $0x14] sm:$0xf] (%p1416_p3) }
  0x1f   : > { %307 = vst [vmem:[%s282_s23] sm:$0xf] %v1167_v4 }
  0x20   : > { %309 = vst [vmem:[%s282_s23 + $0x4] sm:$0xf] %v1168_v5 }
  0x21 PF: > { %p1169_p6 = scmp.ge.s32.totalorder %s1357_s16, 1  ;;  %p336_p7 = scmp.lt.s32.totalorder %s1357_s16, 5 }
  0x23   : > { %p337_p8 = pnand %p1169_p6, %p336_p7 }
  0x24   : > { %s343_s18 = sand.u32 (!%p337_p8), 1, %s1341_s12   ;;  %s1359_s27 = smov (!%p337_p8), 96  }
  0x25   : > { %340 = sbr.rel (%p337_p8) target bundleno = 1348 (0x544), region = 143  ;;  %s1451_s24 = sshll.u32 (!%p337_p8), %s343_s18, 3 }
  0x26   : > { %s352_s25 = scalar_lea.vmem (!%p337_p8), [#allocation6], %s1451_s24  ;;  %s345_s26 = scalar_lea.vmem (!%p337_p8), [#allocation5], %s1451_s24 }
  0x27   : > { %s1361_s12 = smov (!%p337_p8), 64   ;;  %s1364_s28 = smov (!%p337_p8), 32  }
  0x28   : > { %s359_s29 = scalar_lea.vmem (!%p337_p8), [#allocation7], %s1451_s24  ;;  %p396_p9 = scmp.lt.s32.totalorder (!%p337_p8), %s1349_s14, 3 }
  0x2a   : > { %vm427_vm0 = vcmask 261120   ;;  %v1199_v6 = vld [vmem:[%s352_s25] sm:$0xff]  ;;  %v1198_v8 = vld [vmem:[%s345_s26] sm:$0xff]  ;;  %vm410_vm1 = vcmask 7168   ;;  %v1360_v9 = vmov -inf   ;;  %vm475_vm2 = vcmask 130048  }
  0x2b   : > { %v457_v7 = vsel %vm427_vm0, %v1199_v6, 0  ;;  %567 = vrot.lane.b32.xlu1 %v1199_v6, %s1359_s27  ;;  %411 = vst.msk [vmem:[#allocation2] sm:$0xff] %vm410_vm1, %v1360_v9  ;;  %v1362_v14 = vmov 0   ;;  %v1363_v15 = vmov 0.0   ;;  %v1493_v26 = vld [vmem:[%s359_s29] sm:$0xff]  ;;  %s1658_s14 = smov (!%p396_p9, %s1349_s14), 3 }
  0x2c   : > { %466 = vmatpush.bf16.xpose.msra.mxu0 %v457_v7  ;;  %412 = vst.msk [vmem:[#allocation2 + $0x8] sm:$0xff] %vm410_vm1, %v1360_v9  ;;  %1253 = vset.pattern.permute.xlu1 %v1362_v14  ;;  %vm1008_vm3 = vcmask 523264   ;;  %s1197_s30 = sshll.u32 %s1658_s14, 3  ;;  %vm1011_vm4 = vcmask 785408  }
  0x2d   : > { %413 = vst.msk [vmem:[#allocation2 + $0x10] sm:$0xff] %vm410_vm1, %v1360_v9  ;;  %1254 = vset.pattern.permute.xlu2 %v1362_v14  ;;  %1255 = vset.pattern.permute.xlu0 %v1362_v14  ;;  %s403_s6 = scalar_lea.vmem %s1649_s3, %s1197_s30 }
  0x2e   : > { %414 = vst.msk [vmem:[#allocation2 + $0x18] sm:$0xff] %vm410_vm1, %v1360_v9  ;;  %552 = vmatpush.bf16.msra.mxu1 %v1493_v26 }
  0x2f   : > { %415 = vst.msk [vmem:[#allocation2 + $0x20] sm:$0xff] %vm410_vm1, %v1360_v9 }
  0x30   : > { %416 = vst.msk [vmem:[#allocation2 + $0x28] sm:$0xff] %vm410_vm1, %v1360_v9 }
  0x31   : > { %417 = vst.msk [vmem:[#allocation2 + $0x30] sm:$0xff] %vm410_vm1, %v1360_v9 }
  0x32   : > { %418 = vst.msk [vmem:[#allocation2 + $0x38] sm:$0xff] %vm410_vm1, %v1360_v9  ;;  %v473_v16 = vld [vmem:[#allocation2] sm:$0xff] }
  0x33   : > { %1183 = vmatmul.msk.bf16.vlgmr.msra.gmra.mxu0 %vm427_vm0, %v1198_v8  ;;  %428 = vst.msk [vmem:[#allocation4] sm:$0xff] %vm427_vm0, %v1363_v15  ;;  %v474_v20 = vld [vmem:[#allocation2 + $0x8] sm:$0xff] }
  0x34   : > { %419 = vst.msk [vmem:[#allocation3] sm:$0xff] %vm410_vm1, %v1363_v15  ;;  %v1526_v61 = vld [vmem:[#allocation2 + $0x10] sm:$0xff] }
  0x35   : > { %420 = vst.msk [vmem:[#allocation3 + $0x8] sm:$0xff] %vm410_vm1, %v1363_v15  ;;  %v1546_v9 = vld [vmem:[#allocation2 + $0x18] sm:$0xff] }
  0x36   : > { %421 = vst.msk [vmem:[#allocation3 + $0x10] sm:$0xff] %vm410_vm1, %v1363_v15 }
  0x37   : > { %422 = vst.msk [vmem:[#allocation3 + $0x18] sm:$0xff] %vm410_vm1, %v1363_v15 }
  0x38   : > { %423 = vst.msk [vmem:[#allocation3 + $0x20] sm:$0xff] %vm410_vm1, %v1363_v15  ;;  %v1536_v1 = vld [vmem:[#allocation2 + $0x30] sm:$0xff] }
  0x39   : > { %424 = vst.msk [vmem:[#allocation3 + $0x28] sm:$0xff] %vm410_vm1, %v1363_v15 }
  0x3a   : > { %425 = vst.msk [vmem:[#allocation3 + $0x30] sm:$0xff] %vm410_vm1, %v1363_v15  ;;  %v521_v2 = vld [vmem:[#allocation4] sm:$0xff] }
  0x3b   : > { %426 = vst.msk [vmem:[#allocation3 + $0x38] sm:$0xff] %vm410_vm1, %v1363_v15 }
  0x3c   : > { %429 = vst.msk [vmem:[#allocation4 + $0x8] sm:$0xff] %vm427_vm0, %v1363_v15 }
  0x3d   : > { %430 = vst.msk [vmem:[#allocation4 + $0x10] sm:$0xff] %vm427_vm0, %v1363_v15 }
  0x3e   : > { %431 = vst.msk [vmem:[#allocation4 + $0x18] sm:$0xff] %vm427_vm0, %v1363_v15 }
  0x3f   : > { %432 = vst.msk [vmem:[#allocation4 + $0x20] sm:$0xff] %vm427_vm0, %v1363_v15 }
  0x40   : > { %433 = vst.msk [vmem:[#allocation4 + $0x28] sm:$0xff] %vm427_vm0, %v1363_v15 }
  0x41   : > { %434 = vst.msk [vmem:[#allocation4 + $0x30] sm:$0xff] %vm427_vm0, %v1363_v15 }
  0x42   : > { %435 = vst.msk [vmem:[#allocation4 + $0x38] sm:$0xff] %vm427_vm0, %v1363_v15 }
  0x9d   : > { %v568_v24 = vpop.permute.xlu1 %567 }
  0x9e   : > { %v573_v25 = vsel %vm427_vm0, %v568_v24, 0 }
  0x9f   : > { %582 = vmatpush.bf16.xpose.msra.mxu2 %v573_v25 }
  0xb0   : > { %v468_v10 = vpop.f32.mrf.mxu0 }
  0xb1   : > { %v476_v11 = vsel %vm475_vm2, %v468_v10, -inf }
  0xb2   : > { %477 = vmax.xlane.f32.xlu0 %v476_v11 }
  0xb8   : > { %v470_v12 = vpop.f32.mrf.mxu0 }
  0xb9   : > { %v479_v13 = vsel %vm475_vm2, %v470_v12, -inf }
  0xba   : > { %480 = vmax.xlane.f32.xlu0 %v479_v13 }
  0xce   : > { %681 = vrot.lane.b32.xlu0 %v1199_v6, %s1361_s12 }
 0x125   : > { %v478_v17 = vpop.xlane.xlu0 %477 }
 0x126   : > { %v482_v18 = vmax.f32 %v473_v16, %v478_v17 }
 0x128   : > { %v484_v19 = vsub.f32 %v473_v16, %v482_v18  ;;  %563 = vst.msk [vmem:[#allocation2] sm:$0xff] %vm410_vm1, %v482_v18  ;;  %492 = vperm.xlu1 %1253, %v482_v18  }
 0x12a   : > { %v486_v45 = vmul.f32 1.442695, %v484_v19  ;;  %v507_v19 = vld [vmem:[#allocation3 + $0x8] sm:$0xff] }
 0x12d   : > { %v481_v21 = vpop.xlane.xlu0 %480 }
 0x12e   : > { %v483_v22 = vmax.f32 %v474_v20, %v481_v21 }
 0x130   : > { %v485_v23 = vsub.f32 %v474_v20, %v483_v22  ;;  %564 = vst.msk [vmem:[#allocation2 + $0x8] sm:$0xff] %vm410_vm1, %v483_v22  ;;  %795 = vrot.lane.b32.xlu1 %v1199_v6, %s1364_s28  ;;  %497 = vperm.xlu2 %1254, %v483_v22   ;;  %v506_v20 = vld [vmem:[#allocation3] sm:$0xff] }
 0x132   : > { %v488_v47 = vmul.f32 1.442695, %v485_v23 }
 0x138   : > { %793 = vrot.lane.b32.xlu1 %v1198_v8, %s1364_s28  ;;  %565 = vrot.lane.b32.xlu2 %v1198_v8, %s1359_s27 }
 0x140   : > { %679 = vrot.lane.b32.xlu2 %v1198_v8, %s1361_s12  ;;  %v682_v28 = vpop.permute.xlu0 %681  ;;  %v1544_v8 = vld [vmem:[#allocation2 + $0x38] sm:$0xff] }
 0x141   : > { %v687_v29 = vsel %vm427_vm0, %v682_v28, 0  ;;  %v704_v28 = vld [vmem:[#allocation2 + $0x20] sm:$0xff] }
 0x142   : > { %696 = vmatpush.bf16.xpose.msrb.mxu1 %v687_v29 }
 0x18a   : > { %v498_v27 = vpop.permute.xlu2 %497 }
 0x18b   : > { %v501_v31 = vsub.f32 %v470_v12, %v498_v27 }
 0x18d   : > { %v504_v32 = vmul.f32 1.442695, %v501_v31 }
 0x18f   : > { %1271 = vpow2.f32 %v504_v32 }
 0x192   : > { %v566_v30 = vpop.permute.xlu2 %565 }
 0x193   : > { %1189 = vmatmul.msk.bf16.vlgmr.msra.gmra.mxu2 %vm427_vm0, %v566_v30 }
 0x195   : > { %v1272_v38 = vpop.eup %1271 }
 0x196   : > { %v513_v57 = vsel %vm475_vm2, %v1272_v38, 0.0 }
 0x19a   : > { %v493_v33 = vpop.permute.xlu1 %492  ;;  %v680_v42 = vpop.permute.xlu2 %679 }
 0x19b   : > { %v500_v34 = vsub.f32 %v468_v10, %v493_v33  ;;  %v522_v10 = vld [vmem:[#allocation4 + $0x8] sm:$0xff] }
 0x19d   : > { %v502_v35 = vmul.f32 1.442695, %v500_v34 }
 0x19f   : > { %1273 = vpow2.f32 %v502_v35 }
 0x1a0   : > { %1275 = vpow2.f32 %v486_v45 }
 0x1a1   : > { %1277 = vpow2.f32 %v488_v47 }
 0x1a2   : > { %v796_v36 = vpop.permute.xlu1 %795 }
 0x1a3   : > { %v801_v37 = vsel %vm427_vm0, %v796_v36, 0 }
 0x1a4   : > { %810 = vmatpush.bf16.xpose.msrb.mxu0 %v801_v37 }
 0x1a5   : > { %v1274_v39 = vpop.eup %1273 }
 0x1a6   : > { %v535_v40 = vpack.c.bf16 %v1272_v38, %v1274_v39  ;;  %v1276_v50 = vpop.eup %1275  ;;  %v510_v58 = vsel %vm475_vm2, %v1274_v39, 0.0 }
 0x1a7   : > { %v1278_v55 = vpop.eup %1277  ;;  %v508_v22 = vmul.f32 %v1276_v50, %v506_v20 }
 0x1a8   : > { %1188 = vmatmul.msk.bf16.vlgmr.msra.gmra.mxu1 %vm475_vm2, %v535_v40  ;;  %v509_v21 = vmul.f32 %v1278_v55, %v507_v19 }
 0x1aa   : > { %v794_v41 = vpop.permute.xlu1 %793 }
 0x1ab   : > { %1193 = vmatmul.msk.bf16.vlgmr.msrb.gmra.mxu0 %vm427_vm0, %v794_v41 }
 0x1b8   : > { %1191 = vmatmul.msk.bf16.vlgmr.msrb.gmra.mxu1 %vm427_vm0, %v680_v42 }
 0x216   : > { %v1502_v43 = vpop.f32.mrf.mxu2 }
 0x217   : > { %v592_v44 = vsel %vm475_vm2, %v1502_v43, -inf }
 0x218   : > { %593 = vmax.xlane.f32.xlu0 %v592_v44 }
 0x21e   : > { %v1510_v51 = vpop.f32.mrf.mxu2 }
 0x21f   : > { %v595_v54 = vsel %vm475_vm2, %v1510_v51, -inf }
 0x225   : > { %v554_v49 = vpop.f32.mrf.mxu1 }
 0x228   : > { %v1506_v46 = vpop.f32.mrf.mxu0 }
 0x229   : > { %v820_v48 = vsel %vm475_vm2, %v1506_v46, -inf }
 0x22a   : > { %821 = vmax.xlane.f32.xlu2 %v820_v48 }
 0x22c   : > { %525 = vperm.xlu0 %1255, %v1276_v50  }
 0x22d   : > { %v556_v56 = vpop.f32.mrf.mxu1 }
 0x230   : > { %v1512_v52 = vpop.f32.mrf.mxu0 }
 0x231   : > { %v823_v53 = vsel %vm475_vm2, %v1512_v52, -inf }
 0x232   : > { %824 = vmax.xlane.f32.xlu1 %v823_v53  ;;  %596 = vmax.xlane.f32.xlu2 %v595_v54 }
 0x234   : > { %530 = vperm.xlu0 %1255, %v1278_v55  }
 0x235   : > { %v1520_v59 = vpop.f32.mrf.mxu1 }
 0x236   : > { %v706_v60 = vsel %vm475_vm2, %v1520_v59, -inf }
 0x23a   : > { %514 = vadd.xlane.f32.xlu1 %v513_v57  ;;  %511 = vadd.xlane.f32.xlu2 %v510_v58 }
 0x23c   : > { %653 = vrot.lane.b32.xlu0 %v1493_v26, %s1359_s27 }
 0x23d   : > { %v1560_v32 = vpop.f32.mrf.mxu1 }
 0x23e   : > { %v709_v33 = vsel %vm475_vm2, %v1560_v32, -inf }
 0x242   : > { %707 = vmax.xlane.f32.xlu2 %v706_v60 }
 0x28b   : > { %v594_v62 = vpop.xlane.xlu0 %593 }
 0x28c   : > { %v1529_v63 = vmax.f32 %v1526_v61, %v594_v62  ;;  %v623_v62 = vld [vmem:[#allocation3 + $0x10] sm:$0xff] }
 0x28e   : > { %v600_v0 = vsub.f32 %v1526_v61, %v1529_v63  ;;  %677 = vst.msk [vmem:[#allocation2 + $0x10] sm:$0xff] %vm410_vm1, %v1529_v63  ;;  %608 = vperm.xlu2 %1254, %v1529_v63  }
 0x29d   : > { %v822_v3 = vpop.xlane.xlu2 %821 }
 0x29e   : > { %v1539_v4 = vmax.f32 %v1536_v1, %v822_v3  ;;  %v526_v5 = vpop.permute.xlu0 %525 }
 0x29f   : > { %v533_v6 = vmul.f32 %v526_v5, %v521_v2 }
 0x2a0   : > { %905 = vst.msk [vmem:[#allocation2 + $0x30] sm:$0xff] %vm410_vm1, %v1539_v4  ;;  %v828_v60 = vsub.f32 %v1536_v1, %v1539_v4 }
 0x2a1   : > { %v559_v7 = vadd.f32 %v554_v49, %v533_v6  ;;  %v705_v49 = vld [vmem:[#allocation2 + $0x28] sm:$0xff] }
 0x2a2   : > { %v830_v2 = vmul.f32 1.442695, %v828_v60 }
 0x2a3   : > { %561 = vst.msk [vmem:[#allocation4] sm:$0xff] %vm427_vm0, %v559_v7 }
 0x2a5   : > { %v825_v11 = vpop.xlane.xlu1 %824  ;;  %v597_v12 = vpop.xlane.xlu2 %596 }
 0x2a6   : > { %v1549_v13 = vmax.f32 %v1544_v8, %v825_v11  ;;  %v599_v14 = vmax.f32 %v1546_v9, %v597_v12  ;;  %v531_v15 = vpop.permute.xlu0 %530 }
 0x2a7   : > { %v534_v16 = vmul.f32 %v531_v15, %v522_v10 }
 0x2a8   : > { %906 = vst.msk [vmem:[#allocation2 + $0x38] sm:$0xff] %vm410_vm1, %v1549_v13  ;;  %v601_v17 = vsub.f32 %v1546_v9, %v599_v14  ;;  %613 = vperm.xlu1 %1253, %v599_v14   ;;  %v829_v12 = vsub.f32 %v1544_v8, %v1549_v13 }
 0x2a9   : > { %678 = vst.msk [vmem:[#allocation2 + $0x18] sm:$0xff] %vm410_vm1, %v599_v14  ;;  %v560_v18 = vadd.f32 %v556_v56, %v534_v16 }
 0x2aa   : > { %v604_v54 = vmul.f32 1.442695, %v601_v17  ;;  %v832_v14 = vmul.f32 1.442695, %v829_v12 }
 0x2ab   : > { %562 = vst.msk [vmem:[#allocation4 + $0x8] sm:$0xff] %vm427_vm0, %v560_v18  ;;  %v624_v18 = vld [vmem:[#allocation3 + $0x18] sm:$0xff] }
 0x2ad   : > { %v515_v23 = vpop.xlane.xlu1 %514  ;;  %v512_v24 = vpop.xlane.xlu2 %511 }
 0x2ae   : > { %v517_v25 = vadd.f32 %v515_v23, %v509_v21  ;;  %v516_v27 = vadd.f32 %v512_v24, %v508_v22  ;;  %v654_v39 = vpop.permute.xlu0 %653 }
 0x2af   : > { %666 = vmatpush.bf16.msra.mxu3 %v654_v39 }
 0x2b0   : > { %520 = vst.msk [vmem:[#allocation3 + $0x8] sm:$0xff] %vm410_vm1, %v517_v25 }
 0x2b1   : > { %519 = vst.msk [vmem:[#allocation3] sm:$0xff] %vm410_vm1, %v516_v27 }
 0x2b5   : > { %v708_v29 = vpop.xlane.xlu2 %707 }
 0x2b6   : > { %v712_v30 = vmax.f32 %v704_v28, %v708_v29 }
 0x2b8   : > { %v714_v31 = vsub.f32 %v704_v28, %v712_v30  ;;  %791 = vst.msk [vmem:[#allocation2 + $0x20] sm:$0xff] %vm410_vm1, %v712_v30  ;;  %v910_v16 = vld [vmem:[#allocation3] sm:$0xff] }
 0x2ba   : > { %v716_v40 = vmul.f32 1.442695, %v714_v31 }
 0x2d2   : > { %710 = vmax.xlane.f32.xlu1 %v709_v33 }
 0x2e8   : > { %v609_v34 = vpop.permute.xlu2 %608 }
 0x2e9   : > { %v616_v35 = vsub.f32 %v1502_v43, %v609_v34 }
 0x2eb   : > { %v618_v36 = vmul.f32 1.442695, %v616_v35  ;;  %722 = vperm.xlu1 %1253, %v712_v30   ;;  %v638_v35 = vld [vmem:[#allocation4 + $0x10] sm:$0xff] }
 0x2ed   : > { %1279 = vpow2.f32 %v618_v36 }
 0x2ee   : > { %1281 = vpow2.f32 %v716_v40 }
 0x2f3   : > { %v1280_v37 = vpop.eup %1279  ;;  %836 = vperm.xlu1 %1253, %v1539_v4  }
 0x2f4   : > { %v627_v38 = vsel %vm475_vm2, %v1280_v37, 0.0  ;;  %v1569_v41 = vpop.eup %1281 }
 0x2f5   : > { %628 = vadd.xlane.f32.xlu2 %v627_v38 }
 0x2fb   : > { %767 = vrot.lane.b32.xlu1 %v1493_v26, %s1361_s12 }
 0x30d   : > { %756 = vperm.xlu2 %1254, %v1569_v41  }
 0x31a   : > { %v614_v42 = vpop.permute.xlu1 %613 }
 0x31b   : > { %v617_v43 = vsub.f32 %v1510_v51, %v614_v42  ;;  %v602_v51 = vmul.f32 1.442695, %v600_v0  ;;  %v639_v42 = vld [vmem:[#allocation4 + $0x18] sm:$0xff] }
 0x31d   : > { %v620_v44 = vmul.f32 1.442695, %v617_v43  ;;  %v737_v43 = vld [vmem:[#allocation3 + $0x20] sm:$0xff] }
 0x31f   : > { %1283 = vpow2.f32 %v620_v44 }
 0x320   : > { %1285 = vpow2.f32 %v602_v51 }
 0x321   : > { %1287 = vpow2.f32 %v604_v54 }
 0x325   : > { %v1284_v45 = vpop.eup %1283 }
 0x326   : > { %v630_v47 = vsel %vm475_vm2, %v1284_v45, 0.0  ;;  %v652_v48 = vpack.c.bf16 %v1284_v45, %v1280_v37  ;;  %v1286_v57 = vpop.eup %1285 }
 0x327   : > { %631 = vadd.xlane.f32.xlu1 %v630_v47  ;;  %v1288_v0 = vpop.eup %1287 }
 0x328   : > { %1190 = vmatmul.msk.bf16.vlgmr.msra.gmra.mxu3 %vm475_vm2, %v652_v48  ;;  %v626_v19 = vmul.f32 %v1288_v0, %v624_v18 }
 0x345   : > { %v711_v50 = vpop.xlane.xlu1 %710 }
 0x346   : > { %v713_v53 = vmax.f32 %v705_v49, %v711_v50 }
 0x348   : > { %792 = vst.msk [vmem:[#allocation2 + $0x28] sm:$0xff] %vm410_vm1, %v713_v53  ;;  %727 = vperm.xlu0 %1255, %v713_v53   ;;  %v715_v10 = vsub.f32 %v705_v49, %v713_v53  ;;  %v739_v49 = vmul.f32 %v1569_v41, %v737_v43 }
 0x34a   : > { %v718_v11 = vmul.f32 1.442695, %v715_v10  ;;  %v752_v10 = vld [vmem:[#allocation4 + $0x20] sm:$0xff] }
 0x350   : > { %841 = vperm.xlu0 %1255, %v1549_v13  }
 0x358   : > { %881 = vrot.lane.b32.xlu0 %v1493_v26, %s1364_s28  ;;  %v625_v26 = vmul.f32 %v1286_v57, %v623_v62 }
 0x35d   : > { %v723_v55 = vpop.permute.xlu1 %722 }
 0x35e   : > { %v730_v56 = vsub.f32 %v1520_v59, %v723_v55  ;;  %v851_v55 = vld [vmem:[#allocation3 + $0x30] sm:$0xff] }
 0x360   : > { %v732_v58 = vmul.f32 1.442695, %v730_v56  ;;  %642 = vperm.xlu0 %1255, %v1286_v57  }
 0x362   : > { %1289 = vpow2.f32 %v732_v58 }
 0x363   : > { %1291 = vpow2.f32 %v830_v2 }
 0x365   : > { %v837_v61 = vpop.permute.xlu1 %836 }
 0x366   : > { %v844_v63 = vsub.f32 %v1506_v46, %v837_v61  ;;  %v911_v61 = vld [vmem:[#allocation3 + $0x8] sm:$0xff] }
 0x368   : > { %v1290_v3 = vpop.eup %1289  ;;  %v846_v5 = vmul.f32 1.442695, %v844_v63  ;;  %v629_v6 = vpop.xlane.xlu2 %628  ;;  %647 = vperm.xlu0 %1255, %v1288_v0  }
 0x369   : > { %v633_v59 = vadd.f32 %v629_v6, %v625_v26  ;;  %v741_v7 = vsel %vm475_vm2, %v1290_v3, 0.0  ;;  %v1588_v4 = vpop.eup %1291 }
 0x36a   : > { %1293 = vpow2.f32 %v846_v5  ;;  %742 = vadd.xlane.f32.xlu2 %v741_v7  ;;  %v853_v56 = vmul.f32 %v1588_v4, %v851_v55  ;;  %v852_v7 = vld [vmem:[#allocation3 + $0x38] sm:$0xff] }
 0x36b   : > { %635 = vst.msk [vmem:[#allocation3 + $0x10] sm:$0xff] %vm410_vm1, %v633_v59  ;;  %1295 = vpow2.f32 %v718_v11 }
 0x36c   : > { %1297 = vpow2.f32 %v832_v14 }
 0x36d   : > { %v768_v1 = vpop.permute.xlu1 %767  ;;  %1299 = vrcp.f32 %v910_v16 }
 0x36e   : > { %780 = vmatpush.bf16.msrb.mxu3 %v768_v1 }
 0x370   : > { %v1294_v9 = vpop.eup %1293  ;;  %870 = vperm.xlu0 %1255, %v1588_v4   ;;  %v757_v39 = vpop.permute.xlu2 %756 }
 0x371   : > { %v855_v46 = vsel %vm475_vm2, %v1294_v9, 0.0  ;;  %v1594_v15 = vpop.eup %1295  ;;  %v764_v11 = vmul.f32 %v757_v39, %v752_v10 }
 0x372   : > { %856 = vadd.xlane.f32.xlu1 %v855_v46  ;;  %v1597_v17 = vpop.eup %1297 }
 0x373   : > { %v1300_v20 = vpop.eup %1299  ;;  %v854_v1 = vmul.f32 %v1597_v17, %v852_v7 }
 0x38b   : > { %761 = vperm.xlu1 %1253, %v1594_v15  }
 0x393   : > { %875 = vperm.xlu1 %1253, %v1597_v17  }
 0x39a   : > { %v632_v21 = vpop.xlane.xlu1 %631 }
 0x39b   : > { %v634_v22 = vadd.f32 %v632_v21, %v626_v19  ;;  %918 = vperm.xlu1 %1253, %v1300_v20   ;;  %v866_v19 = vld [vmem:[#allocation4 + $0x30] sm:$0xff]  ;;  %v753_v20 = vld [vmem:[#allocation4 + $0x28] sm:$0xff] }
 0x39d   : > { %636 = vst.msk [vmem:[#allocation3 + $0x18] sm:$0xff] %vm410_vm1, %v634_v22 }
 0x3a4   : > { %v929_v51 = vld [vmem:[#allocation3 + $0x18] sm:$0xff] }
 0x3ab   : > { %v668_v36 = vpop.f32.mrf.mxu3 }
 0x3b3   : > { %v670_v48 = vpop.f32.mrf.mxu3 }
 0x3ba   : > { %v728_v8 = vpop.permute.xlu0 %727 }
 0x3bb   : > { %v731_v13 = vsub.f32 %v1560_v32, %v728_v8 }
 0x3bd   : > { %v734_v23 = vmul.f32 1.442695, %v731_v13 }
 0x3bf   : > { %1301 = vpow2.f32 %v734_v23 }
 0x3c2   : > { %v842_v24 = vpop.permute.xlu0 %841 }
 0x3c3   : > { %v845_v25 = vsub.f32 %v1512_v52, %v842_v24  ;;  %v928_v52 = vld [vmem:[#allocation3 + $0x10] sm:$0xff] }
 0x3c5   : > { %v1302_v27 = vpop.eup %1301  ;;  %v848_v28 = vmul.f32 1.442695, %v845_v25 }
 0x3c6   : > { %v744_v29 = vsel %vm475_vm2, %v1302_v27, 0.0  ;;  %v766_v30 = vpack.c.bf16 %v1302_v27, %v1290_v3  ;;  %v738_v3 = vld [vmem:[#allocation3 + $0x28] sm:$0xff] }
 0x3c7   : > { %1303 = vpow2.f32 %v848_v28  ;;  %745 = vadd.xlane.f32.xlu0 %v744_v29  ;;  %v740_v5 = vmul.f32 %v1594_v15, %v738_v3 }
 0x3c8   : > { %1192 = vmatmul.msk.bf16.vlgmr.msrb.gmra.mxu3 %vm475_vm2, %v766_v30  ;;  %1305 = vrcp.f32 %v928_v52  ;;  %v867_v30 = vld [vmem:[#allocation4 + $0x38] sm:$0xff] }
 0x3c9   : > { %1307 = vrcp.f32 %v929_v51 }
 0x3ca   : > { %v882_v31 = vpop.permute.xlu0 %881 }
 0x3cb   : > { %894 = vmatpush.bf16.msrb.mxu2 %v882_v31 }
 0x3cd   : > { %v1304_v33 = vpop.eup %1303 }
 0x3ce   : > { %v858_v34 = vsel %vm475_vm2, %v1304_v33, 0.0  ;;  %v880_v32 = vpack.c.bf16 %v1304_v33, %v1294_v9  ;;  %v1306_v44 = vpop.eup %1305 }
 0x3cf   : > { %859 = vadd.xlane.f32.xlu2 %v858_v34  ;;  %v1308_v58 = vpop.eup %1307 }
 0x3d0   : > { %1194 = vmatmul.msk.bf16.vlgmr.msrb.gmra.mxu2 %vm475_vm2, %v880_v32 }
 0x3d2   : > { %v643_v37 = vpop.permute.xlu0 %642 }
 0x3d3   : > { %v650_v38 = vmul.f32 %v643_v37, %v638_v35 }
 0x3d5   : > { %v673_v40 = vadd.f32 %v668_v36, %v650_v38 }
 0x3d7   : > { %675 = vst.msk [vmem:[#allocation4 + $0x10] sm:$0xff] %vm427_vm0, %v673_v40 }
 0x3da   : > { %v648_v45 = vpop.permute.xlu0 %647 }
 0x3db   : > { %v651_v47 = vmul.f32 %v648_v45, %v639_v42  ;;  %936 = vperm.xlu0 %1255, %v1306_v44  }
 0x3dd   : > { %v674_v50 = vadd.f32 %v670_v48, %v651_v47  ;;  %v743_v53 = vpop.xlane.xlu2 %742 }
 0x3de   : > { %v747_v54 = vadd.f32 %v743_v53, %v739_v49  ;;  %v932_v28 = vld [vmem:[#allocation4 + $0x10] sm:$0xff] }
 0x3df   : > { %676 = vst.msk [vmem:[#allocation4 + $0x18] sm:$0xff] %vm427_vm0, %v674_v50 }
 0x3e0   : > { %749 = vst.msk [vmem:[#allocation3 + $0x20] sm:$0xff] %vm410_vm1, %v747_v54 }
 0x3e2   : > { %v871_v26 = vpop.permute.xlu0 %870 }
 0x3e3   : > { %v878_v17 = vmul.f32 %v871_v26, %v866_v19 }
 0x3e5   : > { %v857_v57 = vpop.xlane.xlu1 %856 }
 0x3e6   : > { %v861_v60 = vadd.f32 %v857_v57, %v853_v56  ;;  %v933_v33 = vld [vmem:[#allocation4 + $0x18] sm:$0xff] }
 0x3e7   : > { %941 = vperm.xlu2 %1254, %v1308_v58   ;;  %v946_v62 = vld [vmem:[#allocation3 + $0x20] sm:$0xff] }
 0x3e8   : > { %863 = vst.msk [vmem:[#allocation3 + $0x30] sm:$0xff] %vm410_vm1, %v861_v60  ;;  %1309 = vrcp.f32 %v946_v62  ;;  %v914_v62 = vld [vmem:[#allocation4] sm:$0xff] }
 0x3ee   : > { %v1310_v41 = vpop.eup %1309 }
 0x3ef   : > { %954 = vperm.xlu1 %1253, %v1310_v41   ;;  %v964_v2 = vld [vmem:[#allocation3 + $0x30] sm:$0xff]  ;;  %v915_v41 = vld [vmem:[#allocation4 + $0x8] sm:$0xff] }
 0x3f0   : > { %1311 = vrcp.f32 %v964_v2 }
 0x3f1   : > { %1313 = vrcp.f32 %v911_v61 }
 0x3f6   : > { %v1312_v63 = vpop.eup %1311 }
 0x3f7   : > { %972 = vperm.xlu1 %1253, %v1312_v63   ;;  %v1314_v0 = vpop.eup %1313 }
 0x3fd   : > { %v762_v18 = vpop.permute.xlu1 %761 }
 0x3fe   : > { %v765_v21 = vmul.f32 %v762_v18, %v753_v20 }
 0x3ff   : > { %923 = vperm.xlu1 %1253, %v1314_v0  }
 0x405   : > { %v876_v31 = vpop.permute.xlu1 %875 }
 0x406   : > { %v879_v32 = vmul.f32 %v876_v31, %v867_v30 }
 0x40d   : > { %v919_v37 = vpop.permute.xlu1 %918 }
 0x40e   : > { %v926_v63 = vmul.f32 %v919_v37, %v914_v62 }
 0x43a   : > { %v746_v6 = vpop.xlane.xlu0 %745 }
 0x43b   : > { %v748_v59 = vadd.f32 %v746_v6, %v740_v5 }
 0x43d   : > { %750 = vst.msk [vmem:[#allocation3 + $0x28] sm:$0xff] %vm410_vm1, %v748_v59 }
 0x442   : > { %v860_v4 = vpop.xlane.xlu2 %859 }
 0x443   : > { %v862_v9 = vadd.f32 %v860_v4, %v854_v1 }
 0x444   : > { %v947_v46 = vld [vmem:[#allocation3 + $0x28] sm:$0xff] }
 0x445   : > { %864 = vst.msk [vmem:[#allocation3 + $0x38] sm:$0xff] %vm410_vm1, %v862_v9  ;;  %1315 = vrcp.f32 %v947_v46 }
 0x44a   : > { %v942_v27 = vpop.permute.xlu2 %941 }
 0x44b   : > { %v1316_v12 = vpop.eup %1315  ;;  %v782_v14 = vpop.f32.mrf.mxu3  ;;  %v945_v34 = vmul.f32 %v942_v27, %v933_v33 }
 0x44c   : > { %v787_v16 = vadd.f32 %v782_v14, %v764_v11  ;;  %959 = vperm.xlu0 %1255, %v1316_v12   ;;  %v965_v15 = vld [vmem:[#allocation3 + $0x38] sm:$0xff] }
 0x44d   : > { %1317 = vrcp.f32 %v965_v15  ;;  %v937_v22 = vpop.permute.xlu0 %936 }
 0x44e   : > { %789 = vst.msk [vmem:[#allocation4 + $0x20] sm:$0xff] %vm427_vm0, %v787_v16  ;;  %v944_v29 = vmul.f32 %v937_v22, %v932_v28 }
 0x450   : > { %v1256_v35 = vpack.i.bf16 %v945_v34, %v944_v29 }
 0x453   : > { %v1318_v8 = vpop.eup %1317  ;;  %v784_v13 = vpop.f32.mrf.mxu3 }
 0x454   : > { %v896_v23 = vpop.f32.mrf.mxu2  ;;  %v788_v24 = vadd.f32 %v784_v13, %v765_v21  ;;  %977 = vperm.xlu0 %1255, %v1318_v8  }
 0x455   : > { %v901_v25 = vadd.f32 %v896_v23, %v878_v17  ;;  %v950_v39 = vld [vmem:[#allocation4 + $0x20] sm:$0xff] }
 0x456   : > { %790 = vst.msk [vmem:[#allocation4 + $0x28] sm:$0xff] %vm427_vm0, %v788_v24 }
 0x457   : > { %903 = vst.msk [vmem:[#allocation4 + $0x30] sm:$0xff] %vm427_vm0, %v901_v25 }
 0x45c   : > { %v898_v52 = vpop.f32.mrf.mxu2  ;;  %1257 = vrot.lane.b32.xlu0 %v1256_v35, %s1364_s28 }
 0x45d   : > { %v902_v36 = vadd.f32 %v898_v52, %v879_v32  ;;  %v951_v40 = vld [vmem:[#allocation4 + $0x28] sm:$0xff] }
 0x45e   : > { %v968_v48 = vld [vmem:[#allocation4 + $0x30] sm:$0xff] }
 0x45f   : > { %904 = vst.msk [vmem:[#allocation4 + $0x38] sm:$0xff] %vm427_vm0, %v902_v36 }
 0x461   : > { %v955_v38 = vpop.permute.xlu1 %954 }
 0x462   : > { %v962_v43 = vmul.f32 %v955_v38, %v950_v39 }
 0x466   : > { %v969_v49 = vld [vmem:[#allocation4 + $0x38] sm:$0xff] }
 0x469   : > { %v973_v47 = vpop.permute.xlu1 %972 }
 0x46a   : > { %v980_v53 = vmul.f32 %v973_v47, %v968_v48 }
 0x471   : > { %v924_v55 = vpop.permute.xlu1 %923 }
 0x472   : > { %v927_v0 = vmul.f32 %v924_v55, %v915_v41 }
 0x4be   : > { %v960_v42 = vpop.permute.xlu0 %959 }
 0x4bf   : > { %v963_v44 = vmul.f32 %v960_v42, %v951_v40 }
 0x4c1   : > { %v1261_v45 = vpack.i.bf16 %v963_v44, %v962_v43 }
 0x4c3   : > { %1262 = vrot.lane.b32.xlu2 %v1261_v45, %s1361_s12 }
 0x4c6   : > { %v978_v50 = vpop.permute.xlu0 %977 }
 0x4c7   : > { %v981_v51 = vmul.f32 %v978_v50, %v969_v49 }
 0x4c9   : > { %v1266_v54 = vpack.i.bf16 %v981_v51, %v980_v53 }
 0x4cb   : > { %1267 = vrot.lane.b32.xlu1 %v1266_v54, %s1359_s27 }
 0x4ce   : > { %v1258_v56 = vpop.permute.xlu0 %1257 }
 0x4cf   : > { %v1260_v58 = vunpack.i.h.bf16 %v1258_v56  ;;  %v1259_v60 = vunpack.i.l.bf16 %v1258_v56 }
 0x4d1   : > { %v1007_v3 = vsel %vm427_vm0, %v927_v0, %v1260_v58  ;;  %v1006_v5 = vsel %vm427_vm0, %v926_v63, %v1259_v60 }
 0x51d   : > { %v1263_v57 = vpop.permute.xlu2 %1262 }
 0x51e   : > { %v1265_v2 = vunpack.i.h.bf16 %v1263_v57  ;;  %v1264_v61 = vunpack.i.l.bf16 %v1263_v57 }
 0x520   : > { %v1009_v7 = vsel %vm1008_vm3, %v1006_v5, %v1264_v61  ;;  %v1010_v1 = vsel %vm1008_vm3, %v1007_v3, %v1265_v2 }
 0x53d   : > { %v1268_v26 = vpop.permute.xlu1 %1267 }
 0x53e   : > { %v1270_v6 = vunpack.i.h.bf16 %v1268_v26  ;;  %v1269_v59 = vunpack.i.l.bf16 %v1268_v26 }
 0x540   : > { %v1012_v4 = vsel %vm1011_vm4, %v1009_v7, %v1269_v59  ;;  %v1013_v9 = vsel %vm1011_vm4, %v1010_v1, %v1270_v6 }
 0x541   : > { %v1204_v46 = vpack.c.bf16 %v1013_v9, %v1012_v4 }
 0x543   : > { %1205 = vst [vmem:[%s403_s6] sm:$0xff] %v1204_v46  }
 0x544 PF: > { %s13_s16 = sadd.s32 1, %s1357_s16   ;;  %s1651_s12 = smov %s1345_s13 }
 0x545   : > { %p10_p10 = scmp.ge.s32.totalorder %s13_s16, 6   ;;  %s1652_s13 = smov %s1424_s21 }
 0x546   : > { %s1653_s14 = smov %s1353_s15  ;;  %s1654_s15 = smov %s1656_s17 }
 0x547   :  { %12 = sbr.rel (!%p10_p10) target bundleno = 3 (0x3), region = 223 }

// kernel: transformer_decoder_layer.12
= control target key start
LH: loop header
LB: loop body
LE: loop exit
PB: predicated region body
PF: predicated region fallthrough
CT: control target
= control target key end

     0   :  { %s788_s12 = smov 0   ;;  %s790_s13 = smov 0   ;;  %s930_s0 = inlined_call_operand.vmem [shape: f32[64,128], index: 0, kind: input, shape index: {}]   ;;  %s931_s1 = inlined_call_operand.vmem [shape: bf16[128,256], index: 1, kind: input, shape index: {}]   ;;  %s932_s2 = inlined_call_operand.vmem [shape: f32[1,256], index: 2, kind: input, shape index: {}]   ;;  %s933_s3 = inlined_call_operand.vmem [shape: bf16[64,256], index: 3, kind: output, shape index: {}]  }
   0x1   :  { %s792_s14 = smov 0  }
   0x2 LB: > { %s32_s15 = sadd.s32 1, %s762_s13  ;;  %p615_p0 = scmp.ge.s32.totalorder %s766_s14, 1  ;;  %s766_s14 = sphi %s792_s14, %s13_s14   ;;  %s762_s13 = sphi %s790_s13, %s935_s13   ;;  %s758_s12 = sphi %s788_s12, %s934_s12  }
   0x3   : > { %p34_p1 = scmp.ge.s32.totalorder %s32_s15, 2  ;;  %p193_p2 = scmp.lt.s32.totalorder %s766_s14, 3 }
   0x5   : > { %s937_s15 = smov (%p34_p1, %s32_s15), 0  ;;  %p194_p3 = pnand %p615_p0, %p193_p2 }
   0x6   : > { %s616_s25 = sshll.u32 (!%p194_p3), %s758_s12, 2 }
   0x7   : > { %197 = sbr.rel (%p194_p3) target bundleno = 192 (0xc0), region = 32  ;;  %p240_p4 = scmp.lt.s32.totalorder (!%p194_p3), %s616_s25, 7 }
   0xc   : > { %v679_v0 = vld [vmem:[%s931_s1 + $0x70] sm:$0xf]  ;;  %v703_v1 = vld [vmem:[%s931_s1 + $0x74] sm:$0xf0]  ;;  %v702_v2 = vld [vmem:[%s931_s1 + $0x74] sm:$0xf] }
   0xd   : > { %v680_v3 = vor.u32 %v703_v1, %v679_v0  ;;  %v681_v4 = vld [vmem:[%s931_s1 + $0x78] sm:$0xf0]  ;;  %v671_v5 = vld [vmem:[%s931_s1 + $0x60] sm:$0xf]  ;;  %v701_v6 = vld [vmem:[%s931_s1 + $0x64] sm:$0xf0] }
   0xe   : > { %v684_v7 = vor.u32 %v702_v2, %v681_v4  ;;  %v700_v8 = vld [vmem:[%s931_s1 + $0x64] sm:$0xf]  ;;  %v673_v9 = vld [vmem:[%s931_s1 + $0x68] sm:$0xf0]  ;;  %v672_v10 = vor.u32 %v701_v6, %v671_v5  ;;  %v663_v12 = vld [vmem:[%s931_s1 + $0x50] sm:$0xf] }
   0xf   : > { %399 = vmatpush.bf16.msra.mxu0 %v680_v3  ;;  %704 = vmatpush.bf16.msra.mxu2 %v680_v3  ;;  %v676_v11 = vor.u32 %v700_v8, %v673_v9  ;;  %v699_v13 = vld [vmem:[%s931_s1 + $0x54] sm:$0xf0]  ;;  %v698_v14 = vld [vmem:[%s931_s1 + $0x54] sm:$0xf]  ;;  %v665_v15 = vld [vmem:[%s931_s1 + $0x58] sm:$0xf0] }
  0x10   : > { %418 = vmatpush.bf16.msra.mxu1 %v684_v7  ;;  %712 = vmatpush.bf16.msra.mxu3 %v684_v7  ;;  %v664_v16 = vor.u32 %v699_v13, %v663_v12  ;;  %v668_v17 = vor.u32 %v698_v14, %v665_v15  ;;  %v655_v18 = vld [vmem:[%s931_s1 + $0x40] sm:$0xf]  ;;  %v697_v19 = vld [vmem:[%s931_s1 + $0x44] sm:$0xf0]  ;;  %v696_v20 = vld [vmem:[%s931_s1 + $0x44] sm:$0xf] }
  0x11   : > { %v657_v21 = vld [vmem:[%s931_s1 + $0x48] sm:$0xf0]  ;;  %v656_v22 = vor.u32 %v697_v19, %v655_v18  ;;  %v647_v24 = vld [vmem:[%s931_s1 + $0x30] sm:$0xf]  ;;  %v695_v25 = vld [vmem:[%s931_s1 + $0x34] sm:$0xf0] }
  0x12   : > { %v660_v23 = vor.u32 %v696_v20, %v657_v21  ;;  %v694_v26 = vld [vmem:[%s931_s1 + $0x34] sm:$0xf]  ;;  %v649_v27 = vld [vmem:[%s931_s1 + $0x38] sm:$0xf0]  ;;  %v648_v28 = vor.u32 %v695_v25, %v647_v24  ;;  %v639_v30 = vld [vmem:[%s931_s1 + $0x20] sm:$0xf] }
  0x13   : > { %400 = vmatpush.bf16.msra.mxu0 %v672_v10  ;;  %705 = vmatpush.bf16.msra.mxu2 %v672_v10  ;;  %v652_v29 = vor.u32 %v694_v26, %v649_v27  ;;  %v693_v31 = vld [vmem:[%s931_s1 + $0x24] sm:$0xf0]  ;;  %s939_s25 = smov (!%p240_p4, %s616_s25), 7  ;;  %v692_v32 = vld [vmem:[%s931_s1 + $0x24] sm:$0xf] }
  0x14   : > { %419 = vmatpush.bf16.msra.mxu1 %v676_v11  ;;  %713 = vmatpush.bf16.msra.mxu3 %v676_v11  ;;  %v641_v33 = vld [vmem:[%s931_s1 + $0x28] sm:$0xf0]  ;;  %v640_v34 = vor.u32 %v693_v31, %v639_v30  ;;  %v631_v36 = vld [vmem:[%s931_s1 + $0x10] sm:$0xf]  ;;  %v691_v37 = vld [vmem:[%s931_s1 + $0x14] sm:$0xf0] }
  0x15   : > { %v644_v35 = vor.u32 %v692_v32, %v641_v33  ;;  %s617_s22 = sshll.u32 %s939_s25, 3  ;;  %v690_v38 = vld [vmem:[%s931_s1 + $0x14] sm:$0xf]  ;;  %v633_v39 = vld [vmem:[%s931_s1 + $0x18] sm:$0xf0]  ;;  %v632_v40 = vor.u32 %v691_v37, %v631_v36 }
  0x16   : > { %s246_s30 = scalar_lea.vmem %s930_s0, %s617_s22  ;;  %v636_v41 = vor.u32 %v690_v38, %v633_v39  ;;  %v623_v42 = vld [vmem:[%s931_s1] sm:$0xf]  ;;  %v689_v43 = vld [vmem:[%s931_s1 + $0x4] sm:$0xf0]  ;;  %v688_v44 = vld [vmem:[%s931_s1 + $0x4] sm:$0xf]  ;;  %s274_s19 = scalar_lea.vmem %s933_s3, %s617_s22 }
  0x17   : > { %401 = vmatpush.bf16.msra.mxu0 %v664_v16  ;;  %706 = vmatpush.bf16.msra.mxu2 %v664_v16  ;;  %v625_v45 = vld [vmem:[%s931_s1 + $0x8] sm:$0xf0]  ;;  %v289_v46 = vld [vmem:[%s246_s30] sm:$0xff]  ;;  %v624_v47 = vor.u32 %v689_v43, %v623_v42  ;;  %v291_v49 = vld [vmem:[%s246_s30 + $0x10] sm:$0xff] }
  0x18   : > { %420 = vmatpush.bf16.msra.mxu1 %v668_v17  ;;  %714 = vmatpush.bf16.msra.mxu3 %v668_v17  ;;  %v290_v48 = vld [vmem:[%s246_s30 + $0x8] sm:$0xff]  ;;  %v292_v50 = vld [vmem:[%s246_s30 + $0x18] sm:$0xff]  ;;  %v628_v51 = vor.u32 %v688_v44, %v625_v45  ;;  %v464_v54 = vld [vmem:[%s932_s2] sm:$0x3] }
  0x19   : > { %v293_v52 = vpack.c.bf16 %v290_v48, %v289_v46  ;;  %v294_v53 = vpack.c.bf16 %v292_v50, %v291_v49  ;;  %v466_v55 = vperm.slane %v464_v54, 0  ;;  %v467_v56 = vperm.slane %v464_v54, 1 }
  0x1b   : > { %402 = vmatpush.bf16.msra.mxu0 %v656_v22  ;;  %707 = vmatpush.bf16.msra.mxu2 %v656_v22 }
  0x1c   : > { %421 = vmatpush.bf16.msra.mxu1 %v660_v23  ;;  %715 = vmatpush.bf16.msra.mxu3 %v660_v23 }
  0x1f   : > { %403 = vmatpush.bf16.msra.mxu0 %v648_v28  ;;  %708 = vmatpush.bf16.msra.mxu2 %v648_v28 }
  0x20   : > { %422 = vmatpush.bf16.msra.mxu1 %v652_v29  ;;  %716 = vmatpush.bf16.msra.mxu3 %v652_v29 }
  0x23   : > { %404 = vmatpush.bf16.msra.mxu0 %v640_v34  ;;  %709 = vmatpush.bf16.msra.mxu2 %v640_v34 }
  0x24   : > { %423 = vmatpush.bf16.msra.mxu1 %v644_v35  ;;  %717 = vmatpush.bf16.msra.mxu3 %v644_v35 }
  0x27   : > { %405 = vmatpush.bf16.msra.mxu0 %v632_v40  ;;  %710 = vmatpush.bf16.msra.mxu2 %v632_v40 }
  0x28   : > { %424 = vmatpush.bf16.msra.mxu1 %v636_v41  ;;  %718 = vmatpush.bf16.msra.mxu3 %v636_v41 }
  0x2b   : > { %406 = vmatpush.bf16.msra.mxu0 %v624_v47  ;;  %711 = vmatpush.bf16.msra.mxu2 %v624_v47 }
  0x2c   : > { %425 = vmatpush.bf16.msra.mxu1 %v628_v51  ;;  %719 = vmatpush.bf16.msra.mxu3 %v628_v51 }
  0x2e   : > { %407 = vmatmul.bf16.vlgmr.msra.gmra.mxu0 %v293_v52  ;;  %412 = vmatmul.bf16.vlgmr.msra.gmra.mxu2 %v294_v53 }
  0x2f   : > { %426 = vmatmul.bf16.vlgmr.msra.gmra.mxu1 %v293_v52  ;;  %431 = vmatmul.bf16.vlgmr.msra.gmra.mxu3 %v294_v53 }
  0xab   : > { %v408_v57 = vpop.f32.mrf.mxu0 }
  0xac   : > { %v470_v58 = vadd.f32 %v466_v55, %v408_v57  ;;  %v427_v59 = vpop.f32.mrf.mxu1 }
  0xad   : > { %v471_v60 = vadd.f32 %v467_v56, %v427_v59 }
  0xaf   : > { %v478_v61 = vpack.c.bf16 %v471_v60, %v470_v58 }
  0xb1   : > { %482 = vst [vmem:[%s274_s19] sm:$0xff] %v478_v61  ;;  %v413_v62 = vpop.f32.mrf.mxu2 }
  0xb2   : > { %v432_v63 = vpop.f32.mrf.mxu3  ;;  %v474_v1 = vadd.f32 %v466_v55, %v413_v62 }
  0xb3   : > { %v410_v0 = vpop.f32.mrf.mxu0  ;;  %v475_v2 = vadd.f32 %v467_v56, %v432_v63 }
  0xb4   : > { %v472_v3 = vadd.f32 %v466_v55, %v410_v0  ;;  %v429_v4 = vpop.f32.mrf.mxu1 }
  0xb5   : > { %v473_v5 = vadd.f32 %v467_v56, %v429_v4  ;;  %v480_v7 = vpack.c.bf16 %v475_v2, %v474_v1 }
  0xb7   : > { %v479_v6 = vpack.c.bf16 %v473_v5, %v472_v3  ;;  %484 = vst [vmem:[%s274_s19 + $0x10] sm:$0xff] %v480_v7 }
  0xb9   : > { %483 = vst [vmem:[%s274_s19 + $0x8] sm:$0xff] %v479_v6  ;;  %v415_v8 = vpop.f32.mrf.mxu2 }
  0xba   : > { %v476_v9 = vadd.f32 %v466_v55, %v415_v8  ;;  %v434_v10 = vpop.f32.mrf.mxu3 }
  0xbb   : > { %v477_v11 = vadd.f32 %v467_v56, %v434_v10 }
  0xbd   : > { %v481_v12 = vpack.c.bf16 %v477_v11, %v476_v9 }
  0xbf   : > { %485 = vst [vmem:[%s274_s19 + $0x18] sm:$0xff] %v481_v12 }
  0xc0 PF: > { %s13_s14 = sadd.s32 1, %s766_s14   ;;  %s934_s12 = smov %s762_s13 }
  0xc1   : > { %p10_p5 = scmp.ge.s32.totalorder %s13_s14, 4   ;;  %s935_s13 = smov %s937_s15 }
  0xc3   :  { %12 = sbr.rel (!%p10_p5) target bundleno = 2 (0x2), region = 76 }

// kernel: transformer_decoder_layer.14
= control target key start
LH: loop header
LB: loop body
LE: loop exit
PB: predicated region body
PF: predicated region fallthrough
CT: control target
= control target key end

     0   :  { %s652_s12 = smov 0   ;;  %s654_s13 = smov 0   ;;  %s712_s0 = inlined_call_operand.vmem [shape: bf16[64,128], index: 0, kind: input, shape index: {}]   ;;  %s713_s1 = inlined_call_operand.vmem [shape: bf16[128,128], index: 1, kind: input, shape index: {}]   ;;  %s714_s2 = inlined_call_operand.vmem [shape: f32[1,128], index: 2, kind: input, shape index: {}]   ;;  %s715_s3 = inlined_call_operand.vmem [shape: f32[64,128], index: 3, kind: output, shape index: {}]  }
   0x1   :  { %s656_s14 = smov 0  }
   0x2 LB: > { %s32_s15 = sadd.s32 1, %s626_s13  ;;  %p518_p0 = scmp.ge.s32.totalorder %s630_s14, 1  ;;  %s630_s14 = sphi %s656_s14, %s13_s14   ;;  %s626_s13 = sphi %s654_s13, %s717_s13   ;;  %s622_s12 = sphi %s652_s12, %s716_s12  }
   0x3   : > { %p34_p1 = scmp.ge.s32.totalorder %s32_s15, 2  ;;  %p188_p2 = scmp.lt.s32.totalorder %s630_s14, 3 }
   0x5   : > { %s719_s15 = smov (%p34_p1, %s32_s15), 0  ;;  %p189_p3 = pnand %p518_p0, %p188_p2 }
   0x6   : > { %s519_s24 = sshll.u32 (!%p189_p3), %s622_s12, 2 }
   0x7   : > { %192 = sbr.rel (%p189_p3) target bundleno = 184 (0xb8), region = 32  ;;  %p230_p4 = scmp.lt.s32.totalorder (!%p189_p3), %s519_s24, 7 }
   0xc   : > { %v574_v0 = vld [vmem:[%s713_s1 + $0x38] sm:$0xff]  ;;  %v573_v1 = vld [vmem:[%s713_s1 + $0x30] sm:$0xff]  ;;  %v572_v2 = vld [vmem:[%s713_s1 + $0x28] sm:$0xff]  ;;  %s721_s24 = smov (!%p230_p4, %s519_s24), 7 }
   0xd   : > { %351 = vmatpush.bf16.msra.mxu0 %v574_v0  ;;  %575 = vmatpush.bf16.msra.mxu1 %v574_v0  ;;  %v571_v3 = vld [vmem:[%s713_s1 + $0x20] sm:$0xff]  ;;  %v570_v4 = vld [vmem:[%s713_s1 + $0x18] sm:$0xff]  ;;  %v569_v5 = vld [vmem:[%s713_s1 + $0x10] sm:$0xff]  ;;  %s520_s4 = sshll.u32 %s721_s24, 2  ;;  %s522_s12 = sshll.u32 %s721_s24, 3 }
   0xe   : > { %v568_v6 = vld [vmem:[%s713_s1 + $0x8] sm:$0xff]  ;;  %v567_v7 = vld [vmem:[%s713_s1] sm:$0xff]  ;;  %s236_s9 = scalar_lea.vmem %s712_s0, %s520_s4  ;;  %s257_s18 = scalar_lea.vmem %s715_s3, %s522_s12 }
   0xf   : > { %v565_v8 = vld [vmem:[%s236_s9] sm:$0xff]  ;;  %v566_v9 = vld [vmem:[%s236_s9 + $0x8] sm:$0xff] }
  0x10   : > { %v607_v10 = vld [vmem:[%s714_s2] ss:$0 sm:$0xff] }
  0x11   : > { %352 = vmatpush.bf16.msra.mxu0 %v573_v1  ;;  %576 = vmatpush.bf16.msra.mxu1 %v573_v1 }
  0x15   : > { %353 = vmatpush.bf16.msra.mxu0 %v572_v2  ;;  %577 = vmatpush.bf16.msra.mxu1 %v572_v2 }
  0x19   : > { %354 = vmatpush.bf16.msra.mxu0 %v571_v3  ;;  %578 = vmatpush.bf16.msra.mxu1 %v571_v3 }
  0x1d   : > { %355 = vmatpush.bf16.msra.mxu0 %v570_v4  ;;  %579 = vmatpush.bf16.msra.mxu1 %v570_v4 }
  0x21   : > { %356 = vmatpush.bf16.msra.mxu0 %v569_v5  ;;  %580 = vmatpush.bf16.msra.mxu1 %v569_v5 }
  0x25   : > { %357 = vmatpush.bf16.msra.mxu0 %v568_v6  ;;  %581 = vmatpush.bf16.msra.mxu1 %v568_v6 }
  0x29   : > { %358 = vmatpush.bf16.msra.mxu0 %v567_v7  ;;  %582 = vmatpush.bf16.msra.mxu1 %v567_v7 }
  0x2c   : > { %359 = vmatmul.bf16.vlgmr.msra.gmra.mxu0 %v565_v8  ;;  %364 = vmatmul.bf16.vlgmr.msra.gmra.mxu1 %v566_v9 }
  0xa9   : > { %v360_v11 = vpop.f32.mrf.mxu0  ;;  %v365_v12 = vpop.f32.mrf.mxu1 }
  0xaa   : > { %v389_v13 = vadd.f32 %v607_v10, %v360_v11  ;;  %v391_v15 = vadd.f32 %v607_v10, %v365_v12 }
  0xac   : > { %v393_v14 = vmul.f32 2.0, %v389_v13  ;;  %v395_v21 = vmul.f32 2.0, %v391_v15 }
  0xae   : > { %397 = vst [vmem:[%s257_s18] sm:$0xff] %v393_v14 }
  0xaf   : > { %399 = vst [vmem:[%s257_s18 + $0x10] sm:$0xff] %v395_v21 }
  0xb1   : > { %v362_v16 = vpop.f32.mrf.mxu0  ;;  %v367_v17 = vpop.f32.mrf.mxu1 }
  0xb2   : > { %v390_v18 = vadd.f32 %v607_v10, %v362_v16  ;;  %v392_v19 = vadd.f32 %v607_v10, %v367_v17 }
  0xb4   : > { %v394_v20 = vmul.f32 2.0, %v390_v18  ;;  %v396_v22 = vmul.f32 2.0, %v392_v19 }
  0xb6   : > { %398 = vst [vmem:[%s257_s18 + $0x8] sm:$0xff] %v394_v20 }
  0xb7   : > { %400 = vst [vmem:[%s257_s18 + $0x18] sm:$0xff] %v396_v22 }
  0xb8 PF: > { %s13_s14 = sadd.s32 1, %s630_s14   ;;  %s716_s12 = smov %s626_s13 }
  0xb9   : > { %p10_p5 = scmp.ge.s32.totalorder %s13_s14, 4   ;;  %s717_s13 = smov %s719_s15 }
  0xbb   :  { %12 = sbr.rel (!%p10_p5) target bundleno = 2 (0x2), region = 76 }

// kernel: transformer_decoder_layer.13
= control target key start
LH: loop header
LB: loop body
LE: loop exit
PB: predicated region body
PF: predicated region fallthrough
CT: control target
= control target key end

     0   :  { %s956_s12 = smov 0   ;;  %s958_s13 = smov 0   ;;  %s1110_s0 = inlined_call_operand.vmem [shape: bf16[16,4,128], index: 0, kind: input, shape index: {}]   ;;  %s1111_s1 = inlined_call_operand.vmem [shape: bf16[16,4,256], index: 1, kind: input, shape index: {}, may-alias: {1,2}]   ;;  %s1112_s2 = inlined_call_operand.vmem [shape: bf16[16,4,256], index: 2, kind: input, shape index: {}, may-alias: {1,2}]   ;;  %s1113_s3 = inlined_call_operand.vmem [shape: bf16[16,4,128], index: 3, kind: output, shape index: {}]  }
   0x1   :  { %s960_s14 = smov 0  }
   0x2 LB: > { %s32_s15 = sadd.s32 1, %s924_s13  ;;  %p829_p0 = scmp.ge.s32.totalorder %s928_s14, 1  ;;  %s928_s14 = sphi %s960_s14, %s13_s14   ;;  %s924_s13 = sphi %s958_s13, %s1115_s13   ;;  %s920_s12 = sphi %s956_s12, %s1114_s12  }
   0x3   : > { %p34_p1 = scmp.ge.s32.totalorder %s32_s15, 16  ;;  %p195_p2 = scmp.lt.s32.totalorder %s928_s14, 17 }
   0x5   : > { %s1117_s15 = smov (%p34_p1, %s32_s15), 0  ;;  %p196_p3 = pnand %p829_p0, %p195_p2 }
   0x6   : > { %p242_p4 = scmp.lt.s32.totalorder (!%p196_p3), %s920_s12, 15  ;;  %s931_s27 = smov (!%p196_p3), 96  }
   0x7   : > { %199 = sbr.rel (%p196_p3) target bundleno = 1131 (0x46b), region = 32  ;;  %s934_s28 = smov (!%p196_p3), 64  }
   0x8   : > { %s935_s29 = smov (!%p196_p3), 32  }
   0xc   : > { %s1119_s12 = smov (!%p242_p4, %s920_s12), 15  ;;  %vm297_vm0 = vcmask 261120   ;;  %vm280_vm1 = vcmask 3072   ;;  %v930_v8 = vmov -inf   ;;  %vm318_vm2 = vcmask 27648  }
   0xd   : > { %s847_s16 = sshll.u32 %s1119_s12, 2  ;;  %s830_s17 = sshll.u32 %s1119_s12, 1  ;;  %281 = vst.msk [vmem:[#allocation2] sm:$0xf] %vm280_vm1, %v930_v8  ;;  %v932_v12 = vmov 0   ;;  %v933_v13 = vmov 0.0  }
   0xe   : > { %s257_s20 = scalar_lea.vmem %s1111_s1, %s847_s16  ;;  %s248_s23 = scalar_lea.vmem %s1110_s0, %s830_s17  ;;  %282 = vst.msk [vmem:[#allocation2 + $0x4] sm:$0xf] %vm280_vm1, %v930_v8  ;;  %879 = vset.pattern.permute.xlu1 %v932_v12  ;;  %880 = vset.pattern.permute.xlu2 %v932_v12  ;;  %vm354_vm3 = vcmask 1041408   ;;  %vm350_vm4 = vcmask 31744   ;;  %vm289_vm5 = vcmask 257024   ;;  %vm697_vm6 = vcmask 523264  }
   0xf   : > { %v295_v0 = vld [vmem:[%s257_s20] sm:$0x3]  ;;  %s771_s26 = scalar_lea.vmem %s1112_s2, %s847_s16  ;;  %283 = vst.msk [vmem:[#allocation2 + $0x8] sm:$0xf] %vm280_vm1, %v930_v8  ;;  %881 = vset.pattern.permute.xlu0 %v932_v12  ;;  %vm699_vm7 = vcmask 785408   ;;  %s274_s5 = scalar_lea.vmem %s1113_s3, %s830_s17 }
  0x10   : > { %v302_v1 = vsel %vm297_vm0, %v295_v0, 0  ;;  %v294_v2 = vld [vmem:[%s248_s23] sm:$0x3]  ;;  %v836_v4 = vld [vmem:[%s771_s26 + $0x2] sm:$0x3] }
  0x11   : > { %311 = vmatpush.bf16.xpose.msra.mxu0 %v302_v1  ;;  %375 = vst [vmem:[#allocation1] ss:$4 sm:$0xff] %v294_v2  ;;  %v356_v25 = vsel %vm354_vm3, %v836_v4, 0 }
  0x12   : > { %284 = vst.msk [vmem:[#allocation2 + $0xc] sm:$0xf] %vm280_vm1, %v930_v8  ;;  %365 = vmatpush.bf16.msra.mxu1 %v356_v25 }
  0x13   : > { %285 = vst.msk [vmem:[#allocation3] sm:$0xf] %vm280_vm1, %v933_v13 }
  0x14   : > { %286 = vst.msk [vmem:[#allocation3 + $0x4] sm:$0xf] %vm280_vm1, %v933_v13  ;;  %v1008_v17 = vld [vmem:[#allocation2] sm:$0xf] }
  0x15   : > { %287 = vst.msk [vmem:[#allocation3 + $0x8] sm:$0xf] %vm280_vm1, %v933_v13  ;;  %v405_v53 = vld [vmem:[#allocation2 + $0x4] sm:$0xf] }
  0x16   : > { %288 = vst.msk [vmem:[#allocation3 + $0xc] sm:$0xf] %vm280_vm1, %v933_v13  ;;  %v1051_v56 = vld [vmem:[#allocation2 + $0x8] sm:$0xf] }
  0x17   : > { %290 = vst.msk [vmem:[#allocation4] sm:$0xf] %vm289_vm5, %v933_v13 }
  0x18   : > { %837 = vmatmul.msk.bf16.vlgmr.msra.gmra.mxu0 %vm297_vm0, %v294_v2  ;;  %v376_v3 = vld.sshfl [vmem:[#allocation1] sm:$0xff pattern:$0x73625140]  ;;  %291 = vst.msk [vmem:[#allocation4 + $0x4] sm:$0xf] %vm289_vm5, %v933_v13 }
  0x19   : > { %380 = vst [vmem:[#allocation1] ss:$4 sm:$0xff] %v295_v0  ;;  %v1045_v49 = vld [vmem:[#allocation2 + $0xc] sm:$0xf] }
  0x1a   : > { %292 = vst.msk [vmem:[#allocation4 + $0x8] sm:$0xf] %vm289_vm5, %v933_v13 }
  0x1b   : > { %293 = vst.msk [vmem:[#allocation4 + $0xc] sm:$0xf] %vm289_vm5, %v933_v13 }
  0x1e   : > { %v342_v25 = vld [vmem:[#allocation4] sm:$0xf] }
  0x20   : > { %v381_v5 = vld.sshfl [vmem:[#allocation1] sm:$0xff pattern:$0x73625140] }
  0x21   : > { %438 = vst [vmem:[#allocation1] ss:$4 sm:$0xff] %v836_v4 }
  0x28   : > { %v991_v6 = vld.sshfl [vmem:[#allocation1] sm:$0xff pattern:$0x73625140] }
  0x29   : > { %465 = vst [vmem:[#allocation1] ss:$4 sm:$0xff] %v294_v2 }
  0x30   : > { %v466_v7 = vld.sshfl [vmem:[#allocation1] sm:$0xff pattern:$0x73625140] }
  0x31   : > { %470 = vst [vmem:[#allocation1] ss:$4 sm:$0xff] %v295_v0 }
  0x38   : > { %v471_v14 = vld.sshfl [vmem:[#allocation1] sm:$0xff pattern:$0x73625140] }
  0x39   : > { %473 = vrot.lane.b32.xlu2 %v471_v14, %s934_s28  ;;  %528 = vst [vmem:[#allocation1] ss:$4 sm:$0xff] %v836_v4 }
  0x40   : > { %v529_v15 = vld.sshfl [vmem:[#allocation1] sm:$0xff pattern:$0x73625140] }
  0x41   : > { %555 = vst [vmem:[#allocation1] ss:$4 sm:$0xff] %v294_v2 }
  0x48   : > { %v556_v16 = vld.sshfl [vmem:[#allocation1] sm:$0xff pattern:$0x73625140] }
  0x49   : > { %560 = vst [vmem:[#allocation1] ss:$4 sm:$0xff] %v295_v0 }
  0x50   : > { %v561_v21 = vld.sshfl [vmem:[#allocation1] sm:$0xff pattern:$0x73625140] }
  0x51   : > { %563 = vrot.lane.b32.xlu2 %v561_v21, %s935_s29  ;;  %618 = vst [vmem:[#allocation1] ss:$4 sm:$0xff] %v836_v4  ;;  %v334_v4 = vld [vmem:[#allocation3] sm:$0xf] }
  0x58   : > { %v619_v60 = vld.sshfl [vmem:[#allocation1] sm:$0xff pattern:$0x73625140] }
  0x59   : > { %558 = vrot.lane.b32.xlu2 %v556_v16, %s935_s29 }
  0x93   : > { %v474_v24 = vpop.permute.xlu2 %473 }
  0x94   : > { %v479_v26 = vsel %vm297_vm0, %v474_v24, 0 }
  0x95   : > { %v313_v9 = vpop.f32.mrf.mxu0  ;;  %488 = vmatpush.bf16.xpose.msrb.mxu1 %v479_v26 }
  0x96   : > { %v319_v10 = vsel %vm318_vm2, %v313_v9, -inf }
  0x97   : > { %320 = vmax.xlane.f32.xlu0 %v319_v10 }
  0x9d   : > { %v315_v11 = vpop.f32.mrf.mxu0 }
  0xab   : > { %383 = vrot.lane.b32.xlu0 %v381_v5, %s931_s27  ;;  %v564_v27 = vpop.permute.xlu2 %563 }
  0xac   : > { %v569_v28 = vsel %vm297_vm0, %v564_v27, 0 }
  0xad   : > { %578 = vmatpush.bf16.xpose.msrb.mxu0 %v569_v28 }
  0xb3   : > { %v559_v29 = vpop.permute.xlu2 %558 }
  0xb4   : > { %843 = vmatmul.msk.bf16.vlgmr.msrb.gmra.mxu0 %vm297_vm0, %v559_v29 }
 0x10a   : > { %v321_v18 = vpop.xlane.xlu0 %320 }
 0x10b   : > { %v1011_v19 = vmax.f32 %v1008_v17, %v321_v18 }
 0x10d   : > { %v323_v20 = vsub.f32 %v1008_v17, %v1011_v19  ;;  %374 = vst.msk [vmem:[#allocation2] sm:$0xf] %vm280_vm1, %v1011_v19  ;;  %328 = vperm.xlu1 %879, %v1011_v19  }
 0x10f   : > { %v324_v58 = vmul.f32 1.442695, %v323_v20 }
 0x115   : > { %378 = vrot.lane.b32.xlu1 %v376_v3, %s931_s27 }
 0x11d   : > { %468 = vrot.lane.b32.xlu1 %v466_v7, %s934_s28  ;;  %v384_v22 = vpop.permute.xlu0 %383 }
 0x11e   : > { %v389_v23 = vsel %vm297_vm0, %v384_v22, 0 }
 0x11f   : > { %398 = vmatpush.bf16.xpose.msra.mxu2 %v389_v23 }
 0x131   : > { %v1030_v37 = vpop.f32.mrf.mxu0 }
 0x132   : > { %v586_v38 = vsel %vm318_vm2, %v1030_v37, -inf }
 0x133   : > { %587 = vmax.xlane.f32.xlu0 %v586_v38 }
 0x139   : > { %v582_v39 = vpop.f32.mrf.mxu0 }
 0x17f   : > { %v329_v30 = vpop.permute.xlu1 %328 }
 0x180   : > { %v331_v31 = vsub.f32 %v313_v9, %v329_v30 }
 0x182   : > { %v332_v32 = vmul.f32 1.442695, %v331_v31 }
 0x184   : > { %882 = vpow2.f32 %v332_v32 }
 0x185   : > { %884 = vpow2.f32 %v324_v58 }
 0x187   : > { %v379_v33 = vpop.permute.xlu1 %378 }
 0x188   : > { %839 = vmatmul.msk.bf16.vlgmr.msra.gmra.mxu2 %vm297_vm0, %v379_v33 }
 0x18a   : > { %v883_v34 = vpop.eup %882 }
 0x18b   : > { %v349_v35 = vpack.c.bf16 %v883_v34, %v883_v34  ;;  %v336_v48 = vsel %vm318_vm2, %v883_v34, 0.0  ;;  %v885_v0 = vpop.eup %884 }
 0x18d   : > { %838 = vmatmul.msk.bf16.vlgmr.msra.gmra.mxu1 %vm350_vm4, %v349_v35 }
 0x18f   : > { %v469_v36 = vpop.permute.xlu1 %468 }
 0x19d   : > { %841 = vmatmul.msk.bf16.vlgmr.msrb.gmra.mxu1 %vm297_vm0, %v469_v36 }
 0x1a6   : > { %v588_v50 = vpop.xlane.xlu0 %587 }
 0x1a7   : > { %v589_v51 = vmax.f32 %v1045_v49, %v588_v50 }
 0x1a9   : > { %v590_v52 = vsub.f32 %v1045_v49, %v589_v51  ;;  %644 = vst.msk [vmem:[#allocation2 + $0xc] sm:$0xf] %vm280_vm1, %v589_v51  ;;  %v430_v49 = vld [vmem:[#allocation4 + $0x4] sm:$0xf] }
 0x1ab   : > { %v591_v24 = vmul.f32 1.442695, %v590_v52 }
 0x20a   : > { %v1034_v40 = vpop.f32.mrf.mxu1 }
 0x20b   : > { %v400_v41 = vpop.f32.mrf.mxu2 }
 0x20c   : > { %v406_v42 = vsel %vm318_vm2, %v400_v41, -inf }
 0x20d   : > { %407 = vmax.xlane.f32.xlu1 %v406_v42 }
 0x212   : > { %v369_v43 = vpop.f32.mrf.mxu1 }
 0x213   : > { %v402_v44 = vpop.f32.mrf.mxu2 }
 0x214   : > { %v602_v44 = vld [vmem:[#allocation3 + $0xc] sm:$0xf] }
 0x21a   : > { %v1037_v45 = vpop.f32.mrf.mxu1 }
 0x21b   : > { %v496_v46 = vsel %vm318_vm2, %v1037_v45, -inf }
 0x21c   : > { %497 = vmax.xlane.f32.xlu2 %v496_v46 }
 0x222   : > { %v492_v47 = vpop.f32.mrf.mxu1 }
 0x226   : > { %441 = vrot.lane.b32.xlu1 %v991_v6, %s931_s27  ;;  %v335_v6 = vmul.f32 %v885_v0, %v334_v4 }
 0x22e   : > { %531 = vrot.lane.b32.xlu1 %v529_v15, %s934_s28 }
 0x258   : > { %337 = vadd.xlane.f32.xlu1 %v336_v48 }
 0x280   : > { %v408_v54 = vpop.xlane.xlu1 %407 }
 0x281   : > { %v409_v55 = vmax.f32 %v405_v53, %v408_v54 }
 0x283   : > { %464 = vst.msk [vmem:[#allocation2 + $0x4] sm:$0xf] %vm280_vm1, %v409_v55  ;;  %415 = vperm.xlu2 %880, %v409_v55   ;;  %v410_v62 = vsub.f32 %v405_v53, %v409_v55 }
 0x285   : > { %v411_v63 = vmul.f32 1.442695, %v410_v62 }
 0x287   : > { %886 = vpow2.f32 %v411_v63 }
 0x28b   : > { %595 = vperm.xlu2 %880, %v589_v51  }
 0x28d   : > { %v1060_v1 = vpop.eup %886 }
 0x28f   : > { %v498_v57 = vpop.xlane.xlu2 %497 }
 0x290   : > { %v499_v59 = vmax.f32 %v1051_v56, %v498_v57 }
 0x292   : > { %v500_v61 = vsub.f32 %v1051_v56, %v499_v59  ;;  %554 = vst.msk [vmem:[#allocation2 + $0x8] sm:$0xf] %vm280_vm1, %v499_v59  ;;  %505 = vperm.xlu0 %881, %v499_v59   ;;  %v610_v56 = vld [vmem:[#allocation4 + $0xc] sm:$0xf] }
 0x293   : > { %621 = vrot.lane.b32.xlu2 %v619_v60, %s935_s29 }
 0x294   : > { %v501_v30 = vmul.f32 1.442695, %v500_v61 }
 0x298   : > { %v442_v2 = vpop.permute.xlu1 %441 }
 0x299   : > { %v447_v5 = vsel %vm354_vm3, %v442_v2, 0 }
 0x29a   : > { %456 = vmatpush.bf16.msra.mxu3 %v447_v5  ;;  %v520_v5 = vld [vmem:[#allocation4 + $0x8] sm:$0xf] }
 0x29b   : > { %345 = vperm.xlu2 %880, %v885_v0   ;;  %v512_v0 = vld [vmem:[#allocation3 + $0x8] sm:$0xf] }
 0x2a0   : > { %v532_v3 = vpop.permute.xlu1 %531 }
 0x2a1   : > { %v537_v19 = vsel %vm354_vm3, %v532_v3, 0 }
 0x2a2   : > { %546 = vmatpush.bf16.msrb.mxu3 %v537_v19 }
 0x2a3   : > { %433 = vperm.xlu2 %880, %v1060_v1  }
 0x2cb   : > { %v338_v7 = vpop.xlane.xlu1 %337 }
 0x2cc   : > { %v339_v8 = vadd.f32 %v338_v7, %v335_v6 }
 0x2ce   : > { %341 = vst.msk [vmem:[#allocation3] sm:$0xf] %vm280_vm1, %v339_v8 }
 0x2d5   : > { %v648_v38 = vld [vmem:[#allocation3] sm:$0xf] }
 0x2dd   : > { %v416_v9 = vpop.permute.xlu2 %415 }
 0x2de   : > { %v418_v10 = vsub.f32 %v400_v41, %v416_v9 }
 0x2e0   : > { %v419_v11 = vmul.f32 1.442695, %v418_v10 }
 0x2e2   : > { %888 = vpow2.f32 %v419_v11 }
 0x2e5   : > { %v596_v12 = vpop.permute.xlu2 %595 }
 0x2e6   : > { %v598_v14 = vsub.f32 %v1030_v37, %v596_v12 }
 0x2e8   : > { %v889_v15 = vpop.eup %888  ;;  %v599_v16 = vmul.f32 1.442695, %v598_v14 }
 0x2e9   : > { %v424_v17 = vsel %vm318_vm2, %v889_v15, 0.0  ;;  %v437_v18 = vpack.c.bf16 %v889_v15, %v889_v15 }
 0x2ea   : > { %890 = vpow2.f32 %v599_v16  ;;  %425 = vadd.xlane.f32.xlu0 %v424_v17 }
 0x2eb   : > { %840 = vmatmul.msk.bf16.vlgmr.msra.gmra.mxu3 %vm350_vm4, %v437_v18  ;;  %892 = vpow2.f32 %v591_v24 }
 0x2ec   : > { %894 = vpow2.f32 %v501_v30 }
 0x2ed   : > { %v622_v13 = vpop.permute.xlu2 %621 }
 0x2ee   : > { %v627_v20 = vsel %vm354_vm3, %v622_v13, 0 }
 0x2ef   : > { %636 = vmatpush.bf16.msrb.mxu2 %v627_v20 }
 0x2f0   : > { %v891_v21 = vpop.eup %890 }
 0x2f1   : > { %v604_v22 = vsel %vm318_vm2, %v891_v21, 0.0  ;;  %v617_v23 = vpack.c.bf16 %v891_v21, %v891_v21  ;;  %v893_v29 = vpop.eup %892 }
 0x2f2   : > { %605 = vadd.xlane.f32.xlu1 %v604_v22  ;;  %v895_v34 = vpop.eup %894 }
 0x2f3   : > { %844 = vmatmul.msk.bf16.vlgmr.msrb.gmra.mxu2 %vm350_vm4, %v617_v23 }
 0x2f5   : > { %v346_v26 = vpop.permute.xlu2 %345 }
 0x2f6   : > { %v348_v27 = vmul.f32 %v346_v26, %v342_v25 }
 0x2f8   : > { %v371_v28 = vadd.f32 %v1034_v40, %v348_v27  ;;  %v422_v40 = vld [vmem:[#allocation3 + $0x4] sm:$0xf] }
 0x2f9   : > { %v423_v41 = vmul.f32 %v1060_v1, %v422_v40  ;;  %v513_v1 = vmul.f32 %v895_v34, %v512_v0 }
 0x2fa   : > { %373 = vst.msk [vmem:[#allocation4] sm:$0xf] %vm289_vm5, %v371_v28 }
 0x2fd   : > { %v434_v50 = vpop.permute.xlu2 %433 }
 0x2fe   : > { %613 = vperm.xlu0 %881, %v893_v29   ;;  %v436_v51 = vmul.f32 %v434_v50, %v430_v49 }
 0x301   : > { %v650_v22 = vld [vmem:[#allocation4] sm:$0xf] }
 0x304   : > { %v506_v31 = vpop.permute.xlu0 %505 }
 0x305   : > { %v508_v32 = vsub.f32 %v1037_v45, %v506_v31  ;;  %v603_v45 = vmul.f32 %v893_v29, %v602_v44 }
 0x307   : > { %v509_v33 = vmul.f32 1.442695, %v508_v32 }
 0x309   : > { %896 = vpow2.f32 %v509_v33 }
 0x30a   : > { %898 = vrcp.f32 %v648_v38 }
 0x30b   : > { %523 = vperm.xlu1 %879, %v895_v34  }
 0x30f   : > { %v897_v35 = vpop.eup %896 }
 0x310   : > { %v514_v36 = vsel %vm318_vm2, %v897_v35, 0.0  ;;  %v527_v37 = vpack.c.bf16 %v897_v35, %v897_v35  ;;  %v899_v39 = vpop.eup %898 }
 0x311   : > { %515 = vadd.xlane.f32.xlu2 %v514_v36 }
 0x312   : > { %842 = vmatmul.msk.bf16.vlgmr.msrb.gmra.mxu3 %vm350_vm4, %v527_v37 }
 0x329   : > { %653 = vperm.xlu2 %880, %v899_v39  }
 0x35d   : > { %v426_v42 = vpop.xlane.xlu0 %425 }
 0x35e   : > { %v427_v43 = vadd.f32 %v426_v42, %v423_v41 }
 0x360   : > { %428 = vst.msk [vmem:[#allocation3 + $0x4] sm:$0xf] %vm280_vm1, %v427_v43 }
 0x365   : > { %v606_v46 = vpop.xlane.xlu1 %605 }
 0x366   : > { %v607_v47 = vadd.f32 %v606_v46, %v603_v45 }
 0x367   : > { %v657_v48 = vld [vmem:[#allocation3 + $0x4] sm:$0xf] }
 0x368   : > { %608 = vst.msk [vmem:[#allocation3 + $0xc] sm:$0xf] %vm280_vm1, %v607_v47  ;;  %900 = vrcp.f32 %v657_v48 }
 0x36e   : > { %v901_v52 = vpop.eup %900  ;;  %v458_v53 = vpop.f32.mrf.mxu3 }
 0x36f   : > { %v462_v54 = vadd.f32 %v458_v53, %v436_v51  ;;  %662 = vperm.xlu0 %881, %v901_v52   ;;  %v675_v55 = vld [vmem:[#allocation3 + $0xc] sm:$0xf] }
 0x370   : > { %902 = vrcp.f32 %v675_v55  ;;  %v614_v57 = vpop.permute.xlu0 %613 }
 0x371   : > { %463 = vst.msk [vmem:[#allocation4 + $0x4] sm:$0xf] %vm289_vm5, %v462_v54  ;;  %v616_v58 = vmul.f32 %v614_v57, %v610_v56 }
 0x376   : > { %v903_v59 = vpop.eup %902  ;;  %v460_v60 = vpop.f32.mrf.mxu3 }
 0x377   : > { %v638_v61 = vpop.f32.mrf.mxu2  ;;  %680 = vperm.xlu0 %881, %v903_v59  }
 0x378   : > { %v642_v62 = vadd.f32 %v638_v61, %v616_v58  ;;  %v659_v12 = vld [vmem:[#allocation4 + $0x4] sm:$0xf] }
 0x37a   : > { %643 = vst.msk [vmem:[#allocation4 + $0xc] sm:$0xf] %vm289_vm5, %v642_v62 }
 0x37d   : > { %v524_v6 = vpop.permute.xlu1 %523 }
 0x37e   : > { %v526_v7 = vmul.f32 %v524_v6, %v520_v5 }
 0x37f   : > { %v640_v63 = vpop.f32.mrf.mxu2 }
 0x381   : > { %v677_v16 = vld [vmem:[#allocation4 + $0xc] sm:$0xf] }
 0x384   : > { %v516_v2 = vpop.xlane.xlu2 %515 }
 0x385   : > { %v517_v3 = vadd.f32 %v516_v2, %v513_v1 }
 0x387   : > { %518 = vst.msk [vmem:[#allocation3 + $0x8] sm:$0xf] %vm280_vm1, %v517_v3 }
 0x38c   : > { %v654_v21 = vpop.permute.xlu2 %653 }
 0x38d   : > { %v656_v24 = vmul.f32 %v654_v21, %v650_v22 }
 0x38e   : > { %v666_v4 = vld [vmem:[#allocation3 + $0x8] sm:$0xf] }
 0x38f   : > { %904 = vrcp.f32 %v666_v4 }
 0x395   : > { %v905_v8 = vpop.eup %904  ;;  %v548_v9 = vpop.f32.mrf.mxu3 }
 0x396   : > { %v552_v10 = vadd.f32 %v548_v9, %v526_v7  ;;  %671 = vperm.xlu1 %879, %v905_v8  }
 0x398   : > { %553 = vst.msk [vmem:[#allocation4 + $0x8] sm:$0xf] %vm289_vm5, %v552_v10 }
 0x39d   : > { %v550_v11 = vpop.f32.mrf.mxu3 }
 0x39f   : > { %v668_v19 = vld [vmem:[#allocation4 + $0x8] sm:$0xf] }
 0x3e1   : > { %v663_v14 = vpop.permute.xlu0 %662 }
 0x3e2   : > { %v665_v15 = vmul.f32 %v663_v14, %v659_v12 }
 0x3e4   : > { %685 = vrot.lane.b32.xlu1 %v665_v15, %s935_s29 }
 0x3e9   : > { %v681_v17 = vpop.permute.xlu0 %680 }
 0x3ea   : > { %v683_v18 = vmul.f32 %v681_v17, %v677_v16 }
 0x3ec   : > { %693 = vrot.lane.b32.xlu0 %v683_v18, %s931_s27 }
 0x408   : > { %v672_v13 = vpop.permute.xlu1 %671 }
 0x409   : > { %v674_v20 = vmul.f32 %v672_v13, %v668_v19 }
 0x40b   : > { %689 = vrot.lane.b32.xlu2 %v674_v20, %s934_s28 }
 0x456   : > { %v686_v23 = vpop.permute.xlu1 %685 }
 0x457   : > { %v696_v25 = vsel %vm297_vm0, %v656_v24, %v686_v23 }
 0x45e   : > { %v694_v27 = vpop.permute.xlu0 %693 }
 0x465   : > { %v690_v26 = vpop.permute.xlu2 %689 }
 0x466   : > { %v698_v28 = vsel %vm697_vm6, %v696_v25, %v690_v26 }
 0x467   : > { %v700_v29 = vsel %vm699_vm7, %v698_v28, %v694_v27 }
 0x468   : > { %v701_v30 = vpack.c.bf16 %v700_v29, %v700_v29 }
 0x46a   : > { %702 = vst [vmem:[%s274_s5] sm:$0x3] %v701_v30 }
 0x46b PF: > { %s13_s14 = sadd.s32 1, %s928_s14   ;;  %s1114_s12 = smov %s924_s13 }
 0x46c   : > { %p10_p5 = scmp.ge.s32.totalorder %s13_s14, 18   ;;  %s1115_s13 = smov %s1117_s15 }
 0x46e   :  { %12 = sbr.rel (!%p10_p5) target bundleno = 2 (0x2), region = 85 }

// kernel: transformer_decoder_layer.15
= control target key start
LH: loop header
LB: loop body
LE: loop exit
PB: predicated region body
PF: predicated region fallthrough
CT: control target
= control target key end

     0   :  { %12 = vsyncpa [#allocation5], 0  ;;  %s1677_s0 = inlined_call_operand.vmem [shape: f32[64,128], index: 0, kind: input, shape index: {}]   ;;  %s1678_s1 = inlined_call_operand.vmem [shape: bf16[128,256], index: 1, kind: input, shape index: {}]   ;;  %s1679_s2 = inlined_call_operand.vmem [shape: f32[1,256], index: 2, kind: input, shape index: {}]   ;;  %s1680_s3 = inlined_call_operand.vmem [shape: bf16[256,128], index: 3, kind: input, shape index: {}]   ;;  %s1681_s4 = inlined_call_operand.vmem [shape: f32[1,128], index: 4, kind: input, shape index: {}]   ;;  %s1682_s5 = inlined_call_operand.vmem [shape: f32[1,128], index: 5, kind: input, shape index: {}]   ;;  %s1683_s6 = inlined_call_operand.vmem [shape: f32[1,128], index: 6, kind: input, shape index: {}]   ;;  %s1684_s7 = inlined_call_operand.hbm [shape: f32[64,128], index: 7, kind: output, shape index: {}]  }
   0x1   :  { %14 = vsyncpa [#allocation5 + $0x1], 0  ;;  %s1371_s24 = smov 0   ;;  %s1373_s25 = smov 0  }
   0x2   :  { %s1375_s26 = smov 0   ;;  %s1377_s27 = smov 0  }
   0x3   :  { %s1379_s28 = smov 0   ;;  %s1381_s29 = smov 0  }
   0x4 LB: > { %s979_s30 = sadd.s32 4294967295, %s1326_s29   ;;  %s980_s8 = sadd.s32 4294967294, %s1326_s29   ;;  %s1326_s29 = sphi %s1381_s29, %s20_s29   ;;  %s1322_s28 = sphi %s1379_s28, %s1691_s28   ;;  %s1318_s27 = sphi %s1377_s27, %s1690_s27   ;;  %s1314_s26 = sphi %s1375_s26, %s1689_s26   ;;  %s1310_s25 = sphi %s1373_s25, %s1688_s25   ;;  %s1306_s24 = sphi %s1371_s24, %s1687_s24  }
   0x5   : > { %s32_s9 = sadd.s32 1, %s1322_s28  ;;  %s206_s10 = sadd.s32 1, %s1314_s26 }
   0x6   : > { %p34_p0 = scmp.ge.s32.totalorder %s32_s9, 2  ;;  %p216_p1 = scmp.ne.s32.totalorder %s1314_s26, %s1310_s25 }
   0x7   : > { %p217_p2 = scmp.eq.s32.totalorder %s979_s30, 1  ;;  %p222_p3 = scmp.ne.s32.totalorder %s1310_s25, %s1306_s24 }
   0x8   : > { %s1693_s9 = smov (%p34_p0, %s32_s9), 0  ;;  %p223_p5 = scmp.eq.s32.totalorder %s980_s8, 1 }
   0x9   : > { %p1411_p4 = por %p217_p2, %p216_p1  ;;  %s203_s12 = ssub.s32 %s1322_s28, %s1693_s9 }
   0xa   : > { %p986_p6 = scmp.ge.s32.totalorder %s1326_s29, 1  ;;  %p204_p7 = scmp.eq.s32.totalorder %s203_s12, 0 }
   0xb   : > { %p1418_p8 = por %p223_p5, %p222_p3  ;;  %p285_p9 = scmp.lt.s32.totalorder %s1326_s29, 3 }
   0xc   : > { %s1424_s14 = scalar_select %p204_p7, %s1314_s26, %s206_s10  }
   0xd   : > { %p286_p10 = pnand %p986_p6, %p285_p9 }
   0xe   : > { %s988_s15 = sshll.u32 (!%p286_p10), %s1318_s27, 2  ;;  %s328_s18 = sand.u32 (!%p286_p10), 1, %s1310_s25  }
   0xf   : > { %289 = sbr.rel (%p286_p10) target bundleno = 615 (0x267), region = 48  ;;  %p332_p11 = scmp.lt.s32.totalorder (!%p286_p10), %s988_s15, 7 }
  0x10   : > { %s987_s21 = sshll.u32 (!%p286_p10), %s328_s18, 5  ;;  %s1165_s23 = sshll.u32 (!%p286_p10), %s1318_s27, 5 }
  0x11   : > { %s330_s22 = scalar_lea.vmem (!%p286_p10), [#allocation4], %s987_s21  ;;  %s863_s10 = scalar_lea.hbm (!%p286_p10), %s1684_s7, %s1165_s23 }
  0x12   : > { %s864_s12 = sshll.u32 (!%p286_p10), %s330_s22, 4  ;;  %s852_s27 = scalar_lea.sflag (!%p286_p10), [#allocation5], %s328_s18  ;;  %s865_s12 = int_to_ptr.vmem [resolvable:$true] %s864_s12 }
  0x13   : > { %s1268_s21 = scalar_lea.hbm (!%p286_p10), %s1684_s7, 64 }
  0x14   : > { %s1695_s15 = smov (!%p332_p11, %s988_s15), 7  ;;  %v1328_v4 = vmov 128.0   ;;  %v1056_v27 = vld [vmem:[%s1678_s1 + $0x70] sm:$0xf]  ;;  %v1148_v28 = vld [vmem:[%s1678_s1 + $0x74] sm:$0xf0] }
  0x15   : > { %s989_s16 = sshll.u32 %s1695_s15, 3  ;;  %1238 = vrcp.f32 %v1328_v4  ;;  %v1147_v29 = vld [vmem:[%s1678_s1 + $0x74] sm:$0xf]  ;;  %v1057_v30 = vor.u32 %v1148_v28, %v1056_v27  ;;  %v1058_v31 = vld [vmem:[%s1678_s1 + $0x78] sm:$0xf0]  ;;  %s866_s15 = sshll.u32 %s863_s10, 4  ;;  %s867_s15 = int_to_ptr.hbm [resolvable:$true] %s866_s15 }
  0x16   : > { %s335_s19 = scalar_lea.vmem %s1677_s0, %s989_s16  ;;  %v1061_v32 = vor.u32 %v1147_v29, %v1058_v31  ;;  %v1048_v33 = vld [vmem:[%s1678_s1 + $0x60] sm:$0xf]  ;;  %v1146_v34 = vld [vmem:[%s1678_s1 + $0x64] sm:$0xf0]  ;;  %v1145_v35 = vld [vmem:[%s1678_s1 + $0x64] sm:$0xf] }
  0x17   : > { %v1430_v0 = vld [vmem:[%s335_s19 + $0x10] sm:$0xff]  ;;  %v1432_v1 = vld [vmem:[%s335_s19] sm:$0xff]  ;;  %v1436_v2 = vld [vmem:[%s335_s19 + $0x18] sm:$0xff]  ;;  %596 = vmatpush.bf16.msra.mxu0 %v1057_v30  ;;  %v1049_v36 = vor.u32 %v1146_v34, %v1048_v33  ;;  %s1262_s16 = sshra.s32 %s867_s15, 4  ;;  %s1263_s16 = int_to_ptr.hbm [resolvable:$true] %s1262_s16 }
  0x18   : > { %367 = vadd.xlane.f32.xlu1 %v1430_v0  ;;  %363 = vadd.xlane.f32.xlu0 %v1432_v1  ;;  %v1438_v3 = vld [vmem:[%s335_s19 + $0x8] sm:$0xff]  ;;  %v1040_v39 = vld [vmem:[%s1678_s1 + $0x50] sm:$0xf]  ;;  %v1144_v40 = vld [vmem:[%s1678_s1 + $0x54] sm:$0xf0]  ;;  %s1264_s17 = scalar_lea.hbm %s1263_s16, 32  ;;  %p1269_p1 = scmp.lt.s32.totalorder %s1263_s16, %s1684_s7 }
  0x19   : > { %615 = vmatpush.bf16.msra.mxu1 %v1061_v32  ;;  %v1050_v37 = vld [vmem:[%s1678_s1 + $0x68] sm:$0xf0]  ;;  %v1143_v41 = vld [vmem:[%s1678_s1 + $0x54] sm:$0xf]  ;;  %v1041_v42 = vor.u32 %v1144_v40, %v1040_v39  ;;  %v1042_v43 = vld [vmem:[%s1678_s1 + $0x58] sm:$0xf0]  ;;  %p1265_p12 = scmp.ne.s32.totalorder %s1263_s16, %s1264_s17  ;;  %p1270_p2 = scmp.lt.s32.totalorder %s1268_s21, %s1264_s17 }
  0x1a   : > { %v1053_v38 = vor.u32 %v1145_v35, %v1050_v37  ;;  %v1045_v44 = vor.u32 %v1143_v41, %v1042_v43  ;;  %v1032_v45 = vld [vmem:[%s1678_s1 + $0x40] sm:$0xf]  ;;  %v1142_v46 = vld [vmem:[%s1678_s1 + $0x44] sm:$0xf0]  ;;  %v1141_v47 = vld [vmem:[%s1678_s1 + $0x44] sm:$0xf] }
  0x1b   : > { %v1239_v5 = vpop.eup %1238  ;;  %597 = vmatpush.bf16.msra.mxu0 %v1049_v36  ;;  %v1033_v48 = vor.u32 %v1142_v46, %v1032_v45  ;;  %v1034_v49 = vld [vmem:[%s1678_s1 + $0x48] sm:$0xf0]  ;;  %v1024_v51 = vld [vmem:[%s1678_s1 + $0x30] sm:$0xf]  ;;  %v1140_v52 = vld [vmem:[%s1678_s1 + $0x34] sm:$0xf0]  ;;  %p1266_p13 = pnand %p1265_p12, %p1411_p4  ;;  %p1271_p3 = por %p1270_p2, %p1269_p1 }
  0x1c   : > { %v372_v6 = vmul.f32 128.0, %v1239_v5  ;;  %vm376_vm0 = vweird.f32 %v1239_v5  ;;  %v1037_v50 = vor.u32 %v1141_v47, %v1034_v49  ;;  %v1139_v53 = vld [vmem:[%s1678_s1 + $0x34] sm:$0xf]  ;;  %v1025_v56 = vor.u32 %v1140_v52, %v1024_v51  ;;  %v1026_v57 = vld [vmem:[%s1678_s1 + $0x38] sm:$0xf0] }
  0x1d   : > { %616 = vmatpush.bf16.msra.mxu1 %v1053_v38  ;;  %v1029_v60 = vor.u32 %v1139_v53, %v1026_v57  ;;  %v1016_v63 = vld [vmem:[%s1678_s1 + $0x20] sm:$0xf]  ;;  %v1138_v4 = vld [vmem:[%s1678_s1 + $0x24] sm:$0xf0]  ;;  %v1002_v27 = vld [vmem:[%s1678_s1 + $0x8] sm:$0xf0]  ;;  %p1267_p0 = pneg %p1266_p13 }
  0x1e   : > { %v373_v7 = vsub.f32 1.0, %v372_v6  ;;  %v1018_v6 = vld [vmem:[%s1678_s1 + $0x28] sm:$0xf0] }
  0x1f   : > { %598 = vmatpush.bf16.msra.mxu0 %v1041_v42  ;;  %p1272_p5 = pnand %p1271_p3, %p1267_p0 }
  0x20   : > { %369 = vadd.xlane.f32.xlu1 %v1436_v2  ;;  %365 = vadd.xlane.f32.xlu0 %v1438_v3  ;;  %v374_v8 = vmul.f32 %v1239_v5, %v373_v7  ;;  %v1017_v7 = vor.u32 %v1138_v4, %v1016_v63 }
  0x21   : > { %617 = vmatpush.bf16.msra.mxu1 %v1045_v44 }
  0x22   : > { %v375_v9 = vadd.f32 %v1239_v5, %v374_v8 }
  0x23   : > { %599 = vmatpush.bf16.msra.mxu0 %v1033_v48 }
  0x24   : > { %v1442_v10 = vsel %vm376_vm0, %v1239_v5, %v375_v9  ;;  %v1137_v5 = vld [vmem:[%s1678_s1 + $0x24] sm:$0xf]  ;;  %v1008_v9 = vld [vmem:[%s1678_s1 + $0x10] sm:$0xf] }
  0x25   : > { %618 = vmatpush.bf16.msra.mxu1 %v1037_v50  ;;  %v1021_v8 = vor.u32 %v1137_v5, %v1018_v6 }
  0x27   : > { %600 = vmatpush.bf16.msra.mxu0 %v1025_v56 }
  0x29   : > { %619 = vmatpush.bf16.msra.mxu1 %v1029_v60 }
  0x2b   : > { %601 = vmatpush.bf16.msra.mxu0 %v1017_v7  ;;  %v1164_v7 = vld [vmem:[%s1680_s3 + $0x78] sm:$0xff] }
  0x2c   : > { %797 = vmatpush.bf16.msra.mxu3 %v1164_v7 }
  0x2d   : > { %620 = vmatpush.bf16.msra.mxu1 %v1021_v8 }
  0x8b   : > { %v368_v11 = vpop.xlane.xlu1 %367  ;;  %v364_v12 = vpop.xlane.xlu0 %363 }
  0x8c   : > { %v380_v13 = vmul.f32 %v1442_v10, %v368_v11  ;;  %v378_v14 = vmul.f32 %v1442_v10, %v364_v12  ;;  %v1136_v11 = vld [vmem:[%s1678_s1 + $0x14] sm:$0xf0]  ;;  %v1135_v12 = vld [vmem:[%s1678_s1 + $0x14] sm:$0xf] }
  0x8e   : > { %v1447_v15 = vsub.f32 %v1430_v0, %v380_v13  ;;  %v1450_v16 = vsub.f32 %v1432_v1, %v378_v14 }
  0x90   : > { %v388_v17 = vmul.f32 %v1447_v15, %v1447_v15  ;;  %v386_v18 = vmul.f32 %v1450_v16, %v1450_v16 }
  0x92   : > { %394 = vadd.xlane.f32.xlu0 %v388_v17  ;;  %390 = vadd.xlane.f32.xlu2 %v386_v18  ;;  %v1009_v17 = vor.u32 %v1136_v11, %v1008_v9  ;;  %v1010_v18 = vld [vmem:[%s1678_s1 + $0x18] sm:$0xf0] }
  0x93   : > { %v370_v19 = vpop.xlane.xlu1 %369  ;;  %v366_v20 = vpop.xlane.xlu0 %365 }
  0x94   : > { %v381_v21 = vmul.f32 %v1442_v10, %v370_v19  ;;  %v379_v22 = vmul.f32 %v1442_v10, %v366_v20  ;;  %v1000_v19 = vld [vmem:[%s1678_s1] sm:$0xf]  ;;  %v1134_v20 = vld [vmem:[%s1678_s1 + $0x4] sm:$0xf0]  ;;  %602 = vmatpush.bf16.msra.mxu0 %v1009_v17 }
  0x95   : > { %v1001_v31 = vor.u32 %v1134_v20, %v1000_v19  ;;  %v1162_v19 = vld [vmem:[%s1680_s3 + $0x68] sm:$0xff]  ;;  %v1153_v20 = vld [vmem:[%s1680_s3 + $0x20] sm:$0xff] }
  0x96   : > { %v1459_v23 = vsub.f32 %v1436_v2, %v381_v21  ;;  %v1462_v24 = vsub.f32 %v1438_v3, %v379_v22 }
  0x98   : > { %v389_v25 = vmul.f32 %v1459_v23, %v1459_v23  ;;  %v387_v26 = vmul.f32 %v1462_v24, %v1462_v24  ;;  %603 = vmatpush.bf16.msra.mxu0 %v1001_v31  ;;  %v1158_v31 = vld [vmem:[%s1680_s3 + $0x48] sm:$0xff] }
  0x9a   : > { %396 = vadd.xlane.f32.xlu1 %v389_v25  ;;  %392 = vadd.xlane.f32.xlu2 %v387_v26  ;;  %v1013_v25 = vor.u32 %v1135_v12, %v1010_v18  ;;  %v1133_v26 = vld [vmem:[%s1678_s1 + $0x4] sm:$0xf]  ;;  %v1154_v18 = vld [vmem:[%s1680_s3 + $0x28] sm:$0xff] }
  0x9b   : > { %v1005_v34 = vor.u32 %v1133_v26, %v1002_v27  ;;  %v1152_v26 = vld [vmem:[%s1680_s3 + $0x18] sm:$0xff] }
  0x9c   : > { %621 = vmatpush.bf16.msra.mxu1 %v1013_v25  ;;  %v1160_v27 = vld [vmem:[%s1680_s3 + $0x58] sm:$0xff] }
  0xa0   : > { %622 = vmatpush.bf16.msra.mxu1 %v1005_v34  ;;  %v498_v34 = vld [vmem:[%s1679_s2] sm:$0x3] }
 0x105   : > { %v391_v54 = vpop.xlane.xlu2 %390  ;;  %v395_v55 = vpop.xlane.xlu0 %394 }
 0x106   : > { %v398_v58 = vmul.f32 %v391_v54, %v1442_v10  ;;  %v400_v59 = vmul.f32 %v395_v55, %v1442_v10  ;;  %v1235_v54 = vld [vmem:[%s1682_s5] ss:$0 sm:$0xff] }
 0x108   : > { %v402_v61 = vadd.f32 1e-05, %v398_v58  ;;  %v404_v62 = vadd.f32 1e-05, %v400_v59 }
 0x10a   : > { %1240 = vrsqrt.f32 %v402_v61  ;;  %vm432_vm1 = vweird.f32 %v404_v62  ;;  %vm412_vm5 = vweird.f32 %v402_v61 }
 0x10b   : > { %1242 = vrsqrt.f32 %v404_v62 }
 0x10d   : > { %v397_v13 = vpop.xlane.xlu1 %396  ;;  %v393_v14 = vpop.xlane.xlu2 %392 }
 0x10e   : > { %v401_v21 = vmul.f32 %v397_v13, %v1442_v10  ;;  %v399_v22 = vmul.f32 %v393_v14, %v1442_v10 }
 0x110   : > { %v1241_v28 = vpop.eup %1240  ;;  %v405_v29 = vadd.f32 1e-05, %v401_v21  ;;  %v403_v30 = vadd.f32 1e-05, %v399_v22  ;;  %v1161_v21 = vld [vmem:[%s1680_s3 + $0x60] sm:$0xff] }
 0x111   : > { %v1243_v32 = vpop.eup %1242  ;;  %v407_v33 = vmul.f32 %v1241_v28, %v402_v61  ;;  %vm413_vm3 = vweird.f32 %v1241_v28  ;;  %v1236_v61 = vld [vmem:[%s1683_s6] ss:$0 sm:$0xff] }
 0x112   : > { %v427_v35 = vmul.f32 %v1243_v32, %v404_v62  ;;  %1244 = vrsqrt.f32 %v405_v29  ;;  %vm433_vm2 = vweird.f32 %v1243_v32  ;;  %vm414_vm6 = vmor %vm412_vm5, %vm413_vm3  ;;  %vm442_vm7 = vweird.f32 %v405_v29 }
 0x113   : > { %v408_v10 = vmul.f32 %v1241_v28, %v407_v33  ;;  %1246 = vrsqrt.f32 %v403_v30  ;;  %vm434_vm4 = vmor %vm432_vm1, %vm433_vm2  ;;  %vm422_vm11 = vweird.f32 %v403_v30  ;;  %v1157_v33 = vld [vmem:[%s1680_s3 + $0x40] sm:$0xff] }
 0x114   : > { %v428_v36 = vmul.f32 %v1243_v32, %v427_v35 }
 0x115   : > { %v409_v37 = vmul.f32 0.5, %v408_v10 }
 0x116   : > { %v429_v38 = vmul.f32 0.5, %v428_v36  ;;  %v500_v36 = vperm.slane %v498_v34, 0 }
 0x117   : > { %v410_v39 = vsub.f32 1.5, %v409_v37  ;;  %v501_v37 = vperm.slane %v498_v34, 1 }
 0x118   : > { %v1245_v40 = vpop.eup %1244  ;;  %v430_v41 = vsub.f32 1.5, %v429_v38 }
 0x119   : > { %v1247_v42 = vpop.eup %1246  ;;  %v437_v43 = vmul.f32 %v1245_v40, %v405_v29  ;;  %v411_v44 = vmul.f32 %v1241_v28, %v410_v39  ;;  %vm443_vm8 = vweird.f32 %v1245_v40  ;;  %v1159_v29 = vld [vmem:[%s1680_s3 + $0x50] sm:$0xff] }
 0x11a   : > { %v431_v45 = vmul.f32 %v1243_v32, %v430_v41  ;;  %v417_v46 = vmul.f32 %v1247_v42, %v403_v30  ;;  %vm444_vm9 = vmor %vm442_vm7, %vm443_vm8  ;;  %vm423_vm10 = vweird.f32 %v1247_v42  ;;  %v1150_v30 = vld [vmem:[%s1680_s3 + $0x8] sm:$0xff] }
 0x11b   : > { %v438_v47 = vmul.f32 %v1245_v40, %v437_v43  ;;  %v415_v51 = vsel %vm414_vm6, %v1241_v28, %v411_v44  ;;  %vm424_vm12 = vmor %vm422_vm11, %vm423_vm10  ;;  %v1151_v28 = vld [vmem:[%s1680_s3 + $0x10] sm:$0xff] }
 0x11c   : > { %v418_v48 = vmul.f32 %v1247_v42, %v417_v46  ;;  %v435_v49 = vsel %vm434_vm4, %v1243_v32, %v431_v45  ;;  %v446_v57 = vmul.f32 %v415_v51, %v1450_v16  ;;  %v1156_v16 = vld [vmem:[%s1680_s3 + $0x38] sm:$0xff]  ;;  %v1149_v32 = vld [vmem:[%s1680_s3] sm:$0xff] }
 0x11d   : > { %v439_v50 = vmul.f32 0.5, %v438_v47  ;;  %v448_v55 = vmul.f32 %v435_v49, %v1447_v15  ;;  %778 = vmatpush.bf16.msra.mxu2 %v1156_v16 }
 0x11e   : > { %v419_v52 = vmul.f32 0.5, %v418_v48  ;;  %v454_v5 = vmul.f32 %v1235_v54, %v446_v57 }
 0x11f   : > { %v440_v53 = vsub.f32 1.5, %v439_v50  ;;  %v456_v62 = vmul.f32 %v1235_v54, %v448_v55 }
 0x120   : > { %v420_v56 = vsub.f32 1.5, %v419_v52  ;;  %v462_v12 = vadd.f32 %v1236_v61, %v454_v5 }
 0x121   : > { %v441_v58 = vmul.f32 %v1245_v40, %v440_v53  ;;  %v464_v9 = vadd.f32 %v1236_v61, %v456_v62 }
 0x122   : > { %v421_v59 = vmul.f32 %v1247_v42, %v420_v56 }
 0x123   : > { %v445_v60 = vsel %vm444_vm9, %v1245_v40, %v441_v58 }
 0x124   : > { %v449_v63 = vmul.f32 %v445_v60, %v1459_v23  ;;  %v425_v4 = vsel %vm424_vm12, %v1247_v42, %v421_v59  ;;  %v1155_v23 = vld [vmem:[%s1680_s3 + $0x30] sm:$0xff] }
 0x125   : > { %v447_v15 = vmul.f32 %v425_v4, %v1462_v24  ;;  %v1163_v24 = vld [vmem:[%s1680_s3 + $0x70] sm:$0xff]  ;;  %779 = vmatpush.bf16.msra.mxu2 %v1155_v23  ;;  %v1237_v4 = vld [vmem:[%s1681_s4] ss:$0 sm:$0xff] }
 0x126   : > { %v457_v6 = vmul.f32 %v1235_v54, %v449_v63  ;;  %798 = vmatpush.bf16.msra.mxu3 %v1163_v24 }
 0x127   : > { %v455_v8 = vmul.f32 %v1235_v54, %v447_v15 }
 0x128   : > { %v465_v11 = vadd.f32 %v1236_v61, %v457_v6 }
 0x129   : > { %v463_v13 = vadd.f32 %v1236_v61, %v455_v8  ;;  %780 = vmatpush.bf16.msra.mxu2 %v1154_v18 }
 0x12a   : > { %v1174_v14 = vpack.c.bf16 %v465_v11, %v464_v9  ;;  %799 = vmatpush.bf16.msra.mxu3 %v1162_v19 }
 0x12b   : > { %v1169_v17 = vpack.c.bf16 %v463_v13, %v462_v12 }
 0x12c   : > { %1176 = vst [vmem:[#allocation2 + $0x8] sm:$0xff] %v1174_v14  }
 0x12d   : > { %1170 = vst [vmem:[#allocation2] sm:$0xff] %v1169_v17   ;;  %781 = vmatpush.bf16.msra.mxu2 %v1153_v20 }
 0x12e   : > { %800 = vmatpush.bf16.msra.mxu3 %v1161_v21 }
 0x131   : > { %782 = vmatpush.bf16.msra.mxu2 %v1152_v26 }
 0x132   : > { %801 = vmatpush.bf16.msra.mxu3 %v1160_v27 }
 0x133   : > { %v1132_v25 = vld [vmem:[#allocation2 + $0x8] sm:$0xff] }
 0x134   : > { %v1131_v22 = vld [vmem:[#allocation2] sm:$0xff] }
 0x135   : > { %604 = vmatmul.bf16.vlgmr.msra.gmra.mxu0 %v1131_v22  ;;  %623 = vmatmul.bf16.vlgmr.msra.gmra.mxu1 %v1131_v22 }
 0x136   : > { %783 = vmatpush.bf16.msra.mxu2 %v1151_v28  ;;  %802 = vmatpush.bf16.msra.mxu3 %v1159_v29 }
 0x13a   : > { %784 = vmatpush.bf16.msra.mxu2 %v1150_v30  ;;  %803 = vmatpush.bf16.msra.mxu3 %v1158_v31 }
 0x13e   : > { %785 = vmatpush.bf16.msra.mxu2 %v1149_v32  ;;  %804 = vmatpush.bf16.msra.mxu3 %v1157_v33 }
 0x145   : > { %609 = vmatmul.bf16.gmra.mxu0 %v1132_v25  ;;  %628 = vmatmul.bf16.gmra.mxu1 %v1132_v25 }
 0x1b2   : > { %v605_v35 = vpop.f32.mrf.mxu0  ;;  %v624_v10 = vpop.f32.mrf.mxu1 }
 0x1b3   : > { %v606_v38 = vadd.f32 %v605_v35, %v500_v36  ;;  %v625_v39 = vadd.f32 %v624_v10, %v501_v37 }
 0x1b5   : > { %v634_v44 = vmax.f32 %v606_v38, 0.0  ;;  %v635_v45 = vmax.f32 %v625_v39, 0.0 }
 0x1ba   : > { %v607_v40 = vpop.f32.mrf.mxu0  ;;  %v626_v41 = vpop.f32.mrf.mxu1 }
 0x1bb   : > { %v608_v42 = vadd.f32 %v607_v40, %v500_v36  ;;  %v627_v43 = vadd.f32 %v626_v41, %v501_v37 }
 0x1bd   : > { %v636_v46 = vmax.f32 %v608_v42, 0.0  ;;  %v637_v47 = vmax.f32 %v627_v43, 0.0 }
 0x1bf   : > { %v646_v48 = vpack.c.bf16 %v636_v46, %v634_v44  ;;  %v647_v49 = vpack.c.bf16 %v637_v47, %v635_v45 }
 0x1c1   : > { %786 = vmatmul.bf16.vlgmr.msra.gmra.mxu2 %v646_v48  ;;  %805 = vmatmul.bf16.vlgmr.msra.gmra.mxu3 %v647_v49 }
 0x1c2   : > { %v610_v50 = vpop.f32.mrf.mxu0  ;;  %v629_v51 = vpop.f32.mrf.mxu1 }
 0x1c3   : > { %v611_v52 = vadd.f32 %v610_v50, %v500_v36  ;;  %v630_v53 = vadd.f32 %v629_v51, %v501_v37 }
 0x1c5   : > { %v638_v58 = vmax.f32 %v611_v52, 0.0  ;;  %v639_v59 = vmax.f32 %v630_v53, 0.0 }
 0x1ca   : > { %v612_v54 = vpop.f32.mrf.mxu0  ;;  %v631_v55 = vpop.f32.mrf.mxu1 }
 0x1cb   : > { %v613_v56 = vadd.f32 %v612_v54, %v500_v36  ;;  %v632_v57 = vadd.f32 %v631_v55, %v501_v37 }
 0x1cd   : > { %v640_v60 = vmax.f32 %v613_v56, 0.0  ;;  %v641_v61 = vmax.f32 %v632_v57, 0.0 }
 0x1cf   : > { %v648_v62 = vpack.c.bf16 %v640_v60, %v638_v58  ;;  %v649_v63 = vpack.c.bf16 %v641_v61, %v639_v59 }
 0x1d1   : > { %791 = vmatmul.bf16.gmra.mxu2 %v648_v62  ;;  %810 = vmatmul.bf16.gmra.mxu3 %v649_v63 }
 0x244   : > { %v787_v5 = vpop.f32.mrf.mxu2  ;;  %v806_v15 = vpop.f32.mrf.mxu3 }
 0x245   : > { %v807_v6 = vadd.f32 %v806_v15, %v787_v5 }
 0x247   : > { %v835_v16 = vadd.f32 %v1237_v4, %v807_v6 }
 0x249   : > { %v843_v7 = vadd.f32 %v835_v16, %v1432_v1 }
 0x24b   : > { %847 = vst [vmem:[%s330_s22] sm:$0xff] %v843_v7 }
 0x24c   : > { %v789_v8 = vpop.f32.mrf.mxu2  ;;  %v808_v9 = vpop.f32.mrf.mxu3 }
 0x24d   : > { %v809_v11 = vadd.f32 %v808_v9, %v789_v8 }
 0x24f   : > { %v836_v23 = vadd.f32 %v1237_v4, %v809_v11 }
 0x251   : > { %v844_v24 = vadd.f32 %v836_v23, %v1438_v3 }
 0x253   : > { %848 = vst [vmem:[%s330_s22 + $0x8] sm:$0xff] %v844_v24 }
 0x254   : > { %v792_v12 = vpop.f32.mrf.mxu2  ;;  %v811_v13 = vpop.f32.mrf.mxu3 }
 0x255   : > { %v812_v14 = vadd.f32 %v811_v13, %v792_v12 }
 0x257   : > { %v837_v17 = vadd.f32 %v1237_v4, %v812_v14 }
 0x259   : > { %v845_v18 = vadd.f32 %v837_v17, %v1430_v0 }
 0x25b   : > { %849 = vst [vmem:[%s330_s22 + $0x10] sm:$0xff] %v845_v18 }
 0x25c   : > { %v794_v1 = vpop.f32.mrf.mxu2  ;;  %v813_v19 = vpop.f32.mrf.mxu3 }
 0x25d   : > { %v814_v20 = vadd.f32 %v813_v19, %v794_v1 }
 0x25f   : > { %v838_v3 = vadd.f32 %v1237_v4, %v814_v20 }
 0x261   : > { %v846_v21 = vadd.f32 %v838_v3, %v1436_v2 }
 0x263   : > { %850 = vst [vmem:[%s330_s22 + $0x18] sm:$0xff] %v846_v21 }
 0x264   : > { %1275 = shalt.err (!%p1272_p5)
}
 0x265   : > { %s1329_s18 = smov 128   ;;  %s1330_s22 = smov 8  }
 0x266   : > { %1177 = dma.vmem_to_hbm [thread:$0]  (%p1411_p4), %s865_s12, 512, %s867_s15, %s852_s27, %s1329_s18, %s1329_s18, %s1330_s22  }
 0x267 PF: > { %p1183_p6 = scmp.ge.s32.totalorder %s1326_s29, 2  ;;  %s881_s8 = sand.u32 1, %s1306_s24  }
 0x268   : > { %s882_s10 = scalar_lea.sflag [#allocation5], %s881_s8 }
 0x269   : > { %p1180_p7 = pnand %p1183_p6, %p1418_p8 }
 0x26b   : > { %p1181_p9 = pneg %p1180_p7 }
 0x26d   : > { %1301 = dma.done.wait (%p1181_p9), %s882_s10, 512  }
 0x26e   : > { %1303 = vsyncadd (%p1181_p9), %s882_s10, 4294966784  ;;  %s20_s29 = sadd.s32 1, %s1326_s29   ;;  %s1687_s24 = smov %s1310_s25 }
 0x26f   : > { %p17_p10 = scmp.ge.s32.totalorder %s20_s29, 4   ;;  %s1688_s25 = smov %s1314_s26 }
 0x270   : > { %s1689_s26 = smov %s1424_s14  ;;  %s1690_s27 = smov %s1322_s28 }
 0x271   : > { %s1691_s28 = smov %s1693_s9  ;;  %19 = sbr.rel (!%p17_p10) target bundleno = 4 (0x4), region = 100 }
 0x276   :  { %888 = vsyncpa [#allocation5], 1 }
 0x277   :  { %890 = vsyncpa [#allocation5 + $0x1], 1 }

</bundles_post_ra>
